<compile_context>
chip_gen: v5e
topology: v5e:2x2
jax: 0.10.0
libtpu: 0.0.40
codegen_flags: <defaults>
</compile_context>

<pallas_src>
import functools

import jax
import jax.numpy as jnp
from jax.experimental import pallas as pl
from jax.experimental.pallas import tpu as pltpu


def _round_up(x, m):
    return ((x + m - 1) // m) * m


def gvl_kernel(vec_ref, sca_ref, wf_ref, sred_ref, wsn_ref, wss_ref, bs_ref,
               wgr_ref, bgr_ref, sca_out_ref, vec_out_ref):
    # vec_ref : (TN, 3*Vin)        interleaved [n, v*3 + c]  (PyTorch layout, flattened)
    # sca_ref : (TN, Sin)
    # wf_ref  : (3*Vin, 3*Vout + 3*H)  fused RHS: [ w2e | w1e ]
    #            w2e = coord-block-diag of (w1 @ w2), interleaved cols [o*3+c]
    #            w1e = coord-block-diag of w1, coord-major cols [c*H+h]
    # sred_ref: (3*Vout + 3*H, H)  0/1 matrix: zero rows over vec2, sums squares
    #                              of vec1 over the 3 coordinates
    # wsn_ref : (H, Sout)   wss_ref: (Sin, Sout)   bs_ref: (1, Sout)
    # wgr_ref : (Sout, 3*Vout)  gate weight with coord replication folded in
    # bgr_ref : (1, 3*Vout)
    n_vout3 = vec_out_ref.shape[-1]
    x = vec_ref[...]

    # VNL#1 (coord-major cols) and fused VNL#2 (interleaved cols) in ONE MXU push.
    fused = jnp.dot(x, wf_ref[...], preferred_element_type=jnp.float32)  # (TN, 3Vout+3H)

    # ||vec1||_2 over xyz via a reduction matmul (idle MXU, no lane-slice relayout);
    # the zero rows of sred mask out the vec2 half.
    norm_sq = jnp.dot(fused * fused, sred_ref[...],
                      preferred_element_type=jnp.float32)                # (TN, H)
    vec1_norm = jnp.sqrt(norm_sq)

    # lin_sca applied to concat([vec1_norm, sca], -1); weight pre-split by column.
    sca_out = (jnp.dot(vec1_norm, wsn_ref[...], preferred_element_type=jnp.float32)
               + jnp.dot(sca_ref[...], wss_ref[...], preferred_element_type=jnp.float32)
               + bs_ref[...])                                            # (TN, Sout)

    # scalar -> vector gate; coordinate replication is folded into wgr/bgr
    # (commutes exactly with the elementwise sigmoid), so no r_rep matmul.
    g_rep = jax.nn.sigmoid(
        jnp.dot(sca_out, wgr_ref[...], preferred_element_type=jnp.float32)
        + bgr_ref[...])                                                  # (TN, 3Vout)

    sca_out_ref[...] = sca_out.astype(sca_out_ref.dtype)
    # vec2 occupies lanes [0, 3*Vout) of the fused slab (no rotate needed).
    vec_out_ref[...] = (g_rep * fused[:, :n_vout3]).astype(vec_out_ref.dtype)


@functools.partial(jax.jit, static_argnames=("tile_n", "use_bf16"))
def gvl_forward(sca, vec, params, *, tile_n=8192, use_bf16=False):
    """sca: (N, Sin) f32; vec: (N, Vin, 3) f32 (PyTorch convention).

    Returns (sca_out (N, Sout), vec_out (N, Vout, 3)); f32, or bf16 when
    use_bf16=True (bf16 streaming of inputs and outputs, f32 math inside).
    """
    N, Sin = sca.shape
    _, Vin, _ = vec.shape

    w1_pt = params["lin_vec_1.weight"]        # (H, Vin)
    w2_pt = params["lin_vec_2.weight"]        # (Vout, H)
    wsca_pt = params["lin_sca.weight"]        # (Sout, H + Sin)
    bsca = params["lin_sca.bias"]             # (Sout,)
    wg_pt = params["sca_to_vec_gate.weight"]  # (Vout, Sout)
    bg_pt = params["sca_to_vec_gate.bias"]    # (Vout,)

    H = w1_pt.shape[0]
    Vout = w2_pt.shape[0]
    Sout = wsca_pt.shape[0]
    Kf = 3 * Vin                  # fused-matmul contraction dim
    Cf = 3 * Vout + 3 * H         # fused-matmul output dim (vec2 cols first)

    # --- weight prep (tiny, done once per jit trace) ------------------------
    w1 = w1_pt.T                                               # (Vin, H)
    w2 = w2_pt.T                                               # (H, Vout)
    w12 = jnp.dot(w1, w2, precision=jax.lax.Precision.HIGHEST) # (Vin, Vout), exact fusion
    eye3 = jnp.eye(3, dtype=jnp.float32)
    # w1e[v*3+c_in, c_out*H+h] = w1[v,h] * (c_in == c_out)   (coord-major cols)
    w1e = (w1[:, None, None, :] * eye3[None, :, :, None]).reshape(Kf, 3 * H)
    # w2e[v*3+c_in, o*3+c_out] = w12[v,o] * (c_in == c_out)  (interleaved cols)
    w2e = (w12[:, None, :, None] * eye3[None, :, None, :]).reshape(Kf, 3 * Vout)
    w_fused = jnp.concatenate([w2e, w1e], axis=1)              # (Kf, Cf)
    s_red = jnp.concatenate(
        [jnp.zeros((3 * Vout, H), jnp.float32),
         jnp.tile(jnp.eye(H, dtype=jnp.float32), (3, 1))], axis=0)   # (Cf, H)
    wsn = wsca_pt[:, :H].T                    # (H, Sout)   -> applies to ||vec1||
    wss = wsca_pt[:, H:].T                    # (Sin, Sout) -> applies to sca
    bs = bsca.reshape(1, Sout)
    # Gate weight with the 3-way coordinate replication folded in (exact).
    wg_rep = jnp.repeat(wg_pt.T, 3, axis=1)   # (Sout, 3*Vout), cols [o*3+c]
    bg_rep = jnp.repeat(bg_pt.reshape(1, Vout), 3, axis=1)     # (1, 3*Vout)

    # --- node-dimension tiling (pipelined, megacore-parallel) ---------------
    row_mult = 16 if use_bf16 else 8          # bf16 packs 2 rows per sublane
    n_r = _round_up(N, row_mult)
    itemsize = 2 if use_bf16 else 4

    # VMEM guard (v7x scoped default is 32 MiB): double-buffered I/O tiles plus
    # f32 intermediates must stay well under budget even for huge tile_n.
    per_row_bytes = (2 * (Kf + Sin) * itemsize          # input tiles (x2 buffers)
                     + 2 * (Sout + 3 * Vout) * itemsize  # output tiles (x2 buffers)
                     + (Cf + H + Sout + 3 * Vout) * 4)   # f32 intermediate slabs
    tn_vmem = max(row_mult,
                  ((20 * 1024 * 1024) // per_row_bytes) // row_mult * row_mult)

    tn = min(tile_n, tn_vmem, n_r)
    # Keep >= 2 grid steps when possible so ("parallel",) feeds both v7x TCs.
    if n_r >= 2 * row_mult:
        tn = min(tn, _round_up((n_r + 1) // 2, row_mult))
    tn = _round_up(max(tn, row_mult), row_mult)
    n_pad = _round_up(n_r, tn)

    vecf = vec.reshape(N, Kf)                 # free reshape: [n, v*3 + c]
    if n_pad != N:
        vecf = jnp.pad(vecf, ((0, n_pad - N), (0, 0)))
        sca_p = jnp.pad(sca, ((0, n_pad - N), (0, 0)))
    else:
        sca_p = sca

    out_dtype = jnp.float32
    if use_bf16:
        # Halve HBM traffic for the streamed arrays (safe on v5e/v6e/v7x: the
        # MXU takes bf16 operands with f32 accumulation; all elementwise math
        # inside the kernel remains f32).
        vecf = vecf.astype(jnp.bfloat16)
        sca_p = sca_p.astype(jnp.bfloat16)
        w_fused = w_fused.astype(jnp.bfloat16)
        wss = wss.astype(jnp.bfloat16)
        out_dtype = jnp.bfloat16

    grid = (n_pad // tn,)

    def row_spec(cols):
        return pl.BlockSpec((tn, cols), lambda i: (i, 0))

    def full_spec(r, c):
        return pl.BlockSpec((r, c), lambda i: (0, 0))   # weight resident across steps

    flops = 2 * n_pad * (Kf * Cf + Cf * H + H * Sout + Sin * Sout + Sout * 3 * Vout) \
        + n_pad * (Cf + H + 2 * Sout + 2 * 3 * Vout)
    bytes_accessed = (
        n_pad * (Kf + Sin) * itemsize                           # streamed inputs
        + n_pad * (Sout + 3 * Vout) * itemsize                  # streamed outputs
        + Kf * Cf * itemsize                                    # fused vec weight
        + (Cf * H + H * Sout + Sin * Sout + Sout
           + Sout * 3 * Vout + 3 * Vout) * 4)                   # small weights
    cost = pl.CostEstimate(flops=int(flops),
                           transcendentals=int(n_pad * (H + 3 * Vout)),
                           bytes_accessed=int(bytes_accessed))

    sca_out, vec_out_flat = pl.pallas_call(
        gvl_kernel,
        out_shape=(jax.ShapeDtypeStruct((n_pad, Sout), out_dtype),
                   jax.ShapeDtypeStruct((n_pad, 3 * Vout), out_dtype)),
        grid=grid,
        in_specs=[
            row_spec(Kf),                  # vec (flattened, interleaved)
            row_spec(Sin),                 # sca
            full_spec(Kf, Cf),             # w_fused = [w2e | w1e]
            full_spec(Cf, H),              # s_red (zero rows over vec2)
            full_spec(H, Sout),            # wsn
            full_spec(Sin, Sout),          # wss
            full_spec(1, Sout),            # bs
            full_spec(Sout, 3 * Vout),     # wg_rep
            full_spec(1, 3 * Vout),        # bg_rep
        ],
        out_specs=(row_spec(Sout), row_spec(3 * Vout)),
        compiler_params=pltpu.CompilerParams(
            dimension_semantics=("parallel",)),
        cost_estimate=cost,
    )(vecf, sca_p, w_fused, s_red, wsn, wss, bs, wg_rep, bg_rep)

    sca_out = sca_out[:N]
    vec_out = vec_out_flat[:N].reshape(N, Vout, 3)   # free reshape back to torch layout
    return sca_out, vec_out


def gvl_reference(sca, vec, params):
    """Pure-JAX mirror of the PyTorch GVL.forward, for verification."""
    w1 = params["lin_vec_1.weight"]
    w2 = params["lin_vec_2.weight"]
    wsca = params["lin_sca.weight"]
    bsca = params["lin_sca.bias"]
    wg = params["sca_to_vec_gate.weight"]
    bg = params["sca_to_vec_gate.bias"]

    vec1 = jnp.einsum("nvc,hv->nhc", vec, w1)               # VNL #1
    vec1_norm = jnp.sqrt(jnp.sum(vec1 * vec1, axis=-1))     # (N, H)
    cat = jnp.concatenate([vec1_norm, sca], axis=-1)
    sca_out = cat @ wsca.T + bsca
    vec2 = jnp.einsum("nhc,oh->noc", vec1, w2)              # VNL #2
    g = jax.nn.sigmoid(sca_out @ wg.T + bg)[..., None]
    return sca_out, g * vec2


if __name__ == "__main__":
    # Sizes implied by the module: GVL(in_scalar, in_vector, out_scalar, out_vector)
    in_scalar, in_vector, out_scalar, out_vector = 16, 8, 16, 8
    dim_hid = max(in_vector, out_vector)

    key = jax.random.PRNGKey(0)
    ks = jax.random.split(key, 8)
    params = {
        "lin_vec_1.weight": 0.2 * jax.random.normal(ks[0], (dim_hid, in_vector), jnp.float32),
        "lin_vec_2.weight": 0.2 * jax.random.normal(ks[1], (out_vector, dim_hid), jnp.float32),
        "lin_sca.weight":   0.2 * jax.random.normal(ks[2], (out_scalar, in_scalar + dim_hid), jnp.float32),
        "lin_sca.bias":     0.1 * jax.random.normal(ks[3], (out_scalar,), jnp.float32),
        "sca_to_vec_gate.weight": 0.2 * jax.random.normal(ks[4], (out_vector, out_scalar), jnp.float32),
        "sca_to_vec_gate.bias":   0.1 * jax.random.normal(ks[5], (out_vector,), jnp.float32),
    }

    # --- Test 1: explicit small tile (grid=4), f32 ----------------------------
    N1 = 2048
    sca_a = jax.random.normal(ks[6], (N1, in_scalar), jnp.float32)
    vec_a = jax.random.normal(ks[7], (N1, in_vector, 3), jnp.float32)
    so1, vo1 = gvl_forward(sca_a, vec_a, params, tile_n=512)
    jax.block_until_ready((so1, vo1))
    so1_ref, vo1_ref = gvl_reference(sca_a, vec_a, params)
    assert so1.shape == (N1, out_scalar) and vo1.shape == (N1, out_vector, 3)
    assert jnp.allclose(so1, so1_ref, rtol=1e-4, atol=1e-4)
    assert jnp.allclose(vo1, vo1_ref, rtol=1e-4, atol=1e-4)

    # --- Test 2: default (large) tile, auto-capped to keep >= 2 grid steps ----
    so1b, vo1b = gvl_forward(sca_a, vec_a, params)
    jax.block_until_ready((so1b, vo1b))
    assert jnp.allclose(so1b, so1_ref, rtol=1e-4, atol=1e-4)
    assert jnp.allclose(vo1b, vo1_ref, rtol=1e-4, atol=1e-4)

    # --- Test 3: small ragged N (exercises row padding), f32 ------------------
    N2 = 200
    sca_b = jax.random.normal(jax.random.PRNGKey(1), (N2, in_scalar), jnp.float32)
    vec_b = jax.random.normal(jax.random.PRNGKey(2), (N2, in_vector, 3), jnp.float32)
    so2, vo2 = gvl_forward(sca_b, vec_b, params)
    jax.block_until_ready((so2, vo2))
    so2_ref, vo2_ref = gvl_reference(sca_b, vec_b, params)
    assert so2.shape == (N2, out_scalar) and vo2.shape == (N2, out_vector, 3)
    assert jnp.allclose(so2, so2_ref, rtol=1e-4, atol=1e-4)
    assert jnp.allclose(vo2, vo2_ref, rtol=1e-4, atol=1e-4)

    # --- Test 4: bf16 streaming (in + out), incl. ragged N (16-row rounding) --
    so3, vo3 = gvl_forward(sca_a, vec_a, params, use_bf16=True)
    jax.block_until_ready((so3, vo3))
    assert so3.dtype == jnp.bfloat16 and vo3.dtype == jnp.bfloat16
    assert jnp.allclose(so3.astype(jnp.float32), so1_ref, rtol=5e-2, atol=5e-2)
    assert jnp.allclose(vo3.astype(jnp.float32), vo1_ref, rtol=5e-2, atol=5e-2)

    so4, vo4 = gvl_forward(sca_b, vec_b, params, use_bf16=True)
    jax.block_until_ready((so4, vo4))
    assert jnp.allclose(so4.astype(jnp.float32), so2_ref, rtol=5e-2, atol=5e-2)
    assert jnp.allclose(vo4.astype(jnp.float32), vo2_ref, rtol=5e-2, atol=5e-2)

    print("KERNEL_OK")
</pallas_src>

<mosaic_0001>
module attributes {stable_mosaic.version = 11 : i64} {
  func.func @gvl_kernel(%arg0: i32, %arg1: memref<512x24xf32, #tpu.memory_space<vmem>>, %arg2: memref<512x16xf32, #tpu.memory_space<vmem>>, %arg3: memref<24x48xf32, #tpu.memory_space<vmem>>, %arg4: memref<48x8xf32, #tpu.memory_space<vmem>>, %arg5: memref<8x16xf32, #tpu.memory_space<vmem>>, %arg6: memref<16x16xf32, #tpu.memory_space<vmem>>, %arg7: memref<1x16xf32, #tpu.memory_space<vmem>>, %arg8: memref<16x24xf32, #tpu.memory_space<vmem>>, %arg9: memref<1x24xf32, #tpu.memory_space<vmem>>, %arg10: memref<512x16xf32, #tpu.memory_space<vmem>>, %arg11: memref<512x24xf32, #tpu.memory_space<vmem>>) attributes {dimension_semantics = [#tpu.dimension_semantics<parallel>], iteration_bounds = array<i64: 4>, scalar_prefetch = 0 : i64, scratch_operands = 0 : i64, tpu.core_type = #tpu.core_type<tc>, window_params = [{transform_indices = @transform_0, window_bounds = array<i64: 512, 24>}, {transform_indices = @transform_1, window_bounds = array<i64: 512, 16>}, {pipeline_mode = #tpu.pipeline_mode<synchronous>, transform_indices = @transform_2, window_bounds = array<i64: 24, 48>}, {pipeline_mode = #tpu.pipeline_mode<synchronous>, transform_indices = @transform_3, window_bounds = array<i64: 48, 8>}, {pipeline_mode = #tpu.pipeline_mode<synchronous>, transform_indices = @transform_4, window_bounds = array<i64: 8, 16>}, {pipeline_mode = #tpu.pipeline_mode<synchronous>, transform_indices = @transform_5, window_bounds = array<i64: 16, 16>}, {pipeline_mode = #tpu.pipeline_mode<synchronous>, transform_indices = @transform_6, window_bounds = array<i64: 1, 16>}, {pipeline_mode = #tpu.pipeline_mode<synchronous>, transform_indices = @transform_7, window_bounds = array<i64: 16, 24>}, {pipeline_mode = #tpu.pipeline_mode<synchronous>, transform_indices = @transform_8, window_bounds = array<i64: 1, 24>}, {transform_indices = @transform_9, window_bounds = array<i64: 512, 16>}, {transform_indices = @transform_10, window_bounds = array<i64: 512, 24>}]} {
    %c0 = arith.constant 0 : index
    %c0_0 = arith.constant 0 : index
    %0 = vector.load %arg1[%c0, %c0_0] : memref<512x24xf32, #tpu.memory_space<vmem>>, vector<512x24xf32>
    %c0_1 = arith.constant 0 : index
    %c0_2 = arith.constant 0 : index
    %1 = vector.load %arg3[%c0_1, %c0_2] : memref<24x48xf32, #tpu.memory_space<vmem>>, vector<24x48xf32>
    %cst = arith.constant dense<0.000000e+00> : vector<512x48xf32>
    %2 = tpu.matmul %0, %1, %cst {dimension_numbers = #tpu.dot_dimension_numbers<[1], [0], [0], [1], [0, 0, 1, 1], [], []>} : vector<512x24xf32>, vector<24x48xf32>, vector<512x48xf32> -> vector<512x48xf32>
    %3 = arith.mulf %2, %2 : vector<512x48xf32>
    %c0_3 = arith.constant 0 : index
    %c0_4 = arith.constant 0 : index
    %4 = vector.load %arg4[%c0_3, %c0_4] : memref<48x8xf32, #tpu.memory_space<vmem>>, vector<48x8xf32>
    %cst_5 = arith.constant dense<0.000000e+00> : vector<512x8xf32>
    %5 = tpu.matmul %3, %4, %cst_5 {dimension_numbers = #tpu.dot_dimension_numbers<[1], [0], [0], [1], [0, 0, 1, 1], [], []>} : vector<512x48xf32>, vector<48x8xf32>, vector<512x8xf32> -> vector<512x8xf32>
    %6 = math.sqrt %5 : vector<512x8xf32>
    %c0_6 = arith.constant 0 : index
    %c0_7 = arith.constant 0 : index
    %7 = vector.load %arg5[%c0_6, %c0_7] : memref<8x16xf32, #tpu.memory_space<vmem>>, vector<8x16xf32>
    %cst_8 = arith.constant dense<0.000000e+00> : vector<512x16xf32>
    %8 = tpu.matmul %6, %7, %cst_8 {dimension_numbers = #tpu.dot_dimension_numbers<[1], [0], [0], [1], [0, 0, 1, 1], [], []>} : vector<512x8xf32>, vector<8x16xf32>, vector<512x16xf32> -> vector<512x16xf32>
    %c0_9 = arith.constant 0 : index
    %c0_10 = arith.constant 0 : index
    %9 = vector.load %arg2[%c0_9, %c0_10] : memref<512x16xf32, #tpu.memory_space<vmem>>, vector<512x16xf32>
    %c0_11 = arith.constant 0 : index
    %c0_12 = arith.constant 0 : index
    %10 = vector.load %arg6[%c0_11, %c0_12] : memref<16x16xf32, #tpu.memory_space<vmem>>, vector<16x16xf32>
    %cst_13 = arith.constant dense<0.000000e+00> : vector<512x16xf32>
    %11 = tpu.matmul %9, %10, %cst_13 {dimension_numbers = #tpu.dot_dimension_numbers<[1], [0], [0], [1], [0, 0, 1, 1], [], []>} : vector<512x16xf32>, vector<16x16xf32>, vector<512x16xf32> -> vector<512x16xf32>
    %12 = arith.addf %8, %11 : vector<512x16xf32>
    %c0_14 = arith.constant 0 : index
    %c0_15 = arith.constant 0 : index
    %13 = vector.load %arg7[%c0_14, %c0_15] : memref<1x16xf32, #tpu.memory_space<vmem>>, vector<1x16xf32>
    %14 = vector.broadcast %13 : vector<1x16xf32> to vector<512x16xf32>
    %15 = arith.addf %12, %14 : vector<512x16xf32>
    %c0_16 = arith.constant 0 : index
    %c0_17 = arith.constant 0 : index
    %16 = vector.load %arg8[%c0_16, %c0_17] : memref<16x24xf32, #tpu.memory_space<vmem>>, vector<16x24xf32>
    %cst_18 = arith.constant dense<0.000000e+00> : vector<512x24xf32>
    %17 = tpu.matmul %15, %16, %cst_18 {dimension_numbers = #tpu.dot_dimension_numbers<[1], [0], [0], [1], [0, 0, 1, 1], [], []>} : vector<512x16xf32>, vector<16x24xf32>, vector<512x24xf32> -> vector<512x24xf32>
    %c0_19 = arith.constant 0 : index
    %c0_20 = arith.constant 0 : index
    %18 = vector.load %arg9[%c0_19, %c0_20] : memref<1x24xf32, #tpu.memory_space<vmem>>, vector<1x24xf32>
    %19 = vector.broadcast %18 : vector<1x24xf32> to vector<512x24xf32>
    %20 = arith.addf %17, %19 : vector<512x24xf32>
    %21 = arith.negf %20 : vector<512x24xf32>
    %22 = math.exp %21 : vector<512x24xf32>
    %cst_21 = arith.constant 1.000000e+00 : f32
    %23 = vector.broadcast %cst_21 : f32 to vector<512x24xf32>
    %24 = arith.addf %23, %22 : vector<512x24xf32>
    %25 = arith.divf %23, %24 : vector<512x24xf32>
    %c0_22 = arith.constant 0 : index
    %c0_23 = arith.constant 0 : index
    %26 = vector.load %arg10[%c0_22, %c0_23] : memref<512x16xf32, #tpu.memory_space<vmem>>, vector<512x16xf32>
    tpu.vector_store %arg10[%c0_22, %c0_23], %15 {strides = array<i32>} : memref<512x16xf32, #tpu.memory_space<vmem>>, vector<512x16xf32>,
    %27 = vector.extract_strided_slice %2 {offsets = [0, 0], sizes = [512, 24], strides = [1, 1]} : vector<512x48xf32> to vector<512x24xf32>
    %28 = arith.mulf %25, %27 : vector<512x24xf32>
    %c0_24 = arith.constant 0 : index
    %c0_25 = arith.constant 0 : index
    %29 = vector.load %arg11[%c0_24, %c0_25] : memref<512x24xf32, #tpu.memory_space<vmem>>, vector<512x24xf32>
    tpu.vector_store %arg11[%c0_24, %c0_25], %28 {strides = array<i32>} : memref<512x24xf32, #tpu.memory_space<vmem>>, vector<512x24xf32>,
    return
  }
  func.func @transform_0(%arg0: i32) -> (i32, i32) {
    %c0_i32 = arith.constant 0 : i32
    %c0_i32_0 = arith.constant 0 : i32
    return %arg0, %c0_i32 : i32, i32
  }
  func.func @transform_1(%arg0: i32) -> (i32, i32) {
    %c0_i32 = arith.constant 0 : i32
    %c0_i32_0 = arith.constant 0 : i32
    return %arg0, %c0_i32 : i32, i32
  }
  func.func @transform_2(%arg0: i32) -> (i32, i32) {
    %c0_i32 = arith.constant 0 : i32
    %c0_i32_0 = arith.constant 0 : i32
    %c0_i32_1 = arith.constant 0 : i32
    return %c0_i32, %c0_i32_0 : i32, i32
  }
  func.func @transform_3(%arg0: i32) -> (i32, i32) {
    %c0_i32 = arith.constant 0 : i32
    %c0_i32_0 = arith.constant 0 : i32
    %c0_i32_1 = arith.constant 0 : i32
    return %c0_i32, %c0_i32_0 : i32, i32
  }
  func.func @transform_4(%arg0: i32) -> (i32, i32) {
    %c0_i32 = arith.constant 0 : i32
    %c0_i32_0 = arith.constant 0 : i32
    %c0_i32_1 = arith.constant 0 : i32
    return %c0_i32, %c0_i32_0 : i32, i32
  }
  func.func @transform_5(%arg0: i32) -> (i32, i32) {
    %c0_i32 = arith.constant 0 : i32
    %c0_i32_0 = arith.constant 0 : i32
    %c0_i32_1 = arith.constant 0 : i32
    return %c0_i32, %c0_i32_0 : i32, i32
  }
  func.func @transform_6(%arg0: i32) -> (i32, i32) {
    %c0_i32 = arith.constant 0 : i32
    %c0_i32_0 = arith.constant 0 : i32
    %c0_i32_1 = arith.constant 0 : i32
    return %c0_i32, %c0_i32_0 : i32, i32
  }
  func.func @transform_7(%arg0: i32) -> (i32, i32) {
    %c0_i32 = arith.constant 0 : i32
    %c0_i32_0 = arith.constant 0 : i32
    %c0_i32_1 = arith.constant 0 : i32
    return %c0_i32, %c0_i32_0 : i32, i32
  }
  func.func @transform_8(%arg0: i32) -> (i32, i32) {
    %c0_i32 = arith.constant 0 : i32
    %c0_i32_0 = arith.constant 0 : i32
    %c0_i32_1 = arith.constant 0 : i32
    return %c0_i32, %c0_i32_0 : i32, i32
  }
  func.func @transform_9(%arg0: i32) -> (i32, i32) {
    %c0_i32 = arith.constant 0 : i32
    %c0_i32_0 = arith.constant 0 : i32
    return %arg0, %c0_i32 : i32, i32
  }
  func.func @transform_10(%arg0: i32) -> (i32, i32) {
    %c0_i32 = arith.constant 0 : i32
    %c0_i32_0 = arith.constant 0 : i32
    return %arg0, %c0_i32 : i32, i32
  }
}

</mosaic_0001>

<bundles_post_ra>
// kernel: gvl_forward.1
= control target key start
LH: loop header
LB: loop body
LE: loop exit
PB: predicated region body
PF: predicated region fallthrough
CT: control target
= control target key end

     0   :  { %s5831_s13 = smov 0   ;;  %s7815_s0 = inlined_call_operand.vmem [shape: f32[2048,24], index: 0, kind: input, shape index: {}]   ;;  %s7816_s1 = inlined_call_operand.vmem [shape: f32[2048,16], index: 1, kind: input, shape index: {}]   ;;  %s7817_s2 = inlined_call_operand.vmem [shape: f32[24,48], index: 2, kind: input, shape index: {}]   ;;  %s7818_s3 = inlined_call_operand.vmem [shape: f32[48,8], index: 3, kind: input, shape index: {}]   ;;  %s7819_s4 = inlined_call_operand.vmem [shape: f32[8,16], index: 4, kind: input, shape index: {}]   ;;  %s7820_s5 = inlined_call_operand.vmem [shape: f32[16,16], index: 5, kind: input, shape index: {}]   ;;  %s7821_s6 = inlined_call_operand.vmem [shape: f32[1,16], index: 6, kind: input, shape index: {}]   ;;  %s7822_s7 = inlined_call_operand.vmem [shape: f32[16,24], index: 7, kind: input, shape index: {}]   ;;  %s7823_s8 = inlined_call_operand.vmem [shape: f32[1,24], index: 8, kind: input, shape index: {}]   ;;  %s7824_s9 = inlined_call_operand.vmem [shape: f32[2048,16], index: 9, kind: output, shape index: {0}]   ;;  %s7825_s10 = inlined_call_operand.vmem [shape: f32[2048,24], index: 10, kind: output, shape index: {1}]  }
   0x1 LB: > { %s4964_s14 = sadd.s32 4294967295, %s5774_s13   ;;  %p4968_p0 = scmp.ge.s32.totalorder %s5774_s13, 1  ;;  %s5774_s13 = sphi %s5831_s13, %s21_s13  }
   0x2   : > { %p327_p1 = scmp.lt.s32.totalorder %s5774_s13, 5 }
   0x4   : > { %p328_p2 = pnand %p4968_p0, %p327_p1 }
   0x6   : > { %331 = sbr.rel (%p328_p2) target bundleno = 1475 (0x5c3), region = 56 }
   0xb   : > { %v465_v0 = vld [vmem:[%s7817_s2 + $0x10] sm:$0xff]  ;;  %v464_v1 = vld [vmem:[%s7817_s2 + $0x8] sm:$0xff]  ;;  %s4969_s19 = sshll.u32 %s4964_s14, 6  ;;  %v5853_v3 = vld [vmem:[%s7820_s5] sm:$0xff]  ;;  %vm466_vm0 = vcmask 195584   ;;  %vm2175_vm1 = vcmask 130048  }
   0xc   : > { %672 = vmatpush.msra.mxu0 %v465_v0  ;;  %p376_p3 = scmp.lt.s32.totalorder %s4969_s19, 255  ;;  %v5848_v2 = vld [vmem:[%s7820_s5 + $0x8] sm:$0xff]  ;;  %5363 = vmatpush.msra.mxu1 %v465_v0  ;;  %v463_v4 = vld [vmem:[%s7817_s2] sm:$0xff]  ;;  %v935_v16 = vld [vmem:[%s7818_s3 + $0x18] sm:$0xff]  ;;  %vm938_vm2 = vcmask 392192   ;;  %vm2577_vm4 = vcmask 64512  }
   0xd   : > { %5367 = vmatpush.msra.mxu2 %v5848_v2  ;;  %v937_v5 = vld [vmem:[%s7818_s3 + $0x28] sm:$0xff]  ;;  %v936_v9 = vld [vmem:[%s7818_s3 + $0x20] sm:$0xff]  ;;  %v934_v26 = vld [vmem:[%s7818_s3 + $0x10] sm:$0xff] }
   0xe   : > { %673 = vmatpush.msra.mxu0 %v464_v1  ;;  %s8057_s19 = smov (!%p376_p3, %s4969_s19), 255  ;;  %5364 = vmatpush.msra.mxu1 %v464_v1  ;;  %v933_v33 = vld [vmem:[%s7818_s3 + $0x8] sm:$0xff]  ;;  %v932_v40 = vld [vmem:[%s7818_s3] sm:$0xff] }
   0xf   : > { %5369 = vmatpush.msra.mxu2 %v5853_v3  ;;  %s5863_s28 = sshll.u32 %s8057_s19, 3 }
  0x10   : > { %674 = vmatpush.msra.mxu0 %v463_v4  ;;  %5365 = vmatpush.msra.mxu1 %v463_v4  ;;  %s5869_s11 = scalar_lea.vmem %s7815_s0, %s5863_s28  ;;  %s5875_s15 = scalar_lea.vmem %s7816_s1, %s5863_s28 }
  0x11   : > { %v399_v6 = vld [vmem:[%s5869_s11] sm:$0xff]  ;;  %v2140_v7 = vld [vmem:[%s5875_s15 + $0xf8] sm:$0xff]  ;;  %v449_v8 = vld [vmem:[%s5869_s11 + $0x190] sm:$0xff]  ;;  %s6557_s14 = scalar_lea.vmem %s7824_s9, %s5863_s28  ;;  %s7462_s25 = scalar_lea.vmem %s7825_s10, %s5863_s28 }
  0x12   : > { %1141 = vmatpush.msrb.mxu1 %v937_v5  ;;  %2382 = vmatpush.msrb.mxu0 %v5848_v2  ;;  %v400_v10 = vld [vmem:[%s5869_s11 + $0x8] sm:$0xff]  ;;  %v2141_v11 = vld [vmem:[%s5875_s15 + $0x100] sm:$0xff]  ;;  %v450_v12 = vld [vmem:[%s5869_s11 + $0x198] sm:$0xff] }
  0x13   : > { %4977 = vmatmul.msk.f32.vlgmr.msra.gmra.mxu0 %vm466_vm0, %v399_v6  ;;  %5136 = vmatmul.msk.f32.vlgmr.msra.gmra.mxu2 %vm2175_vm1, %v2140_v7  ;;  %v401_v13 = vld [vmem:[%s5869_s11 + $0x10] sm:$0xff]  ;;  %v2142_v14 = vld [vmem:[%s5875_s15 + $0x108] sm:$0xff]  ;;  %v451_v15 = vld [vmem:[%s5869_s11 + $0x1a0] sm:$0xff] }
  0x14   : > { %5027 = vmatmul.msk.f32.vlgmr.msra.gmra.mxu1 %vm466_vm0, %v449_v8  ;;  %2383 = vmatpush.msrb.mxu0 %v5853_v3  ;;  %v402_v17 = vld [vmem:[%s5869_s11 + $0x18] sm:$0xff]  ;;  %v2143_v18 = vld [vmem:[%s5875_s15 + $0x110] sm:$0xff]  ;;  %v452_v19 = vld [vmem:[%s5869_s11 + $0x1a8] sm:$0xff] }
  0x15   : > { %1142 = vmatpush.msrb.mxu1 %v936_v9  ;;  %v403_v20 = vld [vmem:[%s5869_s11 + $0x20] sm:$0xff]  ;;  %v2144_v21 = vld [vmem:[%s5875_s15 + $0x118] sm:$0xff]  ;;  %v453_v22 = vld [vmem:[%s5869_s11 + $0x1b0] sm:$0xff] }
  0x16   : > { %v404_v23 = vld [vmem:[%s5869_s11 + $0x28] sm:$0xff]  ;;  %v2145_v24 = vld [vmem:[%s5875_s15 + $0x120] sm:$0xff]  ;;  %v454_v25 = vld [vmem:[%s5869_s11 + $0x1b8] sm:$0xff] }
  0x17   : > { %1143 = vmatpush.msrb.mxu1 %v935_v16  ;;  %v405_v27 = vld [vmem:[%s5869_s11 + $0x30] sm:$0xff]  ;;  %v2146_v28 = vld [vmem:[%s5875_s15 + $0x128] sm:$0xff]  ;;  %v455_v29 = vld [vmem:[%s5869_s11 + $0x1c0] sm:$0xff] }
  0x18   : > { %v406_v30 = vld [vmem:[%s5869_s11 + $0x38] sm:$0xff]  ;;  %v2147_v31 = vld [vmem:[%s5875_s15 + $0x130] sm:$0xff]  ;;  %v456_v32 = vld [vmem:[%s5869_s11 + $0x1c8] sm:$0xff] }
  0x19   : > { %1144 = vmatpush.msrb.mxu1 %v934_v26  ;;  %v407_v34 = vld [vmem:[%s5869_s11 + $0x40] sm:$0xff]  ;;  %v2148_v35 = vld [vmem:[%s5875_s15 + $0x138] sm:$0xff]  ;;  %v457_v36 = vld [vmem:[%s5869_s11 + $0x1d0] sm:$0xff] }
  0x1a   : > { %v408_v37 = vld [vmem:[%s5869_s11 + $0x48] sm:$0xff]  ;;  %v2149_v38 = vld [vmem:[%s5875_s15 + $0x140] sm:$0xff]  ;;  %v458_v39 = vld [vmem:[%s5869_s11 + $0x1d8] sm:$0xff] }
  0x1b   : > { %4978 = vmatmul.msk.f32.gmra.mxu0 %vm466_vm0, %v400_v10  ;;  %5137 = vmatmul.msk.f32.gmra.mxu2 %vm2175_vm1, %v2141_v11  ;;  %v409_v41 = vld [vmem:[%s5869_s11 + $0x50] sm:$0xff]  ;;  %v2150_v42 = vld [vmem:[%s5875_s15 + $0x148] sm:$0xff]  ;;  %v459_v43 = vld [vmem:[%s5869_s11 + $0x1e0] sm:$0xff] }
  0x1c   : > { %5028 = vmatmul.msk.f32.gmra.mxu1 %vm466_vm0, %v450_v12  ;;  %v410_v44 = vld [vmem:[%s5869_s11 + $0x58] sm:$0xff]  ;;  %v2151_v45 = vld [vmem:[%s5875_s15 + $0x150] sm:$0xff]  ;;  %v460_v46 = vld [vmem:[%s5869_s11 + $0x1e8] sm:$0xff] }
  0x1d   : > { %1145 = vmatpush.msrb.mxu1 %v933_v33  ;;  %v411_v47 = vld [vmem:[%s5869_s11 + $0x60] sm:$0xff]  ;;  %v2152_v48 = vld [vmem:[%s5875_s15 + $0x158] sm:$0xff]  ;;  %v461_v49 = vld [vmem:[%s5869_s11 + $0x1f0] sm:$0xff] }
  0x1e   : > { %v412_v50 = vld [vmem:[%s5869_s11 + $0x68] sm:$0xff]  ;;  %v2153_v51 = vld [vmem:[%s5875_s15 + $0x160] sm:$0xff]  ;;  %v462_v52 = vld [vmem:[%s5869_s11 + $0x1f8] sm:$0xff] }
  0x1f   : > { %1146 = vmatpush.msrb.mxu1 %v932_v40  ;;  %v413_v53 = vld [vmem:[%s5869_s11 + $0x70] sm:$0xff]  ;;  %v2154_v54 = vld [vmem:[%s5875_s15 + $0x168] sm:$0xff]  ;;  %v414_v55 = vld [vmem:[%s5869_s11 + $0x78] sm:$0xff] }
  0x20   : > { %v2155_v56 = vld [vmem:[%s5875_s15 + $0x170] sm:$0xff]  ;;  %v415_v58 = vld [vmem:[%s5869_s11 + $0x80] sm:$0xff]  ;;  %v2156_v60 = vld [vmem:[%s5875_s15 + $0x178] sm:$0xff] }
  0x21   : > { %5366 = vmatpush.msra.mxu1 %v5848_v2  ;;  %v416_v0 = vld [vmem:[%s5869_s11 + $0x88] sm:$0xff]  ;;  %v2157_v2 = vld [vmem:[%s5875_s15 + $0x180] sm:$0xff]  ;;  %v417_v6 = vld [vmem:[%s5869_s11 + $0x90] sm:$0xff] }
  0x22   : > { %v2158_v8 = vld [vmem:[%s5875_s15 + $0x188] sm:$0xff]  ;;  %v418_v12 = vld [vmem:[%s5869_s11 + $0x98] sm:$0xff]  ;;  %v2161_v26 = vld [vmem:[%s5875_s15 + $0x1a0] sm:$0xff] }
  0x23   : > { %4979 = vmatmul.msk.f32.gmra.mxu0 %vm466_vm0, %v401_v13  ;;  %5138 = vmatmul.msk.f32.gmra.mxu2 %vm2175_vm1, %v2142_v14  ;;  %v2159_v14 = vld [vmem:[%s5875_s15 + $0x190] sm:$0xff] }
  0x24   : > { %5029 = vmatmul.msk.f32.gmra.mxu1 %vm466_vm0, %v451_v15 }
  0x25   : > { %5368 = vmatpush.msra.mxu1 %v5853_v3 }
  0x2b   : > { %4980 = vmatmul.msk.f32.gmra.mxu0 %vm466_vm0, %v402_v17  ;;  %5139 = vmatmul.msk.f32.gmra.mxu2 %vm2175_vm1, %v2143_v18  ;;  %v419_v18 = vld [vmem:[%s5869_s11 + $0xa0] sm:$0xff] }
  0x2c   : > { %5030 = vmatmul.msk.f32.gmra.mxu1 %vm466_vm0, %v452_v19 }
  0x33   : > { %4981 = vmatmul.msk.f32.gmra.mxu0 %vm466_vm0, %v403_v20  ;;  %5140 = vmatmul.msk.f32.gmra.mxu2 %vm2175_vm1, %v2144_v21  ;;  %v2160_v20 = vld [vmem:[%s5875_s15 + $0x198] sm:$0xff] }
  0x34   : > { %5031 = vmatmul.msk.f32.gmra.mxu1 %vm466_vm0, %v453_v22 }
  0x3b   : > { %4982 = vmatmul.msk.f32.gmra.mxu0 %vm466_vm0, %v404_v23  ;;  %5141 = vmatmul.msk.f32.gmra.mxu2 %vm2175_vm1, %v2145_v24  ;;  %v420_v24 = vld [vmem:[%s5869_s11 + $0xa8] sm:$0xff] }
  0x3c   : > { %5032 = vmatmul.msk.f32.gmra.mxu1 %vm466_vm0, %v454_v25 }
  0x43   : > { %4983 = vmatmul.msk.f32.gmra.mxu0 %vm466_vm0, %v405_v27  ;;  %5142 = vmatmul.msk.f32.gmra.mxu2 %vm2175_vm1, %v2146_v28 }
  0x44   : > { %5033 = vmatmul.msk.f32.gmra.mxu1 %vm466_vm0, %v455_v29 }
  0x4b   : > { %4984 = vmatmul.msk.f32.gmra.mxu0 %vm466_vm0, %v406_v30  ;;  %5143 = vmatmul.msk.f32.gmra.mxu2 %vm2175_vm1, %v2147_v31  ;;  %v421_v30 = vld [vmem:[%s5869_s11 + $0xb0] sm:$0xff] }
  0x4c   : > { %5034 = vmatmul.msk.f32.gmra.mxu1 %vm466_vm0, %v456_v32  ;;  %v2162_v32 = vld [vmem:[%s5875_s15 + $0x1a8] sm:$0xff] }
  0x53   : > { %4985 = vmatmul.msk.f32.gmra.mxu0 %vm466_vm0, %v407_v34  ;;  %5144 = vmatmul.msk.f32.gmra.mxu2 %vm2175_vm1, %v2148_v35 }
  0x54   : > { %5035 = vmatmul.msk.f32.gmra.mxu1 %vm466_vm0, %v457_v36  ;;  %v422_v36 = vld [vmem:[%s5869_s11 + $0xb8] sm:$0xff] }
  0x5b   : > { %4986 = vmatmul.msk.f32.gmra.mxu0 %vm466_vm0, %v408_v37  ;;  %5145 = vmatmul.msk.f32.gmra.mxu2 %vm2175_vm1, %v2149_v38  ;;  %v2163_v38 = vld [vmem:[%s5875_s15 + $0x1b0] sm:$0xff] }
  0x5c   : > { %5036 = vmatmul.msk.f32.gmra.mxu1 %vm466_vm0, %v458_v39 }
  0x63   : > { %4987 = vmatmul.msk.f32.gmra.mxu0 %vm466_vm0, %v409_v41  ;;  %5146 = vmatmul.msk.f32.gmra.mxu2 %vm2175_vm1, %v2150_v42  ;;  %v423_v42 = vld [vmem:[%s5869_s11 + $0xc0] sm:$0xff] }
  0x64   : > { %5037 = vmatmul.msk.f32.gmra.mxu1 %vm466_vm0, %v459_v43 }
  0x6b   : > { %4988 = vmatmul.msk.f32.gmra.mxu0 %vm466_vm0, %v410_v44  ;;  %5147 = vmatmul.msk.f32.gmra.mxu2 %vm2175_vm1, %v2151_v45  ;;  %v2164_v44 = vld [vmem:[%s5875_s15 + $0x1b8] sm:$0xff] }
  0x6c   : > { %5038 = vmatmul.msk.f32.gmra.mxu1 %vm466_vm0, %v460_v46 }
  0x73   : > { %4989 = vmatmul.msk.f32.gmra.mxu0 %vm466_vm0, %v411_v47  ;;  %5148 = vmatmul.msk.f32.gmra.mxu2 %vm2175_vm1, %v2152_v48  ;;  %v424_v48 = vld [vmem:[%s5869_s11 + $0xc8] sm:$0xff] }
  0x74   : > { %5039 = vmatmul.msk.f32.gmra.mxu1 %vm466_vm0, %v461_v49 }
  0x7b   : > { %4990 = vmatmul.msk.f32.gmra.mxu0 %vm466_vm0, %v412_v50  ;;  %5149 = vmatmul.msk.f32.gmra.mxu2 %vm2175_vm1, %v2153_v51  ;;  %v2165_v50 = vld [vmem:[%s5875_s15 + $0x1c0] sm:$0xff] }
  0x7c   : > { %5040 = vmatmul.msk.f32.gmra.mxu1 %vm466_vm0, %v462_v52 }
  0x83   : > { %4991 = vmatmul.msk.f32.gmra.mxu0 %vm466_vm0, %v413_v53  ;;  %5150 = vmatmul.msk.f32.gmra.mxu2 %vm2175_vm1, %v2154_v54  ;;  %v425_v54 = vld [vmem:[%s5869_s11 + $0xd0] sm:$0xff] }
  0x8b   : > { %4992 = vmatmul.msk.f32.gmra.mxu0 %vm466_vm0, %v414_v55  ;;  %5151 = vmatmul.msk.f32.gmra.mxu2 %vm2175_vm1, %v2155_v56  ;;  %v2166_v56 = vld [vmem:[%s5875_s15 + $0x1c8] sm:$0xff] }
  0x90   : > { %v5988_v57 = vpop.f32.mrf.mxu0 }
  0x91   : > { %7892 = vst [vmem:[#allocation2_spill] sm:$0xff] %v5988_v57  ;;  %v868_v59 = vmul.f32 %v5988_v57, %v5988_v57  ;;  %v5994_v61 = vpop.f32.mrf.mxu1 }
  0x92   : > { %7893 = vst [vmem:[#allocation3_spill] sm:$0xff] %v5994_v61 }
  0x93   : > { %4993 = vmatmul.msk.f32.gmra.mxu0 %vm466_vm0, %v415_v58  ;;  %5041 = vmatmul.msk.f32.vlgmr.msrb.gmra.mxu1 %vm938_vm2, %v868_v59 }
  0x94   : > { %5152 = vmatmul.msk.f32.gmra.mxu2 %vm2175_vm1, %v2156_v60  ;;  %v426_v60 = vld [vmem:[%s5869_s11 + $0xd8] sm:$0xff] }
  0x96   : > { %v5999_v62 = vpop.f32.mrf.mxu2 }
  0x98   : > { %v6001_v63 = vpop.f32.mrf.mxu0 }
  0x99   : > { %7894 = vst [vmem:[#allocation4_spill] sm:$0xff] %v6001_v63  ;;  %v869_v1 = vmul.f32 %v6001_v63, %v6001_v63  ;;  %v6007_v3 = vpop.f32.mrf.mxu1  ;;  %v446_v63 = vld [vmem:[%s5869_s11 + $0x178] sm:$0xff] }
  0x9a   : > { %7895 = vst [vmem:[#allocation5_spill] sm:$0xff] %v6007_v3 }
  0x9b   : > { %4994 = vmatmul.msk.f32.gmra.mxu0 %vm466_vm0, %v416_v0  ;;  %5042 = vmatmul.msk.f32.gmra.mxu1 %vm938_vm2, %v869_v1 }
  0x9c   : > { %5153 = vmatmul.msk.f32.gmra.mxu2 %vm2175_vm1, %v2157_v2  ;;  %v2167_v2 = vld [vmem:[%s5875_s15 + $0x1d0] sm:$0xff] }
  0x9e   : > { %v6012_v4 = vpop.f32.mrf.mxu2 }
  0xa0   : > { %v6014_v5 = vpop.f32.mrf.mxu0 }
  0xa1   : > { %7896 = vst [vmem:[#allocation6_spill] sm:$0xff] %v6014_v5  ;;  %v870_v7 = vmul.f32 %v6014_v5, %v6014_v5  ;;  %v6020_v9 = vpop.f32.mrf.mxu1  ;;  %v445_v5 = vld [vmem:[%s5869_s11 + $0x170] sm:$0xff] }
  0xa2   : > { %7897 = vst [vmem:[#allocation7_spill] sm:$0xff] %v6020_v9 }
  0xa3   : > { %4995 = vmatmul.msk.f32.gmra.mxu0 %vm466_vm0, %v417_v6  ;;  %5043 = vmatmul.msk.f32.gmra.mxu1 %vm938_vm2, %v870_v7 }
  0xa4   : > { %5154 = vmatmul.msk.f32.gmra.mxu2 %vm2175_vm1, %v2158_v8  ;;  %v427_v8 = vld [vmem:[%s5869_s11 + $0xe0] sm:$0xff] }
  0xa6   : > { %v6025_v10 = vpop.f32.mrf.mxu2 }
  0xa8   : > { %v6027_v11 = vpop.f32.mrf.mxu0 }
  0xa9   : > { %7898 = vst [vmem:[#allocation8_spill] sm:$0xff] %v6027_v11  ;;  %v871_v13 = vmul.f32 %v6027_v11, %v6027_v11  ;;  %v6033_v15 = vpop.f32.mrf.mxu1 }
  0xaa   : > { %7899 = vst [vmem:[#allocation9_spill] sm:$0xff] %v6033_v15 }
  0xab   : > { %4996 = vmatmul.msk.f32.gmra.mxu0 %vm466_vm0, %v418_v12  ;;  %5044 = vmatmul.msk.f32.gmra.mxu1 %vm938_vm2, %v871_v13  ;;  %v2168_v13 = vld [vmem:[%s5875_s15 + $0x1d8] sm:$0xff] }
  0xac   : > { %5155 = vmatmul.msk.f32.gmra.mxu2 %vm2175_vm1, %v2159_v14 }
  0xae   : > { %v6038_v16 = vpop.f32.mrf.mxu2 }
  0xb0   : > { %v6040_v17 = vpop.f32.mrf.mxu0 }
  0xb1   : > { %7900 = vst [vmem:[#allocation10_spill] sm:$0xff] %v6040_v17  ;;  %v872_v19 = vmul.f32 %v6040_v17, %v6040_v17  ;;  %v6046_v21 = vpop.f32.mrf.mxu1 }
  0xb2   : > { %7901 = vst [vmem:[#allocation11_spill] sm:$0xff] %v6046_v21 }
  0xb3   : > { %4997 = vmatmul.msk.f32.gmra.mxu0 %vm466_vm0, %v419_v18  ;;  %5045 = vmatmul.msk.f32.gmra.mxu1 %vm938_vm2, %v872_v19 }
  0xb4   : > { %5156 = vmatmul.msk.f32.gmra.mxu2 %vm2175_vm1, %v2160_v20  ;;  %v428_v20 = vld [vmem:[%s5869_s11 + $0xe8] sm:$0xff] }
  0xb6   : > { %v6051_v22 = vpop.f32.mrf.mxu2 }
  0xb8   : > { %v6053_v23 = vpop.f32.mrf.mxu0 }
  0xb9   : > { %7902 = vst [vmem:[#allocation12_spill] sm:$0xff] %v6053_v23  ;;  %v873_v25 = vmul.f32 %v6053_v23, %v6053_v23  ;;  %v6059_v27 = vpop.f32.mrf.mxu1 }
  0xba   : > { %7903 = vst [vmem:[#allocation13_spill] sm:$0xff] %v6059_v27 }
  0xbb   : > { %4998 = vmatmul.msk.f32.gmra.mxu0 %vm466_vm0, %v420_v24  ;;  %5046 = vmatmul.msk.f32.gmra.mxu1 %vm938_vm2, %v873_v25  ;;  %v2169_v25 = vld [vmem:[%s5875_s15 + $0x1e0] sm:$0xff] }
  0xbc   : > { %5157 = vmatmul.msk.f32.gmra.mxu2 %vm2175_vm1, %v2161_v26 }
  0xbe   : > { %v6064_v28 = vpop.f32.mrf.mxu2 }
  0xc0   : > { %v6066_v29 = vpop.f32.mrf.mxu0 }
  0xc1   : > { %7904 = vst [vmem:[#allocation14_spill] sm:$0xff] %v6066_v29  ;;  %v874_v31 = vmul.f32 %v6066_v29, %v6066_v29  ;;  %v6072_v33 = vpop.f32.mrf.mxu1 }
  0xc2   : > { %7905 = vst [vmem:[#allocation15_spill] sm:$0xff] %v6072_v33 }
  0xc3   : > { %4999 = vmatmul.msk.f32.gmra.mxu0 %vm466_vm0, %v421_v30  ;;  %5047 = vmatmul.msk.f32.gmra.mxu1 %vm938_vm2, %v874_v31 }
  0xc4   : > { %5158 = vmatmul.msk.f32.gmra.mxu2 %vm2175_vm1, %v2162_v32  ;;  %v429_v32 = vld [vmem:[%s5869_s11 + $0xf0] sm:$0xff] }
  0xc6   : > { %v6077_v34 = vpop.f32.mrf.mxu2 }
  0xc8   : > { %v6079_v35 = vpop.f32.mrf.mxu0 }
  0xc9   : > { %7906 = vst [vmem:[#allocation16_spill] sm:$0xff] %v6079_v35  ;;  %v875_v37 = vmul.f32 %v6079_v35, %v6079_v35  ;;  %v6085_v39 = vpop.f32.mrf.mxu1 }
  0xca   : > { %7907 = vst [vmem:[#allocation17_spill] sm:$0xff] %v6085_v39 }
  0xcb   : > { %5000 = vmatmul.msk.f32.gmra.mxu0 %vm466_vm0, %v422_v36  ;;  %5048 = vmatmul.msk.f32.gmra.mxu1 %vm938_vm2, %v875_v37  ;;  %v2170_v37 = vld [vmem:[%s5875_s15 + $0x1e8] sm:$0xff] }
  0xcc   : > { %5159 = vmatmul.msk.f32.gmra.mxu2 %vm2175_vm1, %v2163_v38  ;;  %v2108_v38 = vld [vmem:[%s7819_s4] sm:$0xff] }
  0xcd   : > { %5370 = vmatpush.msra.mxu3 %v2108_v38  ;;  %2785 = vmatpush.msrb.mxu2 %v2108_v38 }
  0xce   : > { %v6090_v40 = vpop.f32.mrf.mxu2 }
  0xd0   : > { %v6092_v41 = vpop.f32.mrf.mxu0 }
  0xd1   : > { %7908 = vst [vmem:[#allocation18_spill] sm:$0xff] %v6092_v41  ;;  %v876_v43 = vmul.f32 %v6092_v41, %v6092_v41  ;;  %v6101_v45 = vpop.f32.mrf.mxu1 }
  0xd2   : > { %7909 = vst [vmem:[#allocation19_spill] sm:$0xff] %v6101_v45 }
  0xd3   : > { %5001 = vmatmul.msk.f32.gmra.mxu0 %vm466_vm0, %v423_v42  ;;  %5049 = vmatmul.msk.f32.gmra.mxu1 %vm938_vm2, %v876_v43 }
  0xd4   : > { %5160 = vmatmul.msk.f32.gmra.mxu2 %vm2175_vm1, %v2164_v44 }
  0xd6   : > { %v6103_v46 = vpop.f32.mrf.mxu2 }
  0xd8   : > { %v6105_v47 = vpop.f32.mrf.mxu0 }
  0xd9   : > { %7910 = vst [vmem:[#allocation20_spill] sm:$0xff] %v6105_v47  ;;  %v877_v49 = vmul.f32 %v6105_v47, %v6105_v47  ;;  %v6114_v51 = vpop.f32.mrf.mxu1 }
  0xda   : > { %7911 = vst [vmem:[#allocation21_spill] sm:$0xff] %v6114_v51 }
  0xdb   : > { %5002 = vmatmul.msk.f32.gmra.mxu0 %vm466_vm0, %v424_v48  ;;  %5050 = vmatmul.msk.f32.gmra.mxu1 %vm938_vm2, %v877_v49  ;;  %v430_v48 = vld [vmem:[%s5869_s11 + $0xf8] sm:$0xff] }
  0xdc   : > { %5161 = vmatmul.msk.f32.gmra.mxu2 %vm2175_vm1, %v2165_v50  ;;  %v2171_v50 = vld [vmem:[%s5875_s15 + $0x1f0] sm:$0xff] }
  0xde   : > { %v6116_v52 = vpop.f32.mrf.mxu2 }
  0xe0   : > { %v6118_v53 = vpop.f32.mrf.mxu0 }
  0xe1   : > { %7912 = vst [vmem:[#allocation22_spill] sm:$0xff] %v6118_v53  ;;  %v878_v55 = vmul.f32 %v6118_v53, %v6118_v53  ;;  %v6132_v0 = vpop.f32.mrf.mxu1 }
  0xe2   : > { %7914 = vst [vmem:[#allocation24_spill] sm:$0xff] %v6132_v0 }
  0xe3   : > { %5003 = vmatmul.msk.f32.gmra.mxu0 %vm466_vm0, %v425_v54  ;;  %5051 = vmatmul.msk.f32.gmra.mxu1 %vm938_vm2, %v878_v55 }
  0xe4   : > { %5162 = vmatmul.msk.f32.gmra.mxu2 %vm2175_vm1, %v2166_v56 }
  0xe6   : > { %v6127_v58 = vpop.f32.mrf.mxu2 }
  0xe8   : > { %v6129_v59 = vpop.f32.mrf.mxu0 }
  0xe9   : > { %7913 = vst [vmem:[#allocation23_spill] sm:$0xff] %v6129_v59  ;;  %v879_v1 = vmul.f32 %v6129_v59, %v6129_v59  ;;  %v6148_v14 = vpop.f32.mrf.mxu1 }
  0xea   : > { %7916 = vst [vmem:[#allocation26_spill] sm:$0xff] %v6148_v14 }
  0xeb   : > { %5004 = vmatmul.msk.f32.gmra.mxu0 %vm466_vm0, %v426_v60  ;;  %5052 = vmatmul.msk.f32.gmra.mxu1 %vm938_vm2, %v879_v1  ;;  %v431_v60 = vld [vmem:[%s5869_s11 + $0x100] sm:$0xff] }
  0xec   : > { %5163 = vmatmul.msk.f32.gmra.mxu2 %vm2175_vm1, %v2167_v2  ;;  %v2172_v2 = vld [vmem:[%s5875_s15 + $0x1f8] sm:$0xff] }
  0xee   : > { %v6140_v6 = vpop.f32.mrf.mxu2 }
  0xf0   : > { %v6142_v7 = vpop.f32.mrf.mxu0 }
  0xf1   : > { %7915 = vst [vmem:[#allocation25_spill] sm:$0xff] %v6142_v7  ;;  %v880_v12 = vmul.f32 %v6142_v7, %v6142_v7  ;;  %v6163_v26 = vpop.f32.mrf.mxu1 }
  0xf2   : > { %7918 = vst [vmem:[#allocation28_spill] sm:$0xff] %v6163_v26 }
  0xf3   : > { %5005 = vmatmul.msk.f32.gmra.mxu0 %vm466_vm0, %v427_v8  ;;  %5053 = vmatmul.msk.f32.gmra.mxu1 %vm938_vm2, %v880_v12 }
  0xf4   : > { %5164 = vmatmul.msk.f32.gmra.mxu2 %vm2175_vm1, %v2168_v13 }
  0xf6   : > { %v6153_v18 = vpop.f32.mrf.mxu2 }
  0xf8   : > { %v6155_v19 = vpop.f32.mrf.mxu0 }
  0xf9   : > { %7917 = vst [vmem:[#allocation27_spill] sm:$0xff] %v6155_v19  ;;  %v881_v24 = vmul.f32 %v6155_v19, %v6155_v19  ;;  %v6180_v42 = vpop.f32.mrf.mxu1 }
  0xfa   : > { %7920 = vst [vmem:[#allocation30_spill] sm:$0xff] %v6180_v42 }
  0xfb   : > { %5006 = vmatmul.msk.f32.gmra.mxu0 %vm466_vm0, %v428_v20  ;;  %5054 = vmatmul.msk.f32.gmra.mxu1 %vm938_vm2, %v881_v24  ;;  %v432_v24 = vld [vmem:[%s5869_s11 + $0x108] sm:$0xff] }
  0xfc   : > { %5165 = vmatmul.msk.f32.gmra.mxu2 %vm2175_vm1, %v2169_v25 }
  0xfe   : > { %v6166_v30 = vpop.f32.mrf.mxu2 }
 0x100   : > { %v6168_v31 = vpop.f32.mrf.mxu0 }
 0x101   : > { %7919 = vst [vmem:[#allocation29_spill] sm:$0xff] %v6168_v31  ;;  %v882_v36 = vmul.f32 %v6168_v31, %v6168_v31  ;;  %v434_v31 = vld [vmem:[%s5869_s11 + $0x118] sm:$0xff] }
 0x103   : > { %5007 = vmatmul.msk.f32.gmra.mxu0 %vm466_vm0, %v429_v32  ;;  %5055 = vmatmul.msk.f32.gmra.mxu1 %vm938_vm2, %v882_v36 }
 0x104   : > { %5166 = vmatmul.msk.f32.gmra.mxu2 %vm2175_vm1, %v2170_v37 }
 0x106   : > { %v6182_v43 = vpop.f32.mrf.mxu2 }
 0x108   : > { %v6184_v44 = vpop.f32.mrf.mxu0 }
 0x109   : > { %7921 = vst [vmem:[#allocation31_spill] sm:$0xff] %v6184_v44  ;;  %v883_v49 = vmul.f32 %v6184_v44, %v6184_v44 }
 0x10b   : > { %5008 = vmatmul.msk.f32.gmra.mxu0 %vm466_vm0, %v430_v48  ;;  %5056 = vmatmul.msk.f32.gmra.mxu1 %vm938_vm2, %v883_v49 }
 0x10c   : > { %5167 = vmatmul.msk.f32.gmra.mxu2 %vm2175_vm1, %v2171_v50 }
 0x10e   : > { %v6193_v54 = vpop.f32.mrf.mxu2 }
 0x110   : > { %v6195_v55 = vpop.f32.mrf.mxu0  ;;  %v1148_v56 = vpop.f32.mrf.mxu1 }
 0x111   : > { %7922 = vst [vmem:[#allocation32_spill] sm:$0xff] %v6195_v55  ;;  %v884_v1 = vmul.f32 %v6195_v55, %v6195_v55  ;;  %5381 = vrsqrt.f32 %v1148_v56  ;;  %vm1347_vm3 = vcmp.eq.f32.partialorder %v1148_v56, inf  ;;  %vm1349_vm5 = vcmp.eq.f32.partialorder %v1148_v56, 0.0 }
 0x113   : > { %5009 = vmatmul.msk.f32.gmra.mxu0 %vm466_vm0, %v431_v60  ;;  %5057 = vmatmul.msk.f32.gmra.mxu1 %vm938_vm2, %v884_v1  ;;  %v433_v1 = vld [vmem:[%s5869_s11 + $0x110] sm:$0xff] }
 0x114   : > { %5168 = vmatmul.msk.f32.gmra.mxu2 %vm2175_vm1, %v2172_v2 }
 0x117   : > { %v5382_v8 = vpop.eup %5381  ;;  %v6204_v12 = vpop.f32.mrf.mxu2 }
 0x118   : > { %v6206_v13 = vpop.f32.mrf.mxu0  ;;  %v1151_v20 = vpop.f32.mrf.mxu1  ;;  %v1341_v25 = vmul.f32 %v5382_v8, %v1148_v56 }
 0x119   : > { %7923 = vst [vmem:[#allocation33_spill] sm:$0xff] %v6206_v13  ;;  %v885_v32 = vmul.f32 %v6206_v13, %v6206_v13  ;;  %5383 = vrsqrt.f32 %v1151_v20  ;;  %vm1359_vm6 = vcmp.eq.f32.partialorder %v1151_v20, inf  ;;  %vm1361_vm7 = vcmp.eq.f32.partialorder %v1151_v20, 0.0 }
 0x11a   : > { %v1342_v36 = vmul.f32 %v5382_v8, %v1341_v25 }
 0x11b   : > { %5010 = vmatmul.msk.f32.gmra.mxu0 %vm466_vm0, %v432_v24  ;;  %5058 = vmatmul.msk.f32.gmra.mxu1 %vm938_vm2, %v885_v32  ;;  %v1350_v24 = vand.u32 2147483648, %v1148_v56 }
 0x11c   : > { %v1343_v37 = vmul.f32 0.5, %v1342_v36 }
 0x11e   : > { %v1344_v38 = vsub.f32 1.5, %v1343_v37 }
 0x11f   : > { %v5384_v48 = vpop.eup %5383  ;;  %v6213_v49 = vpop.f32.mrf.mxu2 }
 0x120   : > { %7924 = vst [vmem:[#allocation34_spill] sm:$0xff] %v6213_v49  ;;  %v6215_v50 = vpop.f32.mrf.mxu0  ;;  %v1154_v60 = vpop.f32.mrf.mxu1  ;;  %v1345_v2 = vmul.f32 %v5382_v8, %v1344_v38  ;;  %v1353_v55 = vmul.f32 %v5384_v48, %v1151_v20 }
 0x121   : > { %7925 = vst [vmem:[#allocation35_spill] sm:$0xff] %v6215_v50  ;;  %v886_v13 = vmul.f32 %v6215_v50, %v6215_v50  ;;  %5385 = vrsqrt.f32 %v1154_v60  ;;  %vm1371_vm8 = vcmp.eq.f32.partialorder %v1154_v60, inf  ;;  %vm1373_vm9 = vcmp.eq.f32.partialorder %v1154_v60, 0.0 }
 0x122   : > { %v1346_v25 = vmul.f32 %v1345_v2, %v1148_v56  ;;  %v1354_v44 = vmul.f32 %v5384_v48, %v1353_v55 }
 0x123   : > { %5011 = vmatmul.msk.f32.gmra.mxu0 %vm466_vm0, %v433_v1  ;;  %5059 = vmatmul.msk.f32.gmra.mxu1 %vm938_vm2, %v886_v13 }
 0x124   : > { %v1348_v32 = vsel %vm1347_vm3, %v1148_v56, %v1346_v25  ;;  %v1355_v36 = vmul.f32 0.5, %v1354_v44  ;;  %v1362_v56 = vand.u32 2147483648, %v1151_v20 }
 0x125   : > { %v1351_v37 = vsel %vm1349_vm5, %v1350_v24, %v1348_v32 }
 0x126   : > { %5169 = vmatmul.msk.f32.vlgmr.msrb.gmra.mxu2 %vm2577_vm4, %v1351_v37  ;;  %v1356_v8 = vsub.f32 1.5, %v1355_v36 }
 0x127   : > { %v5386_v38 = vpop.eup %5385  ;;  %v6223_v50 = vpop.f32.mrf.mxu2 }
 0x128   : > { %7926 = vst [vmem:[#allocation36_spill] sm:$0xff] %v6223_v50  ;;  %v6225_v2 = vpop.f32.mrf.mxu0  ;;  %v1157_v55 = vpop.f32.mrf.mxu1  ;;  %v1357_v1 = vmul.f32 %v5384_v48, %v1356_v8  ;;  %v1365_v19 = vmul.f32 %v5386_v38, %v1154_v60 }
 0x129   : > { %7927 = vst [vmem:[#allocation37_spill] sm:$0xff] %v6225_v2  ;;  %v887_v13 = vmul.f32 %v6225_v2, %v6225_v2  ;;  %5387 = vrsqrt.f32 %v1157_v55  ;;  %vm1383_vm10 = vcmp.eq.f32.partialorder %v1157_v55, inf  ;;  %vm1385_vm11 = vcmp.eq.f32.partialorder %v1157_v55, 0.0 }
 0x12a   : > { %v1358_v25 = vmul.f32 %v1357_v1, %v1151_v20  ;;  %v1366_v44 = vmul.f32 %v5386_v38, %v1365_v19  ;;  %v435_v19 = vld [vmem:[%s5869_s11 + $0x120] sm:$0xff] }
 0x12b   : > { %5012 = vmatmul.msk.f32.gmra.mxu0 %vm466_vm0, %v434_v31  ;;  %5060 = vmatmul.msk.f32.gmra.mxu1 %vm938_vm2, %v887_v13 }
 0x12c   : > { %v1360_v24 = vsel %vm1359_vm6, %v1151_v20, %v1358_v25  ;;  %v1367_v32 = vmul.f32 0.5, %v1366_v44  ;;  %v1374_v44 = vand.u32 2147483648, %v1154_v60 }
 0x12d   : > { %v1363_v36 = vsel %vm1361_vm7, %v1362_v56, %v1360_v24 }
 0x12e   : > { %5170 = vmatmul.msk.f32.gmra.mxu2 %vm2577_vm4, %v1363_v36  ;;  %v1368_v48 = vsub.f32 1.5, %v1367_v32 }
 0x12f   : > { %v5388_v37 = vpop.eup %5387  ;;  %v6233_v8 = vpop.f32.mrf.mxu2 }
 0x130   : > { %7928 = vst [vmem:[#allocation38_spill] sm:$0xff] %v6233_v8  ;;  %v6235_v2 = vpop.f32.mrf.mxu0  ;;  %v1160_v1 = vpop.f32.mrf.mxu1  ;;  %v1369_v7 = vmul.f32 %v5386_v38, %v1368_v48  ;;  %v1377_v31 = vmul.f32 %v5388_v37, %v1157_v55  ;;  %v2122_v8 = vld [vmem:[%s5875_s15 + $0x68] sm:$0xff] }
 0x131   : > { %7929 = vst [vmem:[#allocation39_spill] sm:$0xff] %v6235_v2  ;;  %v888_v13 = vmul.f32 %v6235_v2, %v6235_v2  ;;  %5389 = vrsqrt.f32 %v1160_v1  ;;  %vm1395_vm12 = vcmp.eq.f32.partialorder %v1160_v1, inf  ;;  %vm1397_vm13 = vcmp.eq.f32.partialorder %v1160_v1, 0.0 }
 0x132   : > { %v1370_v25 = vmul.f32 %v1369_v7, %v1154_v60  ;;  %v1378_v20 = vmul.f32 %v5388_v37, %v1377_v31  ;;  %v436_v31 = vld [vmem:[%s5869_s11 + $0x128] sm:$0xff] }
 0x133   : > { %5013 = vmatmul.msk.f32.gmra.mxu0 %vm466_vm0, %v435_v19  ;;  %5061 = vmatmul.msk.f32.gmra.mxu1 %vm938_vm2, %v888_v13 }
 0x134   : > { %v1372_v56 = vsel %vm1371_vm8, %v1154_v60, %v1370_v25  ;;  %v1379_v24 = vmul.f32 0.5, %v1378_v20  ;;  %v1386_v20 = vand.u32 2147483648, %v1157_v55 }
 0x135   : > { %v1375_v32 = vsel %vm1373_vm9, %v1374_v44, %v1372_v56 }
 0x136   : > { %5171 = vmatmul.msk.f32.gmra.mxu2 %vm2577_vm4, %v1375_v32  ;;  %v1380_v38 = vsub.f32 1.5, %v1379_v24 }
 0x137   : > { %v5390_v36 = vpop.eup %5389  ;;  %v6243_v48 = vpop.f32.mrf.mxu2 }
 0x138   : > { %7930 = vst [vmem:[#allocation40_spill] sm:$0xff] %v6243_v48  ;;  %v6245_v2 = vpop.f32.mrf.mxu0  ;;  %v1163_v7 = vpop.f32.mrf.mxu1  ;;  %v1381_v59 = vmul.f32 %v5388_v37, %v1380_v38  ;;  %v1389_v19 = vmul.f32 %v5390_v36, %v1160_v1  ;;  %v2121_v48 = vld [vmem:[%s5875_s15 + $0x60] sm:$0xff] }
 0x139   : > { %7931 = vst [vmem:[#allocation41_spill] sm:$0xff] %v6245_v2  ;;  %v889_v13 = vmul.f32 %v6245_v2, %v6245_v2  ;;  %5391 = vrsqrt.f32 %v1163_v7  ;;  %vm1407_vm14 = vcmp.eq.f32.partialorder %v1163_v7, inf  ;;  %vm1409_vm15 = vcmp.eq.f32.partialorder %v1163_v7, 0.0 }
 0x13a   : > { %v1382_v25 = vmul.f32 %v1381_v59, %v1157_v55  ;;  %v1390_v60 = vmul.f32 %v5390_v36, %v1389_v19  ;;  %v437_v19 = vld [vmem:[%s5869_s11 + $0x130] sm:$0xff] }
 0x13b   : > { %5014 = vmatmul.msk.f32.gmra.mxu0 %vm466_vm0, %v436_v31  ;;  %5062 = vmatmul.msk.f32.gmra.mxu1 %vm938_vm2, %v889_v13 }
 0x13c   : > { %v1384_v44 = vsel %vm1383_vm10, %v1157_v55, %v1382_v25  ;;  %v1391_v56 = vmul.f32 0.5, %v1390_v60  ;;  %v1398_v60 = vand.u32 2147483648, %v1160_v1 }
 0x13d   : > { %v1387_v24 = vsel %vm1385_vm11, %v1386_v20, %v1384_v44 }
 0x13e   : > { %5172 = vmatmul.msk.f32.gmra.mxu2 %vm2577_vm4, %v1387_v24  ;;  %v1392_v37 = vsub.f32 1.5, %v1391_v56 }
 0x13f   : > { %v5392_v32 = vpop.eup %5391  ;;  %v6253_v38 = vpop.f32.mrf.mxu2 }
 0x140   : > { %7932 = vst [vmem:[#allocation42_spill] sm:$0xff] %v6253_v38  ;;  %v6255_v2 = vpop.f32.mrf.mxu0  ;;  %v1166_v59 = vpop.f32.mrf.mxu1  ;;  %v1393_v53 = vmul.f32 %v5390_v36, %v1392_v37  ;;  %v1401_v31 = vmul.f32 %v5392_v32, %v1163_v7  ;;  %v2120_v38 = vld [vmem:[%s5875_s15 + $0x58] sm:$0xff] }
 0x141   : > { %7933 = vst [vmem:[#allocation43_spill] sm:$0xff] %v6255_v2  ;;  %v890_v13 = vmul.f32 %v6255_v2, %v6255_v2  ;;  %5393 = vrsqrt.f32 %v1166_v59  ;;  %vm1419_vm3 = vcmp.eq.f32.partialorder %v1166_v59, inf  ;;  %vm1421_vm5 = vcmp.eq.f32.partialorder %v1166_v59, 0.0 }
 0x142   : > { %v1394_v25 = vmul.f32 %v1393_v53, %v1160_v1  ;;  %v1402_v55 = vmul.f32 %v5392_v32, %v1401_v31  ;;  %v438_v31 = vld [vmem:[%s5869_s11 + $0x138] sm:$0xff] }
 0x143   : > { %5015 = vmatmul.msk.f32.gmra.mxu0 %vm466_vm0, %v437_v19  ;;  %5063 = vmatmul.msk.f32.gmra.mxu1 %vm938_vm2, %v890_v13 }
 0x144   : > { %v1396_v20 = vsel %vm1395_vm12, %v1160_v1, %v1394_v25  ;;  %v1403_v44 = vmul.f32 0.5, %v1402_v55  ;;  %v1410_v55 = vand.u32 2147483648, %v1163_v7 }
 0x145   : > { %v1399_v56 = vsel %vm1397_vm13, %v1398_v60, %v1396_v20 }
 0x146   : > { %5173 = vmatmul.msk.f32.gmra.mxu2 %vm2577_vm4, %v1399_v56  ;;  %v1404_v36 = vsub.f32 1.5, %v1403_v44 }
 0x147   : > { %v5394_v24 = vpop.eup %5393  ;;  %v6263_v37 = vpop.f32.mrf.mxu2 }
 0x148   : > { %7934 = vst [vmem:[#allocation44_spill] sm:$0xff] %v6263_v37  ;;  %v6265_v2 = vpop.f32.mrf.mxu0  ;;  %v1169_v53 = vpop.f32.mrf.mxu1  ;;  %v1405_v47 = vmul.f32 %v5392_v32, %v1404_v36  ;;  %v1413_v19 = vmul.f32 %v5394_v24, %v1166_v59  ;;  %v2119_v37 = vld [vmem:[%s5875_s15 + $0x50] sm:$0xff] }
 0x149   : > { %7935 = vst [vmem:[#allocation45_spill] sm:$0xff] %v6265_v2  ;;  %v891_v13 = vmul.f32 %v6265_v2, %v6265_v2  ;;  %5395 = vrsqrt.f32 %v1169_v53  ;;  %vm1431_vm6 = vcmp.eq.f32.partialorder %v1169_v53, inf  ;;  %vm1433_vm7 = vcmp.eq.f32.partialorder %v1169_v53, 0.0 }
 0x14a   : > { %v1406_v25 = vmul.f32 %v1405_v47, %v1163_v7  ;;  %v1414_v1 = vmul.f32 %v5394_v24, %v1413_v19  ;;  %v439_v19 = vld [vmem:[%s5869_s11 + $0x140] sm:$0xff] }
 0x14b   : > { %5016 = vmatmul.msk.f32.gmra.mxu0 %vm466_vm0, %v438_v31  ;;  %5064 = vmatmul.msk.f32.gmra.mxu1 %vm938_vm2, %v891_v13 }
 0x14c   : > { %v1408_v60 = vsel %vm1407_vm14, %v1163_v7, %v1406_v25  ;;  %v1415_v20 = vmul.f32 0.5, %v1414_v1  ;;  %v1422_v1 = vand.u32 2147483648, %v1166_v59 }
 0x14d   : > { %v1411_v44 = vsel %vm1409_vm15, %v1410_v55, %v1408_v60 }
 0x14e   : > { %5174 = vmatmul.msk.f32.gmra.mxu2 %vm2577_vm4, %v1411_v44  ;;  %v1416_v32 = vsub.f32 1.5, %v1415_v20 }
 0x14f   : > { %v5396_v56 = vpop.eup %5395  ;;  %v6273_v36 = vpop.f32.mrf.mxu2 }
 0x150   : > { %7936 = vst [vmem:[#allocation46_spill] sm:$0xff] %v6273_v36  ;;  %v6275_v2 = vpop.f32.mrf.mxu0  ;;  %v1172_v47 = vpop.f32.mrf.mxu1  ;;  %v1417_v41 = vmul.f32 %v5394_v24, %v1416_v32  ;;  %v1425_v31 = vmul.f32 %v5396_v56, %v1169_v53  ;;  %v2118_v36 = vld [vmem:[%s5875_s15 + $0x48] sm:$0xff] }
 0x151   : > { %7937 = vst [vmem:[#allocation47_spill] sm:$0xff] %v6275_v2  ;;  %v892_v13 = vmul.f32 %v6275_v2, %v6275_v2  ;;  %5397 = vrsqrt.f32 %v1172_v47  ;;  %vm1443_vm8 = vcmp.eq.f32.partialorder %v1172_v47, inf  ;;  %vm1445_vm9 = vcmp.eq.f32.partialorder %v1172_v47, 0.0 }
 0x152   : > { %v1418_v25 = vmul.f32 %v1417_v41, %v1166_v59  ;;  %v1426_v7 = vmul.f32 %v5396_v56, %v1425_v31  ;;  %v440_v31 = vld [vmem:[%s5869_s11 + $0x148] sm:$0xff] }
 0x153   : > { %5017 = vmatmul.msk.f32.gmra.mxu0 %vm466_vm0, %v439_v19  ;;  %5065 = vmatmul.msk.f32.gmra.mxu1 %vm938_vm2, %v892_v13 }
 0x154   : > { %v1420_v55 = vsel %vm1419_vm3, %v1166_v59, %v1418_v25  ;;  %v1427_v60 = vmul.f32 0.5, %v1426_v7  ;;  %v1434_v7 = vand.u32 2147483648, %v1169_v53 }
 0x155   : > { %v1423_v20 = vsel %vm1421_vm5, %v1422_v1, %v1420_v55 }
 0x156   : > { %5175 = vmatmul.msk.f32.gmra.mxu2 %vm2577_vm4, %v1423_v20  ;;  %v1428_v24 = vsub.f32 1.5, %v1427_v60 }
 0x157   : > { %v5398_v44 = vpop.eup %5397  ;;  %v6283_v32 = vpop.f32.mrf.mxu2 }
 0x158   : > { %7938 = vst [vmem:[#allocation48_spill] sm:$0xff] %v6283_v32  ;;  %v6285_v2 = vpop.f32.mrf.mxu0  ;;  %v1175_v41 = vpop.f32.mrf.mxu1  ;;  %v1429_v35 = vmul.f32 %v5396_v56, %v1428_v24  ;;  %v1437_v19 = vmul.f32 %v5398_v44, %v1172_v47  ;;  %v2117_v32 = vld [vmem:[%s5875_s15 + $0x40] sm:$0xff] }
 0x159   : > { %7939 = vst [vmem:[#allocation49_spill] sm:$0xff] %v6285_v2  ;;  %v893_v13 = vmul.f32 %v6285_v2, %v6285_v2  ;;  %5399 = vrsqrt.f32 %v1175_v41  ;;  %vm1455_vm10 = vcmp.eq.f32.partialorder %v1175_v41, inf  ;;  %vm1457_vm11 = vcmp.eq.f32.partialorder %v1175_v41, 0.0 }
 0x15a   : > { %v1430_v25 = vmul.f32 %v1429_v35, %v1169_v53  ;;  %v1438_v59 = vmul.f32 %v5398_v44, %v1437_v19  ;;  %v441_v19 = vld [vmem:[%s5869_s11 + $0x150] sm:$0xff] }
 0x15b   : > { %5018 = vmatmul.msk.f32.gmra.mxu0 %vm466_vm0, %v440_v31  ;;  %5066 = vmatmul.msk.f32.gmra.mxu1 %vm938_vm2, %v893_v13 }
 0x15c   : > { %v1432_v1 = vsel %vm1431_vm6, %v1169_v53, %v1430_v25  ;;  %v1439_v55 = vmul.f32 0.5, %v1438_v59  ;;  %v1446_v59 = vand.u32 2147483648, %v1172_v47 }
 0x15d   : > { %v1435_v60 = vsel %vm1433_vm7, %v1434_v7, %v1432_v1 }
 0x15e   : > { %5176 = vmatmul.msk.f32.gmra.mxu2 %vm2577_vm4, %v1435_v60  ;;  %v1440_v56 = vsub.f32 1.5, %v1439_v55 }
 0x15f   : > { %v5400_v20 = vpop.eup %5399  ;;  %v6293_v24 = vpop.f32.mrf.mxu2 }
 0x160   : > { %7940 = vst [vmem:[#allocation50_spill] sm:$0xff] %v6293_v24  ;;  %v6295_v2 = vpop.f32.mrf.mxu0  ;;  %v1178_v35 = vpop.f32.mrf.mxu1  ;;  %v1441_v29 = vmul.f32 %v5398_v44, %v1440_v56  ;;  %v1449_v31 = vmul.f32 %v5400_v20, %v1175_v41  ;;  %v2116_v24 = vld [vmem:[%s5875_s15 + $0x38] sm:$0xff] }
 0x161   : > { %7941 = vst [vmem:[#allocation51_spill] sm:$0xff] %v6295_v2  ;;  %v894_v13 = vmul.f32 %v6295_v2, %v6295_v2  ;;  %5401 = vrsqrt.f32 %v1178_v35  ;;  %vm1467_vm12 = vcmp.eq.f32.partialorder %v1178_v35, inf  ;;  %vm1469_vm13 = vcmp.eq.f32.partialorder %v1178_v35, 0.0 }
 0x162   : > { %v1442_v25 = vmul.f32 %v1441_v29, %v1172_v47  ;;  %v1450_v53 = vmul.f32 %v5400_v20, %v1449_v31  ;;  %v442_v31 = vld [vmem:[%s5869_s11 + $0x158] sm:$0xff] }
 0x163   : > { %5019 = vmatmul.msk.f32.gmra.mxu0 %vm466_vm0, %v441_v19  ;;  %5067 = vmatmul.msk.f32.gmra.mxu1 %vm938_vm2, %v894_v13 }
 0x164   : > { %v1444_v7 = vsel %vm1443_vm8, %v1172_v47, %v1442_v25  ;;  %v1451_v1 = vmul.f32 0.5, %v1450_v53  ;;  %v1458_v53 = vand.u32 2147483648, %v1175_v41 }
 0x165   : > { %v1447_v55 = vsel %vm1445_vm9, %v1446_v59, %v1444_v7 }
 0x166   : > { %5177 = vmatmul.msk.f32.gmra.mxu2 %vm2577_vm4, %v1447_v55  ;;  %v1452_v44 = vsub.f32 1.5, %v1451_v1 }
 0x167   : > { %v5402_v60 = vpop.eup %5401  ;;  %v6303_v56 = vpop.f32.mrf.mxu2 }
 0x168   : > { %7942 = vst [vmem:[#allocation52_spill] sm:$0xff] %v6303_v56  ;;  %v6305_v2 = vpop.f32.mrf.mxu0  ;;  %v1181_v29 = vpop.f32.mrf.mxu1  ;;  %v1453_v23 = vmul.f32 %v5400_v20, %v1452_v44  ;;  %v1461_v19 = vmul.f32 %v5402_v60, %v1178_v35  ;;  %v2115_v56 = vld [vmem:[%s5875_s15 + $0x30] sm:$0xff] }
 0x169   : > { %7943 = vst [vmem:[#allocation53_spill] sm:$0xff] %v6305_v2  ;;  %v895_v13 = vmul.f32 %v6305_v2, %v6305_v2  ;;  %5403 = vrsqrt.f32 %v1181_v29  ;;  %vm1479_vm14 = vcmp.eq.f32.partialorder %v1181_v29, inf  ;;  %vm1481_vm15 = vcmp.eq.f32.partialorder %v1181_v29, 0.0 }
 0x16a   : > { %v1454_v25 = vmul.f32 %v1453_v23, %v1175_v41  ;;  %v1462_v47 = vmul.f32 %v5402_v60, %v1461_v19  ;;  %v443_v19 = vld [vmem:[%s5869_s11 + $0x160] sm:$0xff] }
 0x16b   : > { %5020 = vmatmul.msk.f32.gmra.mxu0 %vm466_vm0, %v442_v31  ;;  %5068 = vmatmul.msk.f32.gmra.mxu1 %vm938_vm2, %v895_v13 }
 0x16c   : > { %v1456_v59 = vsel %vm1455_vm10, %v1175_v41, %v1454_v25  ;;  %v1463_v7 = vmul.f32 0.5, %v1462_v47  ;;  %v1470_v47 = vand.u32 2147483648, %v1178_v35 }
 0x16d   : > { %v1459_v1 = vsel %vm1457_vm11, %v1458_v53, %v1456_v59 }
 0x16e   : > { %5178 = vmatmul.msk.f32.gmra.mxu2 %vm2577_vm4, %v1459_v1  ;;  %v1464_v20 = vsub.f32 1.5, %v1463_v7 }
 0x16f   : > { %v5404_v55 = vpop.eup %5403  ;;  %v6313_v44 = vpop.f32.mrf.mxu2 }
 0x170   : > { %7944 = vst [vmem:[#allocation54_spill] sm:$0xff] %v6313_v44  ;;  %v6315_v2 = vpop.f32.mrf.mxu0  ;;  %v1184_v23 = vpop.f32.mrf.mxu1  ;;  %v1465_v17 = vmul.f32 %v5402_v60, %v1464_v20  ;;  %v1473_v31 = vmul.f32 %v5404_v55, %v1181_v29  ;;  %v2114_v44 = vld [vmem:[%s5875_s15 + $0x28] sm:$0xff] }
 0x171   : > { %7945 = vst [vmem:[#allocation55_spill] sm:$0xff] %v6315_v2  ;;  %v896_v13 = vmul.f32 %v6315_v2, %v6315_v2  ;;  %5405 = vrsqrt.f32 %v1184_v23  ;;  %vm1491_vm3 = vcmp.eq.f32.partialorder %v1184_v23, inf  ;;  %vm1493_vm5 = vcmp.eq.f32.partialorder %v1184_v23, 0.0 }
 0x172   : > { %v1466_v25 = vmul.f32 %v1465_v17, %v1178_v35  ;;  %v1474_v41 = vmul.f32 %v5404_v55, %v1473_v31  ;;  %v444_v31 = vld [vmem:[%s5869_s11 + $0x168] sm:$0xff] }
 0x173   : > { %5021 = vmatmul.msk.f32.gmra.mxu0 %vm466_vm0, %v443_v19  ;;  %5069 = vmatmul.msk.f32.gmra.mxu1 %vm938_vm2, %v896_v13 }
 0x174   : > { %v1468_v53 = vsel %vm1467_vm12, %v1178_v35, %v1466_v25  ;;  %v1475_v59 = vmul.f32 0.5, %v1474_v41  ;;  %v1482_v41 = vand.u32 2147483648, %v1181_v29 }
 0x175   : > { %v1471_v7 = vsel %vm1469_vm13, %v1470_v47, %v1468_v53 }
 0x176   : > { %5179 = vmatmul.msk.f32.gmra.mxu2 %vm2577_vm4, %v1471_v7  ;;  %v1476_v60 = vsub.f32 1.5, %v1475_v59 }
 0x177   : > { %v5406_v1 = vpop.eup %5405  ;;  %v6323_v20 = vpop.f32.mrf.mxu2 }
 0x178   : > { %7946 = vst [vmem:[#allocation56_spill] sm:$0xff] %v6323_v20  ;;  %v6325_v2 = vpop.f32.mrf.mxu0  ;;  %v1187_v17 = vpop.f32.mrf.mxu1  ;;  %v1477_v11 = vmul.f32 %v5404_v55, %v1476_v60  ;;  %v1485_v19 = vmul.f32 %v5406_v1, %v1184_v23  ;;  %v2113_v20 = vld [vmem:[%s5875_s15 + $0x20] sm:$0xff] }
 0x179   : > { %7947 = vst [vmem:[#allocation57_spill] sm:$0xff] %v6325_v2  ;;  %v897_v13 = vmul.f32 %v6325_v2, %v6325_v2  ;;  %5407 = vrsqrt.f32 %v1187_v17  ;;  %vm1503_vm6 = vcmp.eq.f32.partialorder %v1187_v17, inf  ;;  %vm1505_vm7 = vcmp.eq.f32.partialorder %v1187_v17, 0.0 }
 0x17a   : > { %v1478_v35 = vmul.f32 %v1477_v11, %v1181_v29  ;;  %v1486_v25 = vmul.f32 %v5406_v1, %v1485_v19 }
 0x17b   : > { %5022 = vmatmul.msk.f32.gmra.mxu0 %vm466_vm0, %v444_v31  ;;  %5070 = vmatmul.msk.f32.gmra.mxu1 %vm938_vm2, %v897_v13 }
 0x17c   : > { %v1480_v47 = vsel %vm1479_vm14, %v1181_v29, %v1478_v35  ;;  %v1487_v53 = vmul.f32 0.5, %v1486_v25  ;;  %v1494_v25 = vand.u32 2147483648, %v1184_v23 }
 0x17d   : > { %v1483_v59 = vsel %vm1481_vm15, %v1482_v41, %v1480_v47 }
 0x17e   : > { %5180 = vmatmul.msk.f32.gmra.mxu2 %vm2577_vm4, %v1483_v59  ;;  %v1488_v55 = vsub.f32 1.5, %v1487_v53 }
 0x17f   : > { %v5408_v7 = vpop.eup %5407  ;;  %v6338_v13 = vpop.f32.mrf.mxu2 }
 0x180   : > { %v6333_v60 = vpop.f32.mrf.mxu0  ;;  %v1190_v2 = vpop.f32.mrf.mxu1  ;;  %v1489_v11 = vmul.f32 %v5406_v1, %v1488_v55  ;;  %v1497_v19 = vmul.f32 %v5408_v7, %v1187_v17  ;;  %7949 = vst [vmem:[#allocation59_spill] sm:$0xff] %v6338_v13  ;;  %v2112_v13 = vld [vmem:[%s5875_s15 + $0x18] sm:$0xff] }
 0x181   : > { %7948 = vst [vmem:[#allocation58_spill] sm:$0xff] %v6333_v60  ;;  %v898_v31 = vmul.f32 %v6333_v60, %v6333_v60  ;;  %5409 = vrsqrt.f32 %v1190_v2  ;;  %vm1515_vm8 = vcmp.eq.f32.partialorder %v1190_v2, inf  ;;  %vm1517_vm9 = vcmp.eq.f32.partialorder %v1190_v2, 0.0 }
 0x182   : > { %v1490_v29 = vmul.f32 %v1489_v11, %v1184_v23  ;;  %v1498_v35 = vmul.f32 %v5408_v7, %v1497_v19 }
 0x183   : > { %5023 = vmatmul.msk.f32.gmra.mxu0 %vm466_vm0, %v445_v5  ;;  %5071 = vmatmul.msk.f32.gmra.mxu1 %vm938_vm2, %v898_v31 }
 0x184   : > { %v1492_v41 = vsel %vm1491_vm3, %v1184_v23, %v1490_v29  ;;  %v1499_v47 = vmul.f32 0.5, %v1498_v35  ;;  %v1506_v23 = vand.u32 2147483648, %v1187_v17 }
 0x185   : > { %v1495_v1 = vsel %vm1493_vm5, %v1494_v25, %v1492_v41 }
 0x186   : > { %5181 = vmatmul.msk.f32.gmra.mxu2 %vm2577_vm4, %v1495_v1  ;;  %v1500_v53 = vsub.f32 1.5, %v1499_v47 }
 0x187   : > { %v5410_v59 = vpop.eup %5409  ;;  %v6350_v35 = vpop.f32.mrf.mxu2 }
 0x188   : > { %v6343_v55 = vpop.f32.mrf.mxu0  ;;  %v1193_v60 = vpop.f32.mrf.mxu1  ;;  %v1501_v11 = vmul.f32 %v5408_v7, %v1500_v53  ;;  %v1509_v19 = vmul.f32 %v5410_v59, %v1190_v2  ;;  %7951 = vst [vmem:[#allocation61_spill] sm:$0xff] %v6350_v35  ;;  %v2111_v35 = vld [vmem:[%s5875_s15 + $0x10] sm:$0xff] }
 0x189   : > { %7950 = vst [vmem:[#allocation60_spill] sm:$0xff] %v6343_v55  ;;  %v899_v5 = vmul.f32 %v6343_v55, %v6343_v55  ;;  %5411 = vrsqrt.f32 %v1193_v60  ;;  %vm1527_vm10 = vcmp.eq.f32.partialorder %v1193_v60, inf  ;;  %vm1529_vm11 = vcmp.eq.f32.partialorder %v1193_v60, 0.0 }
 0x18a   : > { %v1502_v31 = vmul.f32 %v1501_v11, %v1187_v17  ;;  %v1510_v29 = vmul.f32 %v5410_v59, %v1509_v19  ;;  %v447_v19 = vld [vmem:[%s5869_s11 + $0x180] sm:$0xff] }
 0x18b   : > { %5024 = vmatmul.msk.f32.gmra.mxu0 %vm466_vm0, %v446_v63  ;;  %5072 = vmatmul.msk.f32.gmra.mxu1 %vm938_vm2, %v899_v5 }
 0x18c   : > { %v1504_v25 = vsel %vm1503_vm6, %v1187_v17, %v1502_v31  ;;  %v1511_v41 = vmul.f32 0.5, %v1510_v29  ;;  %v1518_v17 = vand.u32 2147483648, %v1190_v2 }
 0x18d   : > { %v1507_v7 = vsel %vm1505_vm7, %v1506_v23, %v1504_v25 }
 0x18e   : > { %5182 = vmatmul.msk.f32.gmra.mxu2 %vm2577_vm4, %v1507_v7  ;;  %v1512_v47 = vsub.f32 1.5, %v1511_v41 }
 0x18f   : > { %v5412_v1 = vpop.eup %5411  ;;  %v6360_v41 = vpop.f32.mrf.mxu2 }
 0x190   : > { %v6353_v53 = vpop.f32.mrf.mxu0  ;;  %v1196_v11 = vpop.f32.mrf.mxu1  ;;  %v1513_v55 = vmul.f32 %v5410_v59, %v1512_v47  ;;  %v1521_v63 = vmul.f32 %v5412_v1, %v1193_v60  ;;  %7953 = vst [vmem:[#allocation63_spill] sm:$0xff] %v6360_v41 }
 0x191   : > { %7952 = vst [vmem:[#allocation62_spill] sm:$0xff] %v6353_v53  ;;  %v900_v5 = vmul.f32 %v6353_v53, %v6353_v53  ;;  %5413 = vrsqrt.f32 %v1196_v11  ;;  %vm1539_vm12 = vcmp.eq.f32.partialorder %v1196_v11, inf  ;;  %vm1541_vm13 = vcmp.eq.f32.partialorder %v1196_v11, 0.0 }
 0x192   : > { %v1514_v57 = vmul.f32 %v1513_v55, %v1190_v2  ;;  %v1522_v31 = vmul.f32 %v5412_v1, %v1521_v63  ;;  %v448_v63 = vld [vmem:[%s5869_s11 + $0x188] sm:$0xff] }
 0x193   : > { %5025 = vmatmul.msk.f32.gmra.mxu0 %vm466_vm0, %v447_v19  ;;  %5073 = vmatmul.msk.f32.gmra.mxu1 %vm938_vm2, %v900_v5 }
 0x194   : > { %v1516_v29 = vsel %vm1515_vm8, %v1190_v2, %v1514_v57  ;;  %v1523_v23 = vmul.f32 0.5, %v1522_v31  ;;  %v1530_v31 = vand.u32 2147483648, %v1193_v60 }
 0x195   : > { %v1519_v25 = vsel %vm1517_vm9, %v1518_v17, %v1516_v29 }
 0x196   : > { %5183 = vmatmul.msk.f32.gmra.mxu2 %vm2577_vm4, %v1519_v25  ;;  %v1524_v59 = vsub.f32 1.5, %v1523_v23 }
 0x197   : > { %v5414_v7 = vpop.eup %5413 }
 0x198   : > { %v6363_v47 = vpop.f32.mrf.mxu0  ;;  %v1199_v55 = vpop.f32.mrf.mxu1  ;;  %v1525_v53 = vmul.f32 %v5412_v1, %v1524_v59  ;;  %v1533_v19 = vmul.f32 %v5414_v7, %v1196_v11 }
 0x199   : > { %7954 = vst [vmem:[#allocation64_spill] sm:$0xff] %v6363_v47  ;;  %v901_v5 = vmul.f32 %v6363_v47, %v6363_v47  ;;  %5415 = vrsqrt.f32 %v1199_v55  ;;  %v6371_v59 = vpop.f32.mrf.mxu2  ;;  %vm1551_vm14 = vcmp.eq.f32.partialorder %v1199_v55, inf  ;;  %vm1553_vm15 = vcmp.eq.f32.partialorder %v1199_v55, 0.0 }
 0x19a   : > { %v1526_v57 = vmul.f32 %v1525_v53, %v1193_v60  ;;  %v1534_v2 = vmul.f32 %v5414_v7, %v1533_v19  ;;  %7955 = vst [vmem:[#allocation65_spill] sm:$0xff] %v6371_v59  ;;  %v2109_v19 = vld [vmem:[%s5875_s15] sm:$0xff]  ;;  %v2110_v59 = vld [vmem:[%s5875_s15 + $0x8] sm:$0xff] }
 0x19b   : > { %5026 = vmatmul.msk.f32.gmra.mxu0 %vm466_vm0, %v448_v63  ;;  %5074 = vmatmul.msk.f32.gmra.mxu1 %vm938_vm2, %v901_v5 }
 0x19c   : > { %v1528_v17 = vsel %vm1527_vm10, %v1193_v60, %v1526_v57  ;;  %v1535_v29 = vmul.f32 0.5, %v1534_v2  ;;  %v1542_v2 = vand.u32 2147483648, %v1196_v11 }
 0x19d   : > { %v1531_v23 = vsel %vm1529_vm11, %v1530_v31, %v1528_v17 }
 0x19e   : > { %5184 = vmatmul.msk.f32.gmra.mxu2 %vm2577_vm4, %v1531_v23  ;;  %v1536_v1 = vsub.f32 1.5, %v1535_v29 }
 0x19f   : > { %v5416_v25 = vpop.eup %5415 }
 0x1a0   : > { %v6373_v47 = vpop.f32.mrf.mxu0  ;;  %v1202_v53 = vpop.f32.mrf.mxu1  ;;  %v1537_v41 = vmul.f32 %v5414_v7, %v1536_v1  ;;  %v1545_v63 = vmul.f32 %v5416_v25, %v1199_v55 }
 0x1a1   : > { %7956 = vst [vmem:[#allocation66_spill] sm:$0xff] %v6373_v47  ;;  %v902_v5 = vmul.f32 %v6373_v47, %v6373_v47  ;;  %5417 = vrsqrt.f32 %v1202_v53  ;;  %vm1563_vm3 = vcmp.eq.f32.partialorder %v1202_v53, inf  ;;  %vm1565_vm5 = vcmp.eq.f32.partialorder %v1202_v53, 0.0 }
 0x1a2   : > { %v1538_v60 = vmul.f32 %v1537_v41, %v1196_v11  ;;  %v1546_v57 = vmul.f32 %v5416_v25, %v1545_v63 }
 0x1a3   : > { %5075 = vmatmul.msk.f32.gmra.mxu1 %vm938_vm2, %v902_v5  ;;  %5105 = vmatmul.msk.f32.vlgmr.msrb.gmra.mxu0 %vm2175_vm1, %v2109_v19 }
 0x1a4   : > { %v1540_v31 = vsel %vm1539_vm12, %v1196_v11, %v1538_v60  ;;  %v1547_v17 = vmul.f32 0.5, %v1546_v57  ;;  %v1554_v57 = vand.u32 2147483648, %v1199_v55 }
 0x1a5   : > { %v1543_v29 = vsel %vm1541_vm13, %v1542_v2, %v1540_v31 }
 0x1a6   : > { %5185 = vmatmul.msk.f32.gmra.mxu2 %vm2577_vm4, %v1543_v29  ;;  %v1548_v7 = vsub.f32 1.5, %v1547_v17 }
 0x1a7   : > { %v5418_v23 = vpop.eup %5417 }
 0x1a8   : > { %v6381_v1 = vpop.f32.mrf.mxu0  ;;  %v1205_v47 = vpop.f32.mrf.mxu1  ;;  %v1549_v41 = vmul.f32 %v5416_v25, %v1548_v7  ;;  %v1557_v63 = vmul.f32 %v5418_v23, %v1202_v53 }
 0x1a9   : > { %7957 = vst [vmem:[#allocation67_spill] sm:$0xff] %v6381_v1  ;;  %v903_v5 = vmul.f32 %v6381_v1, %v6381_v1  ;;  %5419 = vrsqrt.f32 %v1205_v47  ;;  %v6386_v19 = vpop.f32.mrf.mxu2  ;;  %vm1575_vm6 = vcmp.eq.f32.partialorder %v1205_v47, inf  ;;  %vm1577_vm7 = vcmp.eq.f32.partialorder %v1205_v47, 0.0 }
 0x1aa   : > { %v1550_v11 = vmul.f32 %v1549_v41, %v1199_v55  ;;  %v1558_v60 = vmul.f32 %v5418_v23, %v1557_v63 }
 0x1ab   : > { %5076 = vmatmul.msk.f32.gmra.mxu1 %vm938_vm2, %v903_v5  ;;  %5106 = vmatmul.msk.f32.gmra.mxu0 %vm2175_vm1, %v2110_v59 }
 0x1ac   : > { %v1552_v2 = vsel %vm1551_vm14, %v1199_v55, %v1550_v11  ;;  %v1559_v31 = vmul.f32 0.5, %v1558_v60  ;;  %v1566_v60 = vand.u32 2147483648, %v1202_v53 }
 0x1ad   : > { %v1555_v25 = vsel %vm1553_vm15, %v1554_v57, %v1552_v2 }
 0x1ae   : > { %5186 = vmatmul.msk.f32.gmra.mxu2 %vm2577_vm4, %v1555_v25  ;;  %v1560_v17 = vsub.f32 1.5, %v1559_v31 }
 0x1af   : > { %v5420_v29 = vpop.eup %5419 }
 0x1b0   : > { %v6391_v7 = vpop.f32.mrf.mxu0  ;;  %v1208_v1 = vpop.f32.mrf.mxu1  ;;  %v1561_v41 = vmul.f32 %v5418_v23, %v1560_v17  ;;  %v1569_v63 = vmul.f32 %v5420_v29, %v1205_v47 }
 0x1b1   : > { %7958 = vst [vmem:[#allocation68_spill] sm:$0xff] %v6391_v7  ;;  %v904_v5 = vmul.f32 %v6391_v7, %v6391_v7  ;;  %5421 = vrsqrt.f32 %v1208_v1  ;;  %v6396_v59 = vpop.f32.mrf.mxu2  ;;  %vm1587_vm8 = vcmp.eq.f32.partialorder %v1208_v1, inf  ;;  %vm1589_vm9 = vcmp.eq.f32.partialorder %v1208_v1, 0.0 }
 0x1b2   : > { %v1562_v55 = vmul.f32 %v1561_v41, %v1202_v53  ;;  %v1570_v11 = vmul.f32 %v5420_v29, %v1569_v63 }
 0x1b3   : > { %5077 = vmatmul.msk.f32.gmra.mxu1 %vm938_vm2, %v904_v5  ;;  %5107 = vmatmul.msk.f32.gmra.mxu0 %vm2175_vm1, %v2111_v35 }
 0x1b4   : > { %v1564_v57 = vsel %vm1563_vm3, %v1202_v53, %v1562_v55  ;;  %v1571_v2 = vmul.f32 0.5, %v1570_v11  ;;  %v1578_v11 = vand.u32 2147483648, %v1205_v47 }
 0x1b5   : > { %v1567_v23 = vsel %vm1565_vm5, %v1566_v60, %v1564_v57 }
 0x1b6   : > { %5187 = vmatmul.msk.f32.gmra.mxu2 %vm2577_vm4, %v1567_v23  ;;  %v1572_v31 = vsub.f32 1.5, %v1571_v2 }
 0x1b7   : > { %v5422_v25 = vpop.eup %5421 }
 0x1b8   : > { %v6401_v17 = vpop.f32.mrf.mxu0  ;;  %v1211_v7 = vpop.f32.mrf.mxu1  ;;  %v1573_v41 = vmul.f32 %v5420_v29, %v1572_v31  ;;  %v1581_v63 = vmul.f32 %v5422_v25, %v1208_v1 }
 0x1b9   : > { %7959 = vst [vmem:[#allocation69_spill] sm:$0xff] %v6401_v17  ;;  %v905_v5 = vmul.f32 %v6401_v17, %v6401_v17  ;;  %5423 = vrsqrt.f32 %v1211_v7  ;;  %v6406_v35 = vpop.f32.mrf.mxu2  ;;  %vm1599_vm10 = vcmp.eq.f32.partialorder %v1211_v7, inf  ;;  %vm1601_vm11 = vcmp.eq.f32.partialorder %v1211_v7, 0.0 }
 0x1ba   : > { %v1574_v53 = vmul.f32 %v1573_v41, %v1205_v47  ;;  %v1582_v55 = vmul.f32 %v5422_v25, %v1581_v63 }
 0x1bb   : > { %5078 = vmatmul.msk.f32.gmra.mxu1 %vm938_vm2, %v905_v5  ;;  %5108 = vmatmul.msk.f32.gmra.mxu0 %vm2175_vm1, %v2112_v13 }
 0x1bc   : > { %v1576_v60 = vsel %vm1575_vm6, %v1205_v47, %v1574_v53  ;;  %v1583_v57 = vmul.f32 0.5, %v1582_v55  ;;  %v1590_v55 = vand.u32 2147483648, %v1208_v1 }
 0x1bd   : > { %v1579_v29 = vsel %vm1577_vm7, %v1578_v11, %v1576_v60 }
 0x1be   : > { %5188 = vmatmul.msk.f32.gmra.mxu2 %vm2577_vm4, %v1579_v29  ;;  %v1584_v2 = vsub.f32 1.5, %v1583_v57 }
 0x1bf   : > { %v5424_v23 = vpop.eup %5423 }
 0x1c0   : > { %v6411_v31 = vpop.f32.mrf.mxu0  ;;  %v1214_v17 = vpop.f32.mrf.mxu1  ;;  %v1585_v41 = vmul.f32 %v5422_v25, %v1584_v2  ;;  %v1593_v63 = vmul.f32 %v5424_v23, %v1211_v7 }
 0x1c1   : > { %7960 = vst [vmem:[#allocation70_spill] sm:$0xff] %v6411_v31  ;;  %v906_v5 = vmul.f32 %v6411_v31, %v6411_v31  ;;  %5425 = vrsqrt.f32 %v1214_v17  ;;  %v6416_v13 = vpop.f32.mrf.mxu2  ;;  %vm1611_vm12 = vcmp.eq.f32.partialorder %v1214_v17, inf  ;;  %vm1613_vm13 = vcmp.eq.f32.partialorder %v1214_v17, 0.0 }
 0x1c2   : > { %v1586_v47 = vmul.f32 %v1585_v41, %v1208_v1  ;;  %v1594_v53 = vmul.f32 %v5424_v23, %v1593_v63 }
 0x1c3   : > { %5079 = vmatmul.msk.f32.gmra.mxu1 %vm938_vm2, %v906_v5  ;;  %5109 = vmatmul.msk.f32.gmra.mxu0 %vm2175_vm1, %v2113_v20 }
 0x1c4   : > { %v1588_v11 = vsel %vm1587_vm8, %v1208_v1, %v1586_v47  ;;  %v1595_v60 = vmul.f32 0.5, %v1594_v53  ;;  %v1602_v53 = vand.u32 2147483648, %v1211_v7 }
 0x1c5   : > { %v1591_v25 = vsel %vm1589_vm9, %v1590_v55, %v1588_v11 }
 0x1c6   : > { %5189 = vmatmul.msk.f32.gmra.mxu2 %vm2577_vm4, %v1591_v25  ;;  %v1596_v57 = vsub.f32 1.5, %v1595_v60 }
 0x1c7   : > { %v5426_v29 = vpop.eup %5425 }
 0x1c8   : > { %v6421_v2 = vpop.f32.mrf.mxu0  ;;  %v1217_v31 = vpop.f32.mrf.mxu1  ;;  %v1597_v41 = vmul.f32 %v5424_v23, %v1596_v57  ;;  %v1605_v63 = vmul.f32 %v5426_v29, %v1214_v17 }
 0x1c9   : > { %7961 = vst [vmem:[#allocation71_spill] sm:$0xff] %v6421_v2  ;;  %v907_v5 = vmul.f32 %v6421_v2, %v6421_v2  ;;  %5427 = vrsqrt.f32 %v1217_v31  ;;  %v6426_v20 = vpop.f32.mrf.mxu2  ;;  %vm1623_vm14 = vcmp.eq.f32.partialorder %v1217_v31, inf  ;;  %vm1625_vm15 = vcmp.eq.f32.partialorder %v1217_v31, 0.0 }
 0x1ca   : > { %v1598_v1 = vmul.f32 %v1597_v41, %v1211_v7  ;;  %v1606_v47 = vmul.f32 %v5426_v29, %v1605_v63 }
 0x1cb   : > { %5080 = vmatmul.msk.f32.gmra.mxu1 %vm938_vm2, %v907_v5  ;;  %5110 = vmatmul.msk.f32.gmra.mxu0 %vm2175_vm1, %v2114_v44 }
 0x1cc   : > { %v1600_v55 = vsel %vm1599_vm10, %v1211_v7, %v1598_v1  ;;  %v1607_v11 = vmul.f32 0.5, %v1606_v47  ;;  %v1614_v47 = vand.u32 2147483648, %v1214_v17 }
 0x1cd   : > { %v1603_v23 = vsel %vm1601_vm11, %v1602_v53, %v1600_v55 }
 0x1ce   : > { %5190 = vmatmul.msk.f32.gmra.mxu2 %vm2577_vm4, %v1603_v23  ;;  %v1608_v60 = vsub.f32 1.5, %v1607_v11 }
 0x1cf   : > { %v5428_v25 = vpop.eup %5427 }
 0x1d0   : > { %v6431_v57 = vpop.f32.mrf.mxu0  ;;  %v1220_v2 = vpop.f32.mrf.mxu1  ;;  %v1609_v41 = vmul.f32 %v5426_v29, %v1608_v60  ;;  %v1617_v63 = vmul.f32 %v5428_v25, %v1217_v31 }
 0x1d1   : > { %7962 = vst [vmem:[#allocation72_spill] sm:$0xff] %v6431_v57  ;;  %v908_v5 = vmul.f32 %v6431_v57, %v6431_v57  ;;  %5429 = vrsqrt.f32 %v1220_v2  ;;  %v6436_v44 = vpop.f32.mrf.mxu2  ;;  %vm1635_vm3 = vcmp.eq.f32.partialorder %v1220_v2, inf  ;;  %vm1637_vm5 = vcmp.eq.f32.partialorder %v1220_v2, 0.0 }
 0x1d2   : > { %v1610_v7 = vmul.f32 %v1609_v41, %v1214_v17  ;;  %v1618_v1 = vmul.f32 %v5428_v25, %v1617_v63 }
 0x1d3   : > { %5081 = vmatmul.msk.f32.gmra.mxu1 %vm938_vm2, %v908_v5  ;;  %5111 = vmatmul.msk.f32.gmra.mxu0 %vm2175_vm1, %v2115_v56 }
 0x1d4   : > { %v1612_v53 = vsel %vm1611_vm12, %v1214_v17, %v1610_v7  ;;  %v1619_v55 = vmul.f32 0.5, %v1618_v1  ;;  %v1626_v1 = vand.u32 2147483648, %v1217_v31 }
 0x1d5   : > { %v1615_v29 = vsel %vm1613_vm13, %v1614_v47, %v1612_v53 }
 0x1d6   : > { %5191 = vmatmul.msk.f32.gmra.mxu2 %vm2577_vm4, %v1615_v29  ;;  %v1620_v11 = vsub.f32 1.5, %v1619_v55 }
 0x1d7   : > { %v5430_v23 = vpop.eup %5429 }
 0x1d8   : > { %v6441_v60 = vpop.f32.mrf.mxu0  ;;  %v1223_v57 = vpop.f32.mrf.mxu1  ;;  %v1621_v41 = vmul.f32 %v5428_v25, %v1620_v11  ;;  %v1629_v63 = vmul.f32 %v5430_v23, %v1220_v2 }
 0x1d9   : > { %7963 = vst [vmem:[#allocation73_spill] sm:$0xff] %v6441_v60  ;;  %v909_v5 = vmul.f32 %v6441_v60, %v6441_v60  ;;  %5431 = vrsqrt.f32 %v1223_v57  ;;  %v6446_v56 = vpop.f32.mrf.mxu2  ;;  %vm1647_vm6 = vcmp.eq.f32.partialorder %v1223_v57, inf  ;;  %vm1649_vm7 = vcmp.eq.f32.partialorder %v1223_v57, 0.0 }
 0x1da   : > { %v1622_v17 = vmul.f32 %v1621_v41, %v1217_v31  ;;  %v1630_v7 = vmul.f32 %v5430_v23, %v1629_v63 }
 0x1db   : > { %5082 = vmatmul.msk.f32.gmra.mxu1 %vm938_vm2, %v909_v5  ;;  %5112 = vmatmul.msk.f32.gmra.mxu0 %vm2175_vm1, %v2116_v24 }
 0x1dc   : > { %v1624_v47 = vsel %vm1623_vm14, %v1217_v31, %v1622_v17  ;;  %v1631_v53 = vmul.f32 0.5, %v1630_v7  ;;  %v1638_v7 = vand.u32 2147483648, %v1220_v2 }
 0x1dd   : > { %v1627_v25 = vsel %vm1625_vm15, %v1626_v1, %v1624_v47 }
 0x1de   : > { %5192 = vmatmul.msk.f32.gmra.mxu2 %vm2577_vm4, %v1627_v25  ;;  %v1632_v55 = vsub.f32 1.5, %v1631_v53 }
 0x1df   : > { %v5432_v29 = vpop.eup %5431 }
 0x1e0   : > { %v6451_v11 = vpop.f32.mrf.mxu0  ;;  %v1226_v60 = vpop.f32.mrf.mxu1  ;;  %v1633_v41 = vmul.f32 %v5430_v23, %v1632_v55  ;;  %v1641_v63 = vmul.f32 %v5432_v29, %v1223_v57 }
 0x1e1   : > { %7964 = vst [vmem:[#allocation74_spill] sm:$0xff] %v6451_v11  ;;  %v910_v5 = vmul.f32 %v6451_v11, %v6451_v11  ;;  %5433 = vrsqrt.f32 %v1226_v60  ;;  %v6456_v24 = vpop.f32.mrf.mxu2  ;;  %vm1659_vm8 = vcmp.eq.f32.partialorder %v1226_v60, inf  ;;  %vm1661_vm9 = vcmp.eq.f32.partialorder %v1226_v60, 0.0 }
 0x1e2   : > { %v1634_v31 = vmul.f32 %v1633_v41, %v1220_v2  ;;  %v1642_v17 = vmul.f32 %v5432_v29, %v1641_v63 }
 0x1e3   : > { %5083 = vmatmul.msk.f32.gmra.mxu1 %vm938_vm2, %v910_v5  ;;  %5113 = vmatmul.msk.f32.gmra.mxu0 %vm2175_vm1, %v2117_v32 }
 0x1e4   : > { %v1636_v1 = vsel %vm1635_vm3, %v1220_v2, %v1634_v31  ;;  %v1643_v47 = vmul.f32 0.5, %v1642_v17  ;;  %v1650_v17 = vand.u32 2147483648, %v1223_v57 }
 0x1e5   : > { %v1639_v23 = vsel %vm1637_vm5, %v1638_v7, %v1636_v1 }
 0x1e6   : > { %5193 = vmatmul.msk.f32.gmra.mxu2 %vm2577_vm4, %v1639_v23  ;;  %v1644_v53 = vsub.f32 1.5, %v1643_v47 }
 0x1e7   : > { %v5434_v25 = vpop.eup %5433 }
 0x1e8   : > { %v6461_v55 = vpop.f32.mrf.mxu0  ;;  %v1229_v11 = vpop.f32.mrf.mxu1  ;;  %v1645_v41 = vmul.f32 %v5432_v29, %v1644_v53  ;;  %v1653_v63 = vmul.f32 %v5434_v25, %v1226_v60 }
 0x1e9   : > { %7965 = vst [vmem:[#allocation75_spill] sm:$0xff] %v6461_v55  ;;  %v911_v5 = vmul.f32 %v6461_v55, %v6461_v55  ;;  %5435 = vrsqrt.f32 %v1229_v11  ;;  %v6466_v32 = vpop.f32.mrf.mxu2  ;;  %vm1671_vm10 = vcmp.eq.f32.partialorder %v1229_v11, inf  ;;  %vm1673_vm11 = vcmp.eq.f32.partialorder %v1229_v11, 0.0 }
 0x1ea   : > { %v1646_v2 = vmul.f32 %v1645_v41, %v1223_v57  ;;  %v1654_v31 = vmul.f32 %v5434_v25, %v1653_v63 }
 0x1eb   : > { %5084 = vmatmul.msk.f32.gmra.mxu1 %vm938_vm2, %v911_v5  ;;  %5114 = vmatmul.msk.f32.gmra.mxu0 %vm2175_vm1, %v2118_v36 }
 0x1ec   : > { %v1648_v7 = vsel %vm1647_vm6, %v1223_v57, %v1646_v2  ;;  %v1655_v1 = vmul.f32 0.5, %v1654_v31  ;;  %v1662_v31 = vand.u32 2147483648, %v1226_v60 }
 0x1ed   : > { %v1651_v29 = vsel %vm1649_vm7, %v1650_v17, %v1648_v7 }
 0x1ee   : > { %5194 = vmatmul.msk.f32.gmra.mxu2 %vm2577_vm4, %v1651_v29  ;;  %v1656_v47 = vsub.f32 1.5, %v1655_v1 }
 0x1ef   : > { %v5436_v23 = vpop.eup %5435 }
 0x1f0   : > { %v6471_v53 = vpop.f32.mrf.mxu0  ;;  %v1232_v55 = vpop.f32.mrf.mxu1  ;;  %v1657_v41 = vmul.f32 %v5434_v25, %v1656_v47  ;;  %v1665_v63 = vmul.f32 %v5436_v23, %v1229_v11 }
 0x1f1   : > { %7966 = vst [vmem:[#allocation76_spill] sm:$0xff] %v6471_v53  ;;  %v912_v5 = vmul.f32 %v6471_v53, %v6471_v53  ;;  %5437 = vrsqrt.f32 %v1232_v55  ;;  %v6476_v36 = vpop.f32.mrf.mxu2  ;;  %vm1683_vm12 = vcmp.eq.f32.partialorder %v1232_v55, inf  ;;  %vm1685_vm13 = vcmp.eq.f32.partialorder %v1232_v55, 0.0 }
 0x1f2   : > { %v1658_v57 = vmul.f32 %v1657_v41, %v1226_v60  ;;  %v1666_v2 = vmul.f32 %v5436_v23, %v1665_v63 }
 0x1f3   : > { %5085 = vmatmul.msk.f32.gmra.mxu1 %vm938_vm2, %v912_v5  ;;  %5115 = vmatmul.msk.f32.gmra.mxu0 %vm2175_vm1, %v2119_v37 }
 0x1f4   : > { %v1660_v17 = vsel %vm1659_vm8, %v1226_v60, %v1658_v57  ;;  %v1667_v7 = vmul.f32 0.5, %v1666_v2  ;;  %v1674_v2 = vand.u32 2147483648, %v1229_v11 }
 0x1f5   : > { %v1663_v25 = vsel %vm1661_vm9, %v1662_v31, %v1660_v17 }
 0x1f6   : > { %5195 = vmatmul.msk.f32.gmra.mxu2 %vm2577_vm4, %v1663_v25  ;;  %v1668_v1 = vsub.f32 1.5, %v1667_v7 }
 0x1f7   : > { %v5438_v29 = vpop.eup %5437 }
 0x1f8   : > { %v6481_v47 = vpop.f32.mrf.mxu0  ;;  %v1235_v53 = vpop.f32.mrf.mxu1  ;;  %v1669_v41 = vmul.f32 %v5436_v23, %v1668_v1  ;;  %v1677_v63 = vmul.f32 %v5438_v29, %v1232_v55 }
 0x1f9   : > { %7967 = vst [vmem:[#allocation77_spill] sm:$0xff] %v6481_v47  ;;  %v913_v5 = vmul.f32 %v6481_v47, %v6481_v47  ;;  %5439 = vrsqrt.f32 %v1235_v53  ;;  %v6486_v37 = vpop.f32.mrf.mxu2  ;;  %vm1695_vm14 = vcmp.eq.f32.partialorder %v1235_v53, inf  ;;  %vm1697_vm15 = vcmp.eq.f32.partialorder %v1235_v53, 0.0 }
 0x1fa   : > { %v1670_v60 = vmul.f32 %v1669_v41, %v1229_v11  ;;  %v1678_v57 = vmul.f32 %v5438_v29, %v1677_v63 }
 0x1fb   : > { %5086 = vmatmul.msk.f32.gmra.mxu1 %vm938_vm2, %v913_v5  ;;  %5116 = vmatmul.msk.f32.gmra.mxu0 %vm2175_vm1, %v2120_v38 }
 0x1fc   : > { %v1672_v31 = vsel %vm1671_vm10, %v1229_v11, %v1670_v60  ;;  %v1679_v17 = vmul.f32 0.5, %v1678_v57  ;;  %v1686_v57 = vand.u32 2147483648, %v1232_v55 }
 0x1fd   : > { %v1675_v23 = vsel %vm1673_vm11, %v1674_v2, %v1672_v31 }
 0x1fe   : > { %5196 = vmatmul.msk.f32.gmra.mxu2 %vm2577_vm4, %v1675_v23  ;;  %v1680_v7 = vsub.f32 1.5, %v1679_v17 }
 0x1ff   : > { %v5440_v25 = vpop.eup %5439 }
 0x200   : > { %v6491_v1 = vpop.f32.mrf.mxu0  ;;  %v1238_v47 = vpop.f32.mrf.mxu1  ;;  %v1681_v41 = vmul.f32 %v5438_v29, %v1680_v7  ;;  %v1689_v63 = vmul.f32 %v5440_v25, %v1235_v53 }
 0x201   : > { %7968 = vst [vmem:[#allocation78_spill] sm:$0xff] %v6491_v1  ;;  %v914_v5 = vmul.f32 %v6491_v1, %v6491_v1  ;;  %5441 = vrsqrt.f32 %v1238_v47  ;;  %v6496_v38 = vpop.f32.mrf.mxu2  ;;  %vm1707_vm3 = vcmp.eq.f32.partialorder %v1238_v47, inf  ;;  %vm1709_vm5 = vcmp.eq.f32.partialorder %v1238_v47, 0.0 }
 0x202   : > { %v1682_v11 = vmul.f32 %v1681_v41, %v1232_v55  ;;  %v1690_v60 = vmul.f32 %v5440_v25, %v1689_v63 }
 0x203   : > { %5087 = vmatmul.msk.f32.gmra.mxu1 %vm938_vm2, %v914_v5  ;;  %5117 = vmatmul.msk.f32.gmra.mxu0 %vm2175_vm1, %v2121_v48 }
 0x204   : > { %v1684_v2 = vsel %vm1683_vm12, %v1232_v55, %v1682_v11  ;;  %v1691_v31 = vmul.f32 0.5, %v1690_v60  ;;  %v1698_v60 = vand.u32 2147483648, %v1235_v53 }
 0x205   : > { %v1687_v29 = vsel %vm1685_vm13, %v1686_v57, %v1684_v2 }
 0x206   : > { %5197 = vmatmul.msk.f32.gmra.mxu2 %vm2577_vm4, %v1687_v29  ;;  %v1692_v17 = vsub.f32 1.5, %v1691_v31 }
 0x207   : > { %v5442_v23 = vpop.eup %5441 }
 0x208   : > { %v6501_v7 = vpop.f32.mrf.mxu0  ;;  %v1241_v1 = vpop.f32.mrf.mxu1  ;;  %v1693_v41 = vmul.f32 %v5440_v25, %v1692_v17  ;;  %v1701_v63 = vmul.f32 %v5442_v23, %v1238_v47 }
 0x209   : > { %7969 = vst [vmem:[#allocation79_spill] sm:$0xff] %v6501_v7  ;;  %v915_v5 = vmul.f32 %v6501_v7, %v6501_v7  ;;  %5443 = vrsqrt.f32 %v1241_v1  ;;  %v6506_v48 = vpop.f32.mrf.mxu2  ;;  %vm1719_vm6 = vcmp.eq.f32.partialorder %v1241_v1, inf  ;;  %vm1721_vm7 = vcmp.eq.f32.partialorder %v1241_v1, 0.0 }
 0x20a   : > { %v1694_v55 = vmul.f32 %v1693_v41, %v1235_v53  ;;  %v1702_v11 = vmul.f32 %v5442_v23, %v1701_v63  ;;  %v2123_v41 = vld [vmem:[%s5875_s15 + $0x70] sm:$0xff] }
 0x20b   : > { %5088 = vmatmul.msk.f32.gmra.mxu1 %vm938_vm2, %v915_v5  ;;  %5118 = vmatmul.msk.f32.gmra.mxu0 %vm2175_vm1, %v2122_v8 }
 0x20c   : > { %v1696_v57 = vsel %vm1695_vm14, %v1235_v53, %v1694_v55  ;;  %v1703_v2 = vmul.f32 0.5, %v1702_v11  ;;  %v1710_v11 = vand.u32 2147483648, %v1238_v47 }
 0x20d   : > { %v1699_v25 = vsel %vm1697_vm15, %v1698_v60, %v1696_v57 }
 0x20e   : > { %5198 = vmatmul.msk.f32.gmra.mxu2 %vm2577_vm4, %v1699_v25  ;;  %v1704_v31 = vsub.f32 1.5, %v1703_v2 }
 0x20f   : > { %v5444_v29 = vpop.eup %5443 }
 0x210   : > { %v6511_v17 = vpop.f32.mrf.mxu0  ;;  %v6513_v7 = vpop.f32.mrf.mxu1  ;;  %v1705_v63 = vmul.f32 %v5442_v23, %v1704_v31  ;;  %v1713_v50 = vmul.f32 %v5444_v29, %v1241_v1 }
 0x211   : > { %7970 = vst [vmem:[#allocation80_spill] sm:$0xff] %v6511_v17  ;;  %v916_v8 = vmul.f32 %v6511_v17, %v6511_v17  ;;  %5445 = vrsqrt.f32 %v6513_v7  ;;  %v6519_v5 = vpop.f32.mrf.mxu2  ;;  %vm1731_vm8 = vcmp.eq.f32.partialorder %v6513_v7, inf  ;;  %vm1733_vm9 = vcmp.eq.f32.partialorder %v6513_v7, 0.0 }
 0x212   : > { %v1706_v53 = vmul.f32 %v1705_v63, %v1238_v47  ;;  %v1714_v55 = vmul.f32 %v5444_v29, %v1713_v50  ;;  %v2124_v63 = vld [vmem:[%s5875_s15 + $0x78] sm:$0xff] }
 0x213   : > { %5089 = vmatmul.msk.f32.gmra.mxu1 %vm938_vm2, %v916_v8  ;;  %5119 = vmatmul.msk.f32.gmra.mxu0 %vm2175_vm1, %v2123_v41 }
 0x214   : > { %v1708_v60 = vsel %vm1707_vm3, %v1238_v47, %v1706_v53  ;;  %v1715_v23 = vmul.f32 0.5, %v1714_v55 }
 0x215   : > { %v1711_v57 = vsel %vm1709_vm5, %v1710_v11, %v1708_v60  ;;  %v1722_v11 = vand.u32 2147483648, %v1241_v1 }
 0x216   : > { %5199 = vmatmul.msk.f32.gmra.mxu2 %vm2577_vm4, %v1711_v57  ;;  %v1716_v2 = vsub.f32 1.5, %v1715_v23 }
 0x217   : > { %v5446_v25 = vpop.eup %5445 }
 0x218   : > { %v6524_v31 = vpop.f32.mrf.mxu0  ;;  %v6526_v17 = vpop.f32.mrf.mxu1  ;;  %v1717_v50 = vmul.f32 %v5444_v29, %v1716_v2  ;;  %v1725_v8 = vmul.f32 %v5446_v25, %v6513_v7 }
 0x219   : > { %7971 = vst [vmem:[#allocation81_spill] sm:$0xff] %v6524_v31  ;;  %v917_v41 = vmul.f32 %v6524_v31, %v6524_v31  ;;  %5447 = vrsqrt.f32 %v6526_v17  ;;  %v6533_v47 = vpop.f32.mrf.mxu2  ;;  %vm1743_vm10 = vcmp.eq.f32.partialorder %v6526_v17, inf  ;;  %vm1745_vm11 = vcmp.eq.f32.partialorder %v6526_v17, 0.0 }
 0x21a   : > { %v1718_v53 = vmul.f32 %v1717_v50, %v1241_v1  ;;  %v1726_v55 = vmul.f32 %v5446_v25, %v1725_v8  ;;  %v6541_v50 = vld [vmem:[%s7821_s6] ss:$0 sm:$0xff] }
 0x21b   : > { %5090 = vmatmul.msk.f32.gmra.mxu1 %vm938_vm2, %v917_v41  ;;  %5120 = vmatmul.msk.f32.gmra.mxu0 %vm2175_vm1, %v2124_v63  ;;  %v2125_v63 = vld [vmem:[%s5875_s15 + $0x80] sm:$0xff] }
 0x21c   : > { %v1720_v60 = vsel %vm1719_vm6, %v1241_v1, %v1718_v53  ;;  %v1727_v29 = vmul.f32 0.5, %v1726_v55  ;;  %v918_v1 = vmul.f32 %v5994_v61, %v5994_v61 }
 0x21d   : > { %v1723_v23 = vsel %vm1721_vm7, %v1722_v11, %v1720_v60 }
 0x21e   : > { %5200 = vmatmul.msk.f32.gmra.mxu2 %vm2577_vm4, %v1723_v23  ;;  %v1728_v57 = vsub.f32 1.5, %v1727_v29 }
 0x21f   : > { %v5448_v2 = vpop.eup %5447 }
 0x220   : > { %v6543_v8 = vpop.f32.mrf.mxu1  ;;  %v2385_v41 = vpop.f32.mrf.mxu0  ;;  %v1729_v31 = vmul.f32 %v5446_v25, %v1728_v57  ;;  %v1737_v53 = vmul.f32 %v5448_v2, %v6526_v17 }
 0x221   : > { %5449 = vrsqrt.f32 %v6543_v8  ;;  %v2788_v55 = vadd.f32 %v6386_v19, %v2385_v41  ;;  %v6551_v11 = vpop.f32.mrf.mxu2  ;;  %v1734_v19 = vand.u32 2147483648, %v6513_v7  ;;  %vm1755_vm12 = vcmp.eq.f32.partialorder %v6543_v8, inf }
 0x222   : > { %v1730_v60 = vmul.f32 %v1729_v31, %v6513_v7  ;;  %v1738_v25 = vmul.f32 %v5448_v2, %v1737_v53  ;;  %vm1757_vm13 = vcmp.eq.f32.partialorder %v6543_v8, 0.0 }
 0x223   : > { %v6561_v29 = vadd.f32 %v6541_v50, %v2788_v55  ;;  %5091 = vmatmul.msk.f32.gmra.mxu1 %vm938_vm2, %v918_v1  ;;  %5121 = vmatmul.msk.f32.gmra.mxu0 %vm2175_vm1, %v2125_v63  ;;  %v2126_v55 = vld [vmem:[%s5875_s15 + $0x88] sm:$0xff] }
 0x224   : > { %v1732_v23 = vsel %vm1731_vm8, %v6513_v7, %v1730_v60  ;;  %v1739_v57 = vmul.f32 0.5, %v1738_v25  ;;  %v919_v7 = vmul.f32 %v6007_v3, %v6007_v3 }
 0x225   : > { %4670 = vst.msk [vmem:[%s6557_s14] sm:$0xff] %vm2175_vm1, %v6561_v29  ;;  %v1735_v31 = vsel %vm1733_vm9, %v1734_v19, %v1732_v23 }
 0x226   : > { %5201 = vmatmul.msk.f32.gmra.mxu2 %vm2577_vm4, %v1735_v31  ;;  %v1740_v41 = vsub.f32 1.5, %v1739_v57 }
 0x227   : > { %v5450_v53 = vpop.eup %5449 }
 0x228   : > { %v6573_v1 = vpop.f32.mrf.mxu1  ;;  %v2388_v63 = vpop.f32.mrf.mxu0  ;;  %v1741_v61 = vmul.f32 %v5448_v2, %v1740_v41  ;;  %v1749_v49 = vmul.f32 %v5450_v53, %v6543_v8  ;;  %v1746_v2 = vand.u32 2147483648, %v6526_v17 }
 0x229   : > { %5451 = vrsqrt.f32 %v6573_v1  ;;  %v2791_v60 = vadd.f32 %v6396_v59, %v2388_v63  ;;  %v6581_v25 = vpop.f32.mrf.mxu2  ;;  %vm1767_vm14 = vcmp.eq.f32.partialorder %v6573_v1, inf  ;;  %vm1769_vm15 = vcmp.eq.f32.partialorder %v6573_v1, 0.0 }
 0x22a   : > { %v1742_v19 = vmul.f32 %v1741_v61, %v6526_v17  ;;  %v1750_v23 = vmul.f32 %v5450_v53, %v1749_v49 }
 0x22b   : > { %v6585_v57 = vadd.f32 %v6541_v50, %v2791_v60  ;;  %5092 = vmatmul.msk.f32.gmra.mxu1 %vm938_vm2, %v919_v7  ;;  %5122 = vmatmul.msk.f32.gmra.mxu0 %vm2175_vm1, %v2126_v55  ;;  %v2127_v7 = vld [vmem:[%s5875_s15 + $0x90] sm:$0xff] }
 0x22c   : > { %v1744_v31 = vsel %vm1743_vm10, %v6526_v17, %v1742_v19  ;;  %v1751_v59 = vmul.f32 0.5, %v1750_v23  ;;  %v920_v17 = vmul.f32 %v6020_v9, %v6020_v9 }
 0x22d   : > { %4671 = vst.msk [vmem:[%s6557_s14 + $0x8] sm:$0xff] %vm2175_vm1, %v6585_v57  ;;  %v1747_v61 = vsel %vm1745_vm11, %v1746_v2, %v1744_v31 }
 0x22e   : > { %5202 = vmatmul.msk.f32.gmra.mxu2 %vm2577_vm4, %v1747_v61  ;;  %v1752_v49 = vsub.f32 1.5, %v1751_v59 }
 0x22f   : > { %v5452_v41 = vpop.eup %5451 }
 0x230   : > { %v6597_v63 = vpop.f32.mrf.mxu1  ;;  %v2391_v55 = vpop.f32.mrf.mxu0  ;;  %v1753_v60 = vmul.f32 %v5450_v53, %v1752_v49  ;;  %v1761_v3 = vmul.f32 %v5452_v41, %v6573_v1  ;;  %v1758_v53 = vand.u32 2147483648, %v6543_v8 }
 0x231   : > { %5453 = vrsqrt.f32 %v6597_v63  ;;  %v2794_v19 = vadd.f32 %v6406_v35, %v2391_v55  ;;  %v6605_v23 = vpop.f32.mrf.mxu2  ;;  %vm1779_vm3 = vcmp.eq.f32.partialorder %v6597_v63, inf  ;;  %vm1781_vm5 = vcmp.eq.f32.partialorder %v6597_v63, 0.0 }
 0x232   : > { %v1754_v2 = vmul.f32 %v1753_v60, %v6543_v8  ;;  %v1762_v31 = vmul.f32 %v5452_v41, %v1761_v3 }
 0x233   : > { %v6609_v59 = vadd.f32 %v6541_v50, %v2794_v19  ;;  %5093 = vmatmul.msk.f32.gmra.mxu1 %vm938_vm2, %v920_v17  ;;  %5123 = vmatmul.msk.f32.gmra.mxu0 %vm2175_vm1, %v2127_v7  ;;  %v2128_v17 = vld [vmem:[%s5875_s15 + $0x98] sm:$0xff] }
 0x234   : > { %v1756_v61 = vsel %vm1755_vm12, %v6543_v8, %v1754_v2  ;;  %v1763_v35 = vmul.f32 0.5, %v1762_v31  ;;  %v921_v8 = vmul.f32 %v6033_v15, %v6033_v15 }
 0x235   : > { %4672 = vst.msk [vmem:[%s6557_s14 + $0x10] sm:$0xff] %vm2175_vm1, %v6609_v59  ;;  %v1759_v3 = vsel %vm1757_vm13, %v1758_v53, %v1756_v61 }
 0x236   : > { %5203 = vmatmul.msk.f32.gmra.mxu2 %vm2577_vm4, %v1759_v3  ;;  %v1764_v49 = vsub.f32 1.5, %v1763_v35 }
 0x237   : > { %v5454_v55 = vpop.eup %5453 }
 0x238   : > { %v6621_v60 = vpop.f32.mrf.mxu1  ;;  %v2394_v7 = vpop.f32.mrf.mxu0  ;;  %v1765_v19 = vmul.f32 %v5452_v41, %v1764_v49  ;;  %v1773_v9 = vmul.f32 %v5454_v55, %v6597_v63  ;;  %v1770_v41 = vand.u32 2147483648, %v6573_v1 }
 0x239   : > { %5455 = vrsqrt.f32 %v6621_v60  ;;  %v2797_v2 = vadd.f32 %v6416_v13, %v2394_v7  ;;  %v6629_v31 = vpop.f32.mrf.mxu2  ;;  %vm1791_vm6 = vcmp.eq.f32.partialorder %v6621_v60, inf  ;;  %vm1793_vm7 = vcmp.eq.f32.partialorder %v6621_v60, 0.0 }
 0x23a   : > { %v1766_v53 = vmul.f32 %v1765_v19, %v6573_v1  ;;  %v1774_v61 = vmul.f32 %v5454_v55, %v1773_v9 }
 0x23b   : > { %v6633_v35 = vadd.f32 %v6541_v50, %v2797_v2  ;;  %5094 = vmatmul.msk.f32.gmra.mxu1 %vm938_vm2, %v921_v8  ;;  %5124 = vmatmul.msk.f32.gmra.mxu0 %vm2175_vm1, %v2128_v17  ;;  %v2129_v8 = vld [vmem:[%s5875_s15 + $0xa0] sm:$0xff] }
 0x23c   : > { %v1768_v3 = vsel %vm1767_vm14, %v6573_v1, %v1766_v53  ;;  %v1775_v13 = vmul.f32 0.5, %v1774_v61  ;;  %v922_v1 = vmul.f32 %v6046_v21, %v6046_v21 }
 0x23d   : > { %4673 = vst.msk [vmem:[%s6557_s14 + $0x18] sm:$0xff] %vm2175_vm1, %v6633_v35  ;;  %v1771_v9 = vsel %vm1769_vm15, %v1770_v41, %v1768_v3 }
 0x23e   : > { %5204 = vmatmul.msk.f32.gmra.mxu2 %vm2577_vm4, %v1771_v9  ;;  %v1776_v49 = vsub.f32 1.5, %v1775_v13 }
 0x23f   : > { %v5456_v7 = vpop.eup %5455 }
 0x240   : > { %v6645_v19 = vpop.f32.mrf.mxu1  ;;  %v2397_v17 = vpop.f32.mrf.mxu0  ;;  %v1777_v2 = vmul.f32 %v5454_v55, %v1776_v49  ;;  %v1785_v15 = vmul.f32 %v5456_v7, %v6621_v60  ;;  %v1782_v55 = vand.u32 2147483648, %v6597_v63 }
 0x241   : > { %5457 = vrsqrt.f32 %v6645_v19  ;;  %v2800_v53 = vadd.f32 %v6426_v20, %v2397_v17  ;;  %v6653_v61 = vpop.f32.mrf.mxu2  ;;  %vm1803_vm8 = vcmp.eq.f32.partialorder %v6645_v19, inf  ;;  %vm1805_vm9 = vcmp.eq.f32.partialorder %v6645_v19, 0.0 }
 0x242   : > { %v1778_v41 = vmul.f32 %v1777_v2, %v6597_v63  ;;  %v1786_v3 = vmul.f32 %v5456_v7, %v1785_v15 }
 0x243   : > { %v6657_v13 = vadd.f32 %v6541_v50, %v2800_v53  ;;  %5095 = vmatmul.msk.f32.gmra.mxu1 %vm938_vm2, %v922_v1  ;;  %5125 = vmatmul.msk.f32.gmra.mxu0 %vm2175_vm1, %v2129_v8  ;;  %v2130_v1 = vld [vmem:[%s5875_s15 + $0xa8] sm:$0xff] }
 0x244   : > { %v1780_v9 = vsel %vm1779_vm3, %v6597_v63, %v1778_v41  ;;  %v1787_v20 = vmul.f32 0.5, %v1786_v3  ;;  %v923_v63 = vmul.f32 %v6059_v27, %v6059_v27 }
 0x245   : > { %4674 = vst.msk [vmem:[%s6557_s14 + $0x20] sm:$0xff] %vm2175_vm1, %v6657_v13  ;;  %v1783_v15 = vsel %vm1781_vm5, %v1782_v55, %v1780_v9 }
 0x246   : > { %5205 = vmatmul.msk.f32.gmra.mxu2 %vm2577_vm4, %v1783_v15  ;;  %v1788_v49 = vsub.f32 1.5, %v1787_v20 }
 0x247   : > { %v5458_v17 = vpop.eup %5457 }
 0x248   : > { %v6669_v2 = vpop.f32.mrf.mxu1  ;;  %v2400_v8 = vpop.f32.mrf.mxu0  ;;  %v1789_v53 = vmul.f32 %v5456_v7, %v1788_v49  ;;  %v1797_v21 = vmul.f32 %v5458_v17, %v6645_v19  ;;  %v1794_v7 = vand.u32 2147483648, %v6621_v60 }
 0x249   : > { %5459 = vrsqrt.f32 %v6669_v2  ;;  %v2803_v41 = vadd.f32 %v6436_v44, %v2400_v8  ;;  %v6677_v3 = vpop.f32.mrf.mxu2  ;;  %vm1815_vm10 = vcmp.eq.f32.partialorder %v6669_v2, inf  ;;  %vm1817_vm11 = vcmp.eq.f32.partialorder %v6669_v2, 0.0 }
 0x24a   : > { %v1790_v55 = vmul.f32 %v1789_v53, %v6621_v60  ;;  %v1798_v9 = vmul.f32 %v5458_v17, %v1797_v21 }
 0x24b   : > { %v6681_v20 = vadd.f32 %v6541_v50, %v2803_v41  ;;  %5096 = vmatmul.msk.f32.gmra.mxu1 %vm938_vm2, %v923_v63  ;;  %5126 = vmatmul.msk.f32.gmra.mxu0 %vm2175_vm1, %v2130_v1  ;;  %v2131_v63 = vld [vmem:[%s5875_s15 + $0xb0] sm:$0xff] }
 0x24c   : > { %v1792_v15 = vsel %vm1791_vm6, %v6621_v60, %v1790_v55  ;;  %v1799_v44 = vmul.f32 0.5, %v1798_v9  ;;  %v924_v60 = vmul.f32 %v6072_v33, %v6072_v33 }
 0x24d   : > { %4675 = vst.msk [vmem:[%s6557_s14 + $0x28] sm:$0xff] %vm2175_vm1, %v6681_v20  ;;  %v1795_v21 = vsel %vm1793_vm7, %v1794_v7, %v1792_v15 }
 0x24e   : > { %5206 = vmatmul.msk.f32.gmra.mxu2 %vm2577_vm4, %v1795_v21  ;;  %v1800_v49 = vsub.f32 1.5, %v1799_v44 }
 0x24f   : > { %v5460_v8 = vpop.eup %5459 }
 0x250   : > { %v6693_v53 = vpop.f32.mrf.mxu1  ;;  %v2403_v1 = vpop.f32.mrf.mxu0  ;;  %v1801_v41 = vmul.f32 %v5458_v17, %v1800_v49  ;;  %v1809_v27 = vmul.f32 %v5460_v8, %v6669_v2  ;;  %v1806_v17 = vand.u32 2147483648, %v6645_v19 }
 0x251   : > { %5461 = vrsqrt.f32 %v6693_v53  ;;  %v2806_v55 = vadd.f32 %v6446_v56, %v2403_v1  ;;  %v6701_v9 = vpop.f32.mrf.mxu2  ;;  %vm1827_vm12 = vcmp.eq.f32.partialorder %v6693_v53, inf  ;;  %vm1829_vm13 = vcmp.eq.f32.partialorder %v6693_v53, 0.0 }
 0x252   : > { %v1802_v7 = vmul.f32 %v1801_v41, %v6645_v19  ;;  %v1810_v15 = vmul.f32 %v5460_v8, %v1809_v27 }
 0x253   : > { %v6705_v44 = vadd.f32 %v6541_v50, %v2806_v55  ;;  %5097 = vmatmul.msk.f32.gmra.mxu1 %vm938_vm2, %v924_v60  ;;  %5127 = vmatmul.msk.f32.gmra.mxu0 %vm2175_vm1, %v2131_v63  ;;  %v2132_v60 = vld [vmem:[%s5875_s15 + $0xb8] sm:$0xff] }
 0x254   : > { %v1804_v21 = vsel %vm1803_vm8, %v6645_v19, %v1802_v7  ;;  %v1811_v56 = vmul.f32 0.5, %v1810_v15  ;;  %v925_v19 = vmul.f32 %v6085_v39, %v6085_v39 }
 0x255   : > { %4676 = vst.msk [vmem:[%s6557_s14 + $0x30] sm:$0xff] %vm2175_vm1, %v6705_v44  ;;  %v1807_v27 = vsel %vm1805_vm9, %v1806_v17, %v1804_v21 }
 0x256   : > { %5207 = vmatmul.msk.f32.gmra.mxu2 %vm2577_vm4, %v1807_v27  ;;  %v1812_v49 = vsub.f32 1.5, %v1811_v56 }
 0x257   : > { %v5462_v1 = vpop.eup %5461 }
 0x258   : > { %v6717_v41 = vpop.f32.mrf.mxu1  ;;  %v2406_v63 = vpop.f32.mrf.mxu0  ;;  %v1813_v55 = vmul.f32 %v5460_v8, %v1812_v49  ;;  %v1821_v33 = vmul.f32 %v5462_v1, %v6693_v53  ;;  %v1818_v8 = vand.u32 2147483648, %v6669_v2 }
 0x259   : > { %5463 = vrsqrt.f32 %v6717_v41  ;;  %v2809_v7 = vadd.f32 %v6456_v24, %v2406_v63  ;;  %v6725_v15 = vpop.f32.mrf.mxu2  ;;  %vm1839_vm14 = vcmp.eq.f32.partialorder %v6717_v41, inf  ;;  %vm1841_vm15 = vcmp.eq.f32.partialorder %v6717_v41, 0.0 }
 0x25a   : > { %v1814_v17 = vmul.f32 %v1813_v55, %v6669_v2  ;;  %v1822_v21 = vmul.f32 %v5462_v1, %v1821_v33 }
 0x25b   : > { %v6729_v56 = vadd.f32 %v6541_v50, %v2809_v7  ;;  %5098 = vmatmul.msk.f32.gmra.mxu1 %vm938_vm2, %v925_v19  ;;  %5128 = vmatmul.msk.f32.gmra.mxu0 %vm2175_vm1, %v2132_v60  ;;  %v2133_v7 = vld [vmem:[%s5875_s15 + $0xc0] sm:$0xff] }
 0x25c   : > { %v1816_v27 = vsel %vm1815_vm10, %v6669_v2, %v1814_v17  ;;  %v1823_v24 = vmul.f32 0.5, %v1822_v21  ;;  %v926_v2 = vmul.f32 %v6101_v45, %v6101_v45 }
 0x25d   : > { %4677 = vst.msk [vmem:[%s6557_s14 + $0x38] sm:$0xff] %vm2175_vm1, %v6729_v56  ;;  %v1819_v33 = vsel %vm1817_vm11, %v1818_v8, %v1816_v27 }
 0x25e   : > { %5208 = vmatmul.msk.f32.gmra.mxu2 %vm2577_vm4, %v1819_v33  ;;  %v1824_v49 = vsub.f32 1.5, %v1823_v24 }
 0x25f   : > { %v5464_v63 = vpop.eup %5463 }
 0x260   : > { %v1833_v55 = vmul.f32 %v5464_v63, %v6717_v41  ;;  %v6742_v60 = vpop.f32.mrf.mxu1  ;;  %v2409_v19 = vpop.f32.mrf.mxu0  ;;  %v1825_v39 = vmul.f32 %v5462_v1, %v1824_v49  ;;  %v1830_v1 = vand.u32 2147483648, %v6693_v53 }
 0x261   : > { %5465 = vrsqrt.f32 %v6742_v60  ;;  %v2812_v17 = vadd.f32 %v6466_v32, %v2409_v19  ;;  %v6749_v21 = vpop.f32.mrf.mxu2  ;;  %vm1851_vm3 = vcmp.eq.f32.partialorder %v6742_v60, inf  ;;  %vm1853_vm5 = vcmp.eq.f32.partialorder %v6742_v60, 0.0 }
 0x262   : > { %v1826_v8 = vmul.f32 %v1825_v39, %v6693_v53  ;;  %v1834_v27 = vmul.f32 %v5464_v63, %v1833_v55 }
 0x263   : > { %v6753_v24 = vadd.f32 %v6541_v50, %v2812_v17  ;;  %5099 = vmatmul.msk.f32.gmra.mxu1 %vm938_vm2, %v926_v2  ;;  %5129 = vmatmul.msk.f32.gmra.mxu0 %vm2175_vm1, %v2133_v7  ;;  %v2134_v17 = vld [vmem:[%s5875_s15 + $0xc8] sm:$0xff] }
 0x264   : > { %v1828_v33 = vsel %vm1827_vm12, %v6693_v53, %v1826_v8  ;;  %v1835_v32 = vmul.f32 0.5, %v1834_v27  ;;  %v927_v53 = vmul.f32 %v6114_v51, %v6114_v51 }
 0x265   : > { %4678 = vst.msk [vmem:[%s6557_s14 + $0x40] sm:$0xff] %vm2175_vm1, %v6753_v24  ;;  %v1831_v39 = vsel %vm1829_vm13, %v1830_v1, %v1828_v33 }
 0x266   : > { %5209 = vmatmul.msk.f32.gmra.mxu2 %vm2577_vm4, %v1831_v39  ;;  %v1836_v49 = vsub.f32 1.5, %v1835_v32 }
 0x267   : > { %v5466_v55 = vpop.eup %5465 }
 0x268   : > { %v1845_v19 = vmul.f32 %v5466_v55, %v6742_v60  ;;  %v6766_v7 = vpop.f32.mrf.mxu1  ;;  %v2412_v2 = vpop.f32.mrf.mxu0  ;;  %v1837_v45 = vmul.f32 %v5464_v63, %v1836_v49  ;;  %v1842_v63 = vand.u32 2147483648, %v6717_v41 }
 0x269   : > { %5467 = vrsqrt.f32 %v6766_v7  ;;  %v2815_v8 = vadd.f32 %v6476_v36, %v2412_v2  ;;  %v6773_v27 = vpop.f32.mrf.mxu2  ;;  %vm1863_vm6 = vcmp.eq.f32.partialorder %v6766_v7, inf  ;;  %vm1865_vm7 = vcmp.eq.f32.partialorder %v6766_v7, 0.0 }
 0x26a   : > { %v1838_v1 = vmul.f32 %v1837_v45, %v6717_v41  ;;  %v1846_v33 = vmul.f32 %v5466_v55, %v1845_v19 }
 0x26b   : > { %v6777_v32 = vadd.f32 %v6541_v50, %v2815_v8  ;;  %5100 = vmatmul.msk.f32.gmra.mxu1 %vm938_vm2, %v927_v53  ;;  %5130 = vmatmul.msk.f32.gmra.mxu0 %vm2175_vm1, %v2134_v17  ;;  %v2135_v8 = vld [vmem:[%s5875_s15 + $0xd0] sm:$0xff] }
 0x26c   : > { %v1840_v39 = vsel %vm1839_vm14, %v6717_v41, %v1838_v1  ;;  %v1847_v36 = vmul.f32 0.5, %v1846_v33  ;;  %v928_v41 = vmul.f32 %v6132_v0, %v6132_v0 }
 0x26d   : > { %4679 = vst.msk [vmem:[%s6557_s14 + $0x48] sm:$0xff] %vm2175_vm1, %v6777_v32  ;;  %v1843_v45 = vsel %vm1841_vm15, %v1842_v63, %v1840_v39 }
 0x26e   : > { %5210 = vmatmul.msk.f32.gmra.mxu2 %vm2577_vm4, %v1843_v45  ;;  %v1848_v49 = vsub.f32 1.5, %v1847_v36 }
 0x26f   : > { %v5468_v19 = vpop.eup %5467 }
 0x270   : > { %v1857_v2 = vmul.f32 %v5468_v19, %v6766_v7  ;;  %v6790_v17 = vpop.f32.mrf.mxu1  ;;  %v2415_v53 = vpop.f32.mrf.mxu0  ;;  %v1849_v51 = vmul.f32 %v5466_v55, %v1848_v49  ;;  %v1854_v55 = vand.u32 2147483648, %v6742_v60 }
 0x271   : > { %5469 = vrsqrt.f32 %v6790_v17  ;;  %v2818_v1 = vadd.f32 %v6486_v37, %v2415_v53  ;;  %v6797_v33 = vpop.f32.mrf.mxu2  ;;  %vm1875_vm8 = vcmp.eq.f32.partialorder %v6790_v17, inf  ;;  %vm1877_vm9 = vcmp.eq.f32.partialorder %v6790_v17, 0.0 }
 0x272   : > { %v1850_v63 = vmul.f32 %v1849_v51, %v6742_v60  ;;  %v1858_v39 = vmul.f32 %v5468_v19, %v1857_v2 }
 0x273   : > { %v6801_v36 = vadd.f32 %v6541_v50, %v2818_v1  ;;  %5101 = vmatmul.msk.f32.gmra.mxu1 %vm938_vm2, %v928_v41  ;;  %5131 = vmatmul.msk.f32.gmra.mxu0 %vm2175_vm1, %v2135_v8  ;;  %v2136_v1 = vld [vmem:[%s5875_s15 + $0xd8] sm:$0xff] }
 0x274   : > { %v1852_v45 = vsel %vm1851_vm3, %v6742_v60, %v1850_v63  ;;  %v1859_v37 = vmul.f32 0.5, %v1858_v39  ;;  %v929_v60 = vmul.f32 %v6148_v14, %v6148_v14 }
 0x275   : > { %4680 = vst.msk [vmem:[%s6557_s14 + $0x50] sm:$0xff] %vm2175_vm1, %v6801_v36  ;;  %v1855_v51 = vsel %vm1853_vm5, %v1854_v55, %v1852_v45 }
 0x276   : > { %5211 = vmatmul.msk.f32.gmra.mxu2 %vm2577_vm4, %v1855_v51  ;;  %v1860_v49 = vsub.f32 1.5, %v1859_v37 }
 0x277   : > { %v5470_v2 = vpop.eup %5469 }
 0x278   : > { %v1869_v53 = vmul.f32 %v5470_v2, %v6790_v17  ;;  %v6814_v8 = vpop.f32.mrf.mxu1  ;;  %v2418_v41 = vpop.f32.mrf.mxu0  ;;  %v1861_v0 = vmul.f32 %v5468_v19, %v1860_v49  ;;  %v1866_v19 = vand.u32 2147483648, %v6766_v7 }
 0x279   : > { %5471 = vrsqrt.f32 %v6814_v8  ;;  %v2821_v63 = vadd.f32 %v6496_v38, %v2418_v41  ;;  %v6821_v39 = vpop.f32.mrf.mxu2  ;;  %vm1887_vm10 = vcmp.eq.f32.partialorder %v6814_v8, inf  ;;  %vm1889_vm11 = vcmp.eq.f32.partialorder %v6814_v8, 0.0 }
 0x27a   : > { %v1862_v55 = vmul.f32 %v1861_v0, %v6766_v7  ;;  %v1870_v45 = vmul.f32 %v5470_v2, %v1869_v53  ;;  %v3048_v53 = vld [vmem:[%s7822_s7 + $0x8] sm:$0xff] }
 0x27b   : > { %v6825_v37 = vadd.f32 %v6541_v50, %v2821_v63  ;;  %5102 = vmatmul.msk.f32.gmra.mxu1 %vm938_vm2, %v929_v60  ;;  %5132 = vmatmul.msk.f32.gmra.mxu0 %vm2175_vm1, %v2136_v1 }
 0x27c   : > { %v1864_v51 = vsel %vm1863_vm6, %v6766_v7, %v1862_v55  ;;  %v1871_v38 = vmul.f32 0.5, %v1870_v45  ;;  %3259 = vmatpush.msrb.mxu3 %v3048_v53  ;;  %v2137_v7 = vld [vmem:[%s5875_s15 + $0xe0] sm:$0xff]  ;;  %v930_v45 = vmul.f32 %v6163_v26, %v6163_v26  ;;  %v2138_v26 = vld [vmem:[%s5875_s15 + $0xe8] sm:$0xff] }
 0x27d   : > { %4681 = vst.msk [vmem:[%s6557_s14 + $0x58] sm:$0xff] %vm2175_vm1, %v6825_v37  ;;  %v1867_v0 = vsel %vm1865_vm7, %v1866_v19, %v1864_v51 }
 0x27e   : > { %5212 = vmatmul.msk.f32.gmra.mxu2 %vm2577_vm4, %v1867_v0  ;;  %v1872_v49 = vsub.f32 1.5, %v1871_v38 }
 0x27f   : > { %v5472_v41 = vpop.eup %5471 }
 0x280   : > { %v1881_v1 = vmul.f32 %v5472_v41, %v6814_v8  ;;  %v6841_v60 = vpop.f32.mrf.mxu1  ;;  %v2421_v63 = vpop.f32.mrf.mxu0  ;;  %v1873_v55 = vmul.f32 %v5470_v2, %v1872_v49  ;;  %v1878_v2 = vand.u32 2147483648, %v6790_v17 }
 0x281   : > { %5473 = vrsqrt.f32 %v6841_v60  ;;  %v2824_v19 = vadd.f32 %v6506_v48, %v2421_v63  ;;  %v6848_v51 = vpop.f32.mrf.mxu2  ;;  %vm1901_vm12 = vcmp.eq.f32.partialorder %v6841_v60, 0.0 }
 0x282   : > { %v1874_v38 = vmul.f32 %v1873_v55, %v6790_v17  ;;  %v1882_v0 = vmul.f32 %v5472_v41, %v1881_v1 }
 0x283   : > { %v6852_v53 = vadd.f32 %v6541_v50, %v2824_v19  ;;  %5103 = vmatmul.msk.f32.gmra.mxu1 %vm938_vm2, %v930_v45  ;;  %5133 = vmatmul.msk.f32.gmra.mxu0 %vm2175_vm1, %v2137_v7 }
 0x284   : > { %v1876_v49 = vsel %vm1875_vm8, %v6790_v17, %v1874_v38  ;;  %v1883_v48 = vmul.f32 0.5, %v1882_v0  ;;  %v931_v17 = vmul.f32 %v6180_v42, %v6180_v42 }
 0x285   : > { %4682 = vst.msk [vmem:[%s6557_s14 + $0x60] sm:$0xff] %vm2175_vm1, %v6852_v53  ;;  %v1879_v1 = vsel %vm1877_vm9, %v1878_v2, %v1876_v49 }
 0x286   : > { %5213 = vmatmul.msk.f32.gmra.mxu2 %vm2577_vm4, %v1879_v1  ;;  %v1884_v63 = vsub.f32 1.5, %v1883_v48 }
 0x287   : > { %v5474_v55 = vpop.eup %5473 }
 0x288   : > { %v1893_v45 = vmul.f32 %v5474_v55, %v6841_v60  ;;  %v6865_v7 = vpop.f32.mrf.mxu1  ;;  %v2424_v19 = vpop.f32.mrf.mxu0  ;;  %v1885_v14 = vmul.f32 %v5472_v41, %v1884_v63  ;;  %v1890_v41 = vand.u32 2147483648, %v6814_v8 }
 0x289   : > { %5475 = vrsqrt.f32 %v6865_v7  ;;  %v2827_v38 = vadd.f32 %v6519_v5, %v2424_v19  ;;  %v6872_v0 = vpop.f32.mrf.mxu2  ;;  %vm1911_vm13 = vcmp.eq.f32.partialorder %v6865_v7, inf  ;;  %vm1913_vm14 = vcmp.eq.f32.partialorder %v6865_v7, 0.0 }
 0x28a   : > { %v1886_v2 = vmul.f32 %v1885_v14, %v6814_v8  ;;  %v1894_v49 = vmul.f32 %v5474_v55, %v1893_v45 }
 0x28b   : > { %v6876_v48 = vadd.f32 %v6541_v50, %v2827_v38  ;;  %5104 = vmatmul.msk.f32.gmra.mxu1 %vm938_vm2, %v931_v17  ;;  %5134 = vmatmul.msk.f32.gmra.mxu0 %vm2175_vm1, %v2138_v26  ;;  %v2139_v26 = vld [vmem:[%s5875_s15 + $0xf0] sm:$0xff]  ;;  %vm1899_vm2 = vcmp.eq.f32.partialorder %v6841_v60, inf }
 0x28c   : > { %v1888_v1 = vsel %vm1887_vm10, %v6814_v8, %v1886_v2  ;;  %v1895_v5 = vmul.f32 0.5, %v1894_v49 }
 0x28d   : > { %7972 = vst [vmem:[#allocation82_spill] sm:$0xff] %v6876_v48  ;;  %v1891_v14 = vsel %vm1889_vm11, %v1890_v41, %v1888_v1  ;;  %v1902_v1 = vand.u32 2147483648, %v6841_v60 }
 0x28e   : > { %4683 = vst.msk [vmem:[%s6557_s14 + $0x68] sm:$0xff] %vm2175_vm1, %v6876_v48  ;;  %5214 = vmatmul.msk.f32.gmra.mxu2 %vm2577_vm4, %v1891_v14  ;;  %v1896_v63 = vsub.f32 1.5, %v1895_v5 }
 0x28f   : > { %v5476_v45 = vpop.eup %5475 }
 0x290   : > { %v1292_v19 = vpop.f32.mrf.mxu1  ;;  %v2427_v17 = vpop.f32.mrf.mxu0  ;;  %v1897_v38 = vmul.f32 %v5474_v55, %v1896_v63  ;;  %v1905_v42 = vmul.f32 %v5476_v45, %v6865_v7 }
 0x291   : > { %5477 = vrsqrt.f32 %v1292_v19  ;;  %v2830_v2 = vadd.f32 %v6533_v47, %v2427_v17  ;;  %v6891_v8 = vpop.f32.mrf.mxu2  ;;  %vm1923_vm15 = vcmp.eq.f32.partialorder %v1292_v19, inf  ;;  %vm1925_vm3 = vcmp.eq.f32.partialorder %v1292_v19, 0.0 }
 0x292   : > { %v1898_v49 = vmul.f32 %v1897_v38, %v6841_v60  ;;  %v1906_v48 = vmul.f32 %v5476_v45, %v1905_v42 }
 0x293   : > { %v6895_v41 = vadd.f32 %v6541_v50, %v2830_v2  ;;  %5135 = vmatmul.msk.f32.vlgmr.msra.gmra.mxu1 %vm2175_vm1, %v2139_v26 }
 0x294   : > { %v1900_v55 = vsel %vm1899_vm2, %v6841_v60, %v1898_v49  ;;  %v1907_v5 = vmul.f32 0.5, %v1906_v48 }
 0x295   : > { %4684 = vst.msk [vmem:[%s6557_s14 + $0x70] sm:$0xff] %vm2175_vm1, %v6895_v41  ;;  %v1903_v47 = vsel %vm1901_vm12, %v1902_v1, %v1900_v55  ;;  %v1914_v55 = vand.u32 2147483648, %v6865_v7 }
 0x296   : > { %5215 = vmatmul.msk.f32.gmra.mxu2 %vm2577_vm4, %v1903_v47  ;;  %v1908_v42 = vsub.f32 1.5, %v1907_v5 }
 0x297   : > { %v5478_v14 = vpop.eup %5477 }
 0x298   : > { %v6906_v63 = vpop.f32.mrf.mxu1  ;;  %v2430_v17 = vpop.f32.mrf.mxu0  ;;  %v1909_v26 = vmul.f32 %v5476_v45, %v1908_v42  ;;  %v1917_v38 = vmul.f32 %v5478_v14, %v1292_v19 }
 0x299   : > { %5479 = vrsqrt.f32 %v6906_v63  ;;  %v2833_v2 = vadd.f32 %v6551_v11, %v2430_v17  ;;  %v6910_v60 = vpop.f32.mrf.mxu2  ;;  %vm1935_vm5 = vcmp.eq.f32.partialorder %v6906_v63, inf  ;;  %vm1937_vm6 = vcmp.eq.f32.partialorder %v6906_v63, 0.0 }
 0x29a   : > { %v1910_v48 = vmul.f32 %v1909_v26, %v6865_v7  ;;  %v1918_v49 = vmul.f32 %v5478_v14, %v1917_v38 }
 0x29b   : > { %v6914_v1 = vadd.f32 %v6541_v50, %v2833_v2 }
 0x29c   : > { %v1912_v5 = vsel %vm1911_vm13, %v6865_v7, %v1910_v48  ;;  %v1919_v45 = vmul.f32 0.5, %v1918_v49 }
 0x29d   : > { %7973 = vst [vmem:[#allocation83_spill] sm:$0xff] %v6914_v1  ;;  %v1915_v11 = vsel %vm1913_vm14, %v1914_v55, %v1912_v5 }
 0x29e   : > { %4685 = vst.msk [vmem:[%s6557_s14 + $0x78] sm:$0xff] %vm2175_vm1, %v6914_v1  ;;  %5216 = vmatmul.msk.f32.vlgmr.msra.gmra.mxu3 %vm2577_vm4, %v1915_v11  ;;  %v1920_v47 = vsub.f32 1.5, %v1919_v45  ;;  %v1926_v11 = vand.u32 2147483648, %v1292_v19 }
 0x29f   : > { %v5480_v42 = vpop.eup %5479 }
 0x2a0   : > { %v6924_v17 = vpop.f32.mrf.mxu1  ;;  %v2433_v26 = vpop.f32.mrf.mxu0  ;;  %v1921_v38 = vmul.f32 %v5478_v14, %v1920_v47  ;;  %v1929_v2 = vmul.f32 %v5480_v42, %v6906_v63 }
 0x2a1   : > { %5481 = vrsqrt.f32 %v6924_v17  ;;  %v2836_v7 = vadd.f32 %v6581_v25, %v2433_v26  ;;  %v2880_v48 = vpop.f32.mrf.mxu2  ;;  %vm1947_vm7 = vcmp.eq.f32.partialorder %v6924_v17, inf  ;;  %vm1949_vm8 = vcmp.eq.f32.partialorder %v6924_v17, 0.0 }
 0x2a2   : > { %v2881_v49 = vadd.f32 %v2880_v48, %v5999_v62  ;;  %v1922_v55 = vmul.f32 %v1921_v38, %v1292_v19  ;;  %v1930_v5 = vmul.f32 %v5480_v42, %v1929_v2 }
 0x2a3   : > { %v6931_v45 = vadd.f32 %v6541_v50, %v2836_v7 }
 0x2a4   : > { %v6934_v1 = vadd.f32 %v6541_v50, %v2881_v49  ;;  %v1924_v14 = vsel %vm1923_vm15, %v1292_v19, %v1922_v55  ;;  %v1931_v47 = vmul.f32 0.5, %v1930_v5 }
 0x2a5   : > { %4686 = vst.msk [vmem:[%s6557_s14 + $0x80] sm:$0xff] %vm2175_vm1, %v6931_v45  ;;  %v1927_v25 = vsel %vm1925_vm3, %v1926_v11, %v1924_v14 }
 0x2a6   : > { %4701 = vst.msk [vmem:[%s6557_s14 + $0xf8] sm:$0xff] %vm2175_vm1, %v6934_v1  ;;  %5217 = vmatmul.msk.f32.gmra.mxu3 %vm2577_vm4, %v1927_v25  ;;  %v1932_v62 = vsub.f32 1.5, %v1931_v47 }
 0x2a7   : > { %v5482_v26 = vpop.eup %5481 }
 0x2a8   : > { %v6943_v38 = vpop.f32.mrf.mxu1  ;;  %v2436_v2 = vpop.f32.mrf.mxu0  ;;  %v1933_v7 = vmul.f32 %v5480_v42, %v1932_v62  ;;  %v1941_v48 = vmul.f32 %v5482_v26, %v6924_v17  ;;  %v1938_v42 = vand.u32 2147483648, %v6906_v63 }
 0x2a9   : > { %5483 = vrsqrt.f32 %v6943_v38  ;;  %v2839_v19 = vadd.f32 %v6605_v23, %v2436_v2  ;;  %v2883_v49 = vpop.f32.mrf.mxu2  ;;  %vm1959_vm9 = vcmp.eq.f32.partialorder %v6943_v38, inf  ;;  %vm1961_vm10 = vcmp.eq.f32.partialorder %v6943_v38, 0.0 }
 0x2aa   : > { %v2884_v55 = vadd.f32 %v2883_v49, %v6012_v4  ;;  %v1934_v5 = vmul.f32 %v1933_v7, %v6906_v63  ;;  %v1942_v11 = vmul.f32 %v5482_v26, %v1941_v48 }
 0x2ab   : > { %v6951_v14 = vadd.f32 %v6541_v50, %v2839_v19 }
 0x2ac   : > { %v6956_v47 = vadd.f32 %v6541_v50, %v2884_v55  ;;  %v1936_v25 = vsel %vm1935_vm5, %v6906_v63, %v1934_v5  ;;  %v1943_v23 = vmul.f32 0.5, %v1942_v11 }
 0x2ad   : > { %4687 = vst.msk [vmem:[%s6557_s14 + $0x88] sm:$0xff] %vm2175_vm1, %v6951_v14  ;;  %v1939_v4 = vsel %vm1937_vm6, %v1938_v42, %v1936_v25 }
 0x2ae   : > { %4702 = vst.msk [vmem:[%s6557_s14 + $0x100] sm:$0xff] %vm2175_vm1, %v6956_v47  ;;  %5218 = vmatmul.msk.f32.gmra.mxu3 %vm2577_vm4, %v1939_v4  ;;  %v1944_v62 = vsub.f32 1.5, %v1943_v23 }
 0x2af   : > { %v5484_v2 = vpop.eup %5483 }
 0x2b0   : > { %v6967_v7 = vpop.f32.mrf.mxu1  ;;  %v2439_v48 = vpop.f32.mrf.mxu0  ;;  %v1945_v19 = vmul.f32 %v5482_v26, %v1944_v62  ;;  %v1953_v49 = vmul.f32 %v5484_v2, %v6943_v38  ;;  %v1950_v26 = vand.u32 2147483648, %v6924_v17 }
 0x2b1   : > { %5485 = vrsqrt.f32 %v6967_v7  ;;  %v2842_v63 = vadd.f32 %v6629_v31, %v2439_v48  ;;  %v2886_v55 = vpop.f32.mrf.mxu2  ;;  %vm1971_vm11 = vcmp.eq.f32.partialorder %v6967_v7, inf  ;;  %vm1973_vm2 = vcmp.eq.f32.partialorder %v6967_v7, 0.0 }
 0x2b2   : > { %v2887_v5 = vadd.f32 %v2886_v55, %v6025_v10  ;;  %v1946_v11 = vmul.f32 %v1945_v19, %v6924_v17  ;;  %v1954_v42 = vmul.f32 %v5484_v2, %v1953_v49 }
 0x2b3   : > { %v6975_v25 = vadd.f32 %v6541_v50, %v2842_v63 }
 0x2b4   : > { %v6980_v23 = vadd.f32 %v6541_v50, %v2887_v5  ;;  %v1948_v4 = vsel %vm1947_vm7, %v6924_v17, %v1946_v11  ;;  %v1955_v31 = vmul.f32 0.5, %v1954_v42 }
 0x2b5   : > { %4688 = vst.msk [vmem:[%s6557_s14 + $0x90] sm:$0xff] %vm2175_vm1, %v6975_v25  ;;  %v1951_v10 = vsel %vm1949_vm8, %v1950_v26, %v1948_v4 }
 0x2b6   : > { %4703 = vst.msk [vmem:[%s6557_s14 + $0x108] sm:$0xff] %vm2175_vm1, %v6980_v23  ;;  %5219 = vmatmul.msk.f32.gmra.mxu3 %vm2577_vm4, %v1951_v10  ;;  %v1956_v62 = vsub.f32 1.5, %v1955_v31 }
 0x2b7   : > { %v5486_v48 = vpop.eup %5485 }
 0x2b8   : > { %v6991_v19 = vpop.f32.mrf.mxu1  ;;  %v2442_v49 = vpop.f32.mrf.mxu0  ;;  %v1957_v63 = vmul.f32 %v5484_v2, %v1956_v62  ;;  %v1965_v55 = vmul.f32 %v5486_v48, %v6967_v7  ;;  %v1962_v2 = vand.u32 2147483648, %v6943_v38 }
 0x2b9   : > { %5487 = vrsqrt.f32 %v6991_v19  ;;  %v2845_v17 = vadd.f32 %v6653_v61, %v2442_v49  ;;  %v2889_v5 = vpop.f32.mrf.mxu2  ;;  %vm1983_vm12 = vcmp.eq.f32.partialorder %v6991_v19, inf  ;;  %vm1985_vm13 = vcmp.eq.f32.partialorder %v6991_v19, 0.0 }
 0x2ba   : > { %v2890_v11 = vadd.f32 %v2889_v5, %v6038_v16  ;;  %v1958_v42 = vmul.f32 %v1957_v63, %v6943_v38  ;;  %v1966_v26 = vmul.f32 %v5486_v48, %v1965_v55 }
 0x2bb   : > { %v6999_v4 = vadd.f32 %v6541_v50, %v2845_v17 }
 0x2bc   : > { %v7004_v31 = vadd.f32 %v6541_v50, %v2890_v11  ;;  %v1960_v10 = vsel %vm1959_vm9, %v6943_v38, %v1958_v42  ;;  %v1967_v61 = vmul.f32 0.5, %v1966_v26 }
 0x2bd   : > { %4689 = vst.msk [vmem:[%s6557_s14 + $0x98] sm:$0xff] %vm2175_vm1, %v6999_v4  ;;  %v1963_v16 = vsel %vm1961_vm10, %v1962_v2, %v1960_v10 }
 0x2be   : > { %4704 = vst.msk [vmem:[%s6557_s14 + $0x110] sm:$0xff] %vm2175_vm1, %v7004_v31  ;;  %5220 = vmatmul.msk.f32.gmra.mxu3 %vm2577_vm4, %v1963_v16  ;;  %v1968_v62 = vsub.f32 1.5, %v1967_v61 }
 0x2bf   : > { %v5488_v49 = vpop.eup %5487 }
 0x2c0   : > { %v7015_v63 = vpop.f32.mrf.mxu1  ;;  %v2445_v55 = vpop.f32.mrf.mxu0  ;;  %v1969_v17 = vmul.f32 %v5486_v48, %v1968_v62  ;;  %v1977_v5 = vmul.f32 %v5488_v49, %v6991_v19  ;;  %v1974_v48 = vand.u32 2147483648, %v6967_v7 }
 0x2c1   : > { %5489 = vrsqrt.f32 %v7015_v63  ;;  %v2848_v38 = vadd.f32 %v6677_v3, %v2445_v55  ;;  %v2892_v11 = vpop.f32.mrf.mxu2  ;;  %v3047_v55 = vld [vmem:[%s7822_s7] sm:$0xff]  ;;  %vm1995_vm14 = vcmp.eq.f32.partialorder %v7015_v63, inf  ;;  %vm1997_vm15 = vcmp.eq.f32.partialorder %v7015_v63, 0.0 }
 0x2c2   : > { %v2893_v42 = vadd.f32 %v2892_v11, %v6051_v22  ;;  %v1970_v26 = vmul.f32 %v1969_v17, %v6967_v7  ;;  %v1978_v2 = vmul.f32 %v5488_v49, %v1977_v5  ;;  %3260 = vmatpush.msrb.mxu3 %v3047_v55 }
 0x2c3   : > { %v7023_v10 = vadd.f32 %v6541_v50, %v2848_v38 }
 0x2c4   : > { %v7028_v61 = vadd.f32 %v6541_v50, %v2893_v42  ;;  %v1972_v16 = vsel %vm1971_vm11, %v6967_v7, %v1970_v26  ;;  %v1979_v3 = vmul.f32 0.5, %v1978_v2 }
 0x2c5   : > { %4690 = vst.msk [vmem:[%s6557_s14 + $0xa0] sm:$0xff] %vm2175_vm1, %v7023_v10  ;;  %v1975_v22 = vsel %vm1973_vm2, %v1974_v48, %v1972_v16 }
 0x2c6   : > { %4705 = vst.msk [vmem:[%s6557_s14 + $0x118] sm:$0xff] %vm2175_vm1, %v7028_v61  ;;  %5221 = vmatmul.msk.f32.gmra.mxu3 %vm2577_vm4, %v1975_v22  ;;  %v1980_v62 = vsub.f32 1.5, %v1979_v3  ;;  %v7057_v22 = vld [vmem:[%s7821_s6] ss:$0 sm:$0xff] }
 0x2c7   : > { %v5490_v17 = vpop.eup %5489 }
 0x2c8   : > { %v7042_v5 = vpop.f32.mrf.mxu1  ;;  %v2448_v7 = vpop.f32.mrf.mxu0  ;;  %v1981_v38 = vmul.f32 %v5488_v49, %v1980_v62  ;;  %v1989_v11 = vmul.f32 %v5490_v17, %v7015_v63  ;;  %v1986_v49 = vand.u32 2147483648, %v6991_v19 }
 0x2c9   : > { %5491 = vrsqrt.f32 %v7042_v5  ;;  %v2851_v42 = vadd.f32 %v6701_v9, %v2448_v7  ;;  %v2895_v26 = vpop.f32.mrf.mxu2  ;;  %vm2007_vm3 = vcmp.eq.f32.partialorder %v7042_v5, inf  ;;  %vm2009_vm5 = vcmp.eq.f32.partialorder %v7042_v5, 0.0 }
 0x2ca   : > { %v2896_v2 = vadd.f32 %v2895_v26, %v6064_v28  ;;  %v1982_v48 = vmul.f32 %v1981_v38, %v6991_v19  ;;  %v1990_v16 = vmul.f32 %v5490_v17, %v1989_v11 }
 0x2cb   : > { %v7050_v3 = vadd.f32 %v6541_v50, %v2851_v42 }
 0x2cc   : > { %v7060_v9 = vadd.f32 %v7057_v22, %v2896_v2  ;;  %v1984_v28 = vsel %vm1983_vm12, %v6991_v19, %v1982_v48  ;;  %v1991_v62 = vmul.f32 0.5, %v1990_v16 }
 0x2cd   : > { %4691 = vst.msk [vmem:[%s6557_s14 + $0xa8] sm:$0xff] %vm2175_vm1, %v7050_v3  ;;  %v1987_v50 = vsel %vm1985_vm13, %v1986_v49, %v1984_v28 }
 0x2ce   : > { %4706 = vst.msk [vmem:[%s6557_s14 + $0x120] sm:$0xff] %vm2175_vm1, %v7060_v9  ;;  %5222 = vmatmul.msk.f32.gmra.mxu3 %vm2577_vm4, %v1987_v50  ;;  %v1992_v55 = vsub.f32 1.5, %v1991_v62 }
 0x2cf   : > { %v5492_v7 = vpop.eup %5491 }
 0x2d0   : > { %v7071_v38 = vpop.f32.mrf.mxu1  ;;  %v2451_v11 = vpop.f32.mrf.mxu0  ;;  %v1993_v42 = vmul.f32 %v5490_v17, %v1992_v55  ;;  %v2001_v26 = vmul.f32 %v5492_v7, %v7042_v5  ;;  %v1998_v17 = vand.u32 2147483648, %v7015_v63 }
 0x2d1   : > { %5493 = vrsqrt.f32 %v7071_v38  ;;  %v2854_v19 = vadd.f32 %v6725_v15, %v2451_v11  ;;  %v2898_v2 = vpop.f32.mrf.mxu2  ;;  %vm2019_vm6 = vcmp.eq.f32.partialorder %v7071_v38, inf  ;;  %vm2021_vm7 = vcmp.eq.f32.partialorder %v7071_v38, 0.0 }
 0x2d2   : > { %v2899_v48 = vadd.f32 %v2898_v2, %v6077_v34  ;;  %v1994_v16 = vmul.f32 %v1993_v42, %v7015_v63  ;;  %v2002_v49 = vmul.f32 %v5492_v7, %v2001_v26 }
 0x2d3   : > { %v7079_v28 = vadd.f32 %v7057_v22, %v2854_v19 }
 0x2d4   : > { %v7084_v62 = vadd.f32 %v7057_v22, %v2899_v48  ;;  %v1996_v50 = vsel %vm1995_vm14, %v7015_v63, %v1994_v16  ;;  %v2003_v15 = vmul.f32 0.5, %v2002_v49 }
 0x2d5   : > { %4692 = vst.msk [vmem:[%s6557_s14 + $0xb0] sm:$0xff] %vm2175_vm1, %v7079_v28  ;;  %v1999_v34 = vsel %vm1997_vm15, %v1998_v17, %v1996_v50 }
 0x2d6   : > { %4707 = vst.msk [vmem:[%s6557_s14 + $0x128] sm:$0xff] %vm2175_vm1, %v7084_v62  ;;  %5223 = vmatmul.msk.f32.gmra.mxu3 %vm2577_vm4, %v1999_v34  ;;  %v2004_v55 = vsub.f32 1.5, %v2003_v15 }
 0x2d7   : > { %v5494_v11 = vpop.eup %5493 }
 0x2d8   : > { %v7095_v42 = vpop.f32.mrf.mxu1  ;;  %v2454_v26 = vpop.f32.mrf.mxu0  ;;  %v2005_v19 = vmul.f32 %v5492_v7, %v2004_v55  ;;  %v2013_v2 = vmul.f32 %v5494_v11, %v7071_v38  ;;  %v2010_v7 = vand.u32 2147483648, %v7042_v5 }
 0x2d9   : > { %5495 = vrsqrt.f32 %v7095_v42  ;;  %v2857_v63 = vadd.f32 %v6749_v21, %v2454_v26  ;;  %v2901_v48 = vpop.f32.mrf.mxu2  ;;  %vm2031_vm8 = vcmp.eq.f32.partialorder %v7095_v42, inf  ;;  %vm2033_vm9 = vcmp.eq.f32.partialorder %v7095_v42, 0.0 }
 0x2da   : > { %v2902_v16 = vadd.f32 %v2901_v48, %v6090_v40  ;;  %v2006_v49 = vmul.f32 %v2005_v19, %v7042_v5  ;;  %v2014_v17 = vmul.f32 %v5494_v11, %v2013_v2 }
 0x2db   : > { %v7103_v50 = vadd.f32 %v7057_v22, %v2857_v63 }
 0x2dc   : > { %v7108_v15 = vadd.f32 %v7057_v22, %v2902_v16  ;;  %v2008_v34 = vsel %vm2007_vm3, %v7042_v5, %v2006_v49  ;;  %v2015_v21 = vmul.f32 0.5, %v2014_v17 }
 0x2dd   : > { %4693 = vst.msk [vmem:[%s6557_s14 + $0xb8] sm:$0xff] %vm2175_vm1, %v7103_v50  ;;  %v2011_v40 = vsel %vm2009_vm5, %v2010_v7, %v2008_v34 }
 0x2de   : > { %4708 = vst.msk [vmem:[%s6557_s14 + $0x130] sm:$0xff] %vm2175_vm1, %v7108_v15  ;;  %5224 = vmatmul.msk.f32.gmra.mxu3 %vm2577_vm4, %v2011_v40  ;;  %v2016_v55 = vsub.f32 1.5, %v2015_v21 }
 0x2df   : > { %v5496_v26 = vpop.eup %5495 }
 0x2e0   : > { %v7119_v19 = vpop.f32.mrf.mxu1  ;;  %v2457_v2 = vpop.f32.mrf.mxu0  ;;  %v2017_v63 = vmul.f32 %v5494_v11, %v2016_v55  ;;  %v2025_v48 = vmul.f32 %v5496_v26, %v7095_v42  ;;  %v2022_v11 = vand.u32 2147483648, %v7071_v38 }
 0x2e1   : > { %5497 = vrsqrt.f32 %v7119_v19  ;;  %v2860_v5 = vadd.f32 %v6773_v27, %v2457_v2  ;;  %v2904_v16 = vpop.f32.mrf.mxu2  ;;  %vm2043_vm10 = vcmp.eq.f32.partialorder %v7119_v19, inf  ;;  %vm2045_vm11 = vcmp.eq.f32.partialorder %v7119_v19, 0.0 }
 0x2e2   : > { %v2905_v49 = vadd.f32 %v2904_v16, %v6103_v46  ;;  %v2018_v17 = vmul.f32 %v2017_v63, %v7071_v38  ;;  %v2026_v7 = vmul.f32 %v5496_v26, %v2025_v48 }
 0x2e3   : > { %v7127_v34 = vadd.f32 %v7057_v22, %v2860_v5 }
 0x2e4   : > { %v7132_v21 = vadd.f32 %v7057_v22, %v2905_v49  ;;  %v2020_v40 = vsel %vm2019_vm6, %v7071_v38, %v2018_v17  ;;  %v2027_v27 = vmul.f32 0.5, %v2026_v7 }
 0x2e5   : > { %4694 = vst.msk [vmem:[%s6557_s14 + $0xc0] sm:$0xff] %vm2175_vm1, %v7127_v34  ;;  %v2023_v46 = vsel %vm2021_vm7, %v2022_v11, %v2020_v40 }
 0x2e6   : > { %4709 = vst.msk [vmem:[%s6557_s14 + $0x138] sm:$0xff] %vm2175_vm1, %v7132_v21  ;;  %5225 = vmatmul.msk.f32.gmra.mxu3 %vm2577_vm4, %v2023_v46  ;;  %v2028_v55 = vsub.f32 1.5, %v2027_v27 }
 0x2e7   : > { %v5498_v2 = vpop.eup %5497 }
 0x2e8   : > { %v7143_v63 = vpop.f32.mrf.mxu1  ;;  %v2460_v48 = vpop.f32.mrf.mxu0  ;;  %v2029_v5 = vmul.f32 %v5496_v26, %v2028_v55  ;;  %v2037_v16 = vmul.f32 %v5498_v2, %v7119_v19  ;;  %v2034_v26 = vand.u32 2147483648, %v7095_v42 }
 0x2e9   : > { %5499 = vrsqrt.f32 %v7143_v63  ;;  %v2863_v38 = vadd.f32 %v6797_v33, %v2460_v48  ;;  %v2907_v49 = vpop.f32.mrf.mxu2  ;;  %vm2055_vm2 = vcmp.eq.f32.partialorder %v7143_v63, inf  ;;  %vm2057_vm12 = vcmp.eq.f32.partialorder %v7143_v63, 0.0 }
 0x2ea   : > { %v2908_v17 = vadd.f32 %v2907_v49, %v6116_v52  ;;  %v2030_v7 = vmul.f32 %v2029_v5, %v7095_v42  ;;  %v2038_v11 = vmul.f32 %v5498_v2, %v2037_v16 }
 0x2eb   : > { %v7151_v40 = vadd.f32 %v7057_v22, %v2863_v38 }
 0x2ec   : > { %v7156_v27 = vadd.f32 %v7057_v22, %v2908_v17  ;;  %v2032_v46 = vsel %vm2031_vm8, %v7095_v42, %v2030_v7  ;;  %v2039_v33 = vmul.f32 0.5, %v2038_v11 }
 0x2ed   : > { %4695 = vst.msk [vmem:[%s6557_s14 + $0xc8] sm:$0xff] %vm2175_vm1, %v7151_v40  ;;  %v2035_v52 = vsel %vm2033_vm9, %v2034_v26, %v2032_v46 }
 0x2ee   : > { %4710 = vst.msk [vmem:[%s6557_s14 + $0x140] sm:$0xff] %vm2175_vm1, %v7156_v27  ;;  %5226 = vmatmul.msk.f32.gmra.mxu3 %vm2577_vm4, %v2035_v52  ;;  %v2040_v55 = vsub.f32 1.5, %v2039_v33 }
 0x2ef   : > { %v5500_v48 = vpop.eup %5499 }
 0x2f0   : > { %v7167_v5 = vpop.f32.mrf.mxu1  ;;  %v2463_v16 = vpop.f32.mrf.mxu0  ;;  %v2041_v38 = vmul.f32 %v5498_v2, %v2040_v55  ;;  %v2049_v49 = vmul.f32 %v5500_v48, %v7143_v63  ;;  %v2046_v2 = vand.u32 2147483648, %v7119_v19 }
 0x2f1   : > { %5501 = vrsqrt.f32 %v7167_v5  ;;  %v2866_v42 = vadd.f32 %v6821_v39, %v2463_v16  ;;  %v2910_v17 = vpop.f32.mrf.mxu2  ;;  %vm2067_vm13 = vcmp.eq.f32.partialorder %v7167_v5, inf  ;;  %vm2069_vm14 = vcmp.eq.f32.partialorder %v7167_v5, 0.0 }
 0x2f2   : > { %v2911_v7 = vadd.f32 %v2910_v17, %v6127_v58  ;;  %v2042_v11 = vmul.f32 %v2041_v38, %v7119_v19  ;;  %v2050_v26 = vmul.f32 %v5500_v48, %v2049_v49 }
 0x2f3   : > { %v7175_v46 = vadd.f32 %v7057_v22, %v2866_v42 }
 0x2f4   : > { %v7180_v33 = vadd.f32 %v7057_v22, %v2911_v7  ;;  %v2044_v52 = vsel %vm2043_vm10, %v7119_v19, %v2042_v11  ;;  %v2051_v39 = vmul.f32 0.5, %v2050_v26 }
 0x2f5   : > { %4696 = vst.msk [vmem:[%s6557_s14 + $0xd0] sm:$0xff] %vm2175_vm1, %v7175_v46  ;;  %v2047_v58 = vsel %vm2045_vm11, %v2046_v2, %v2044_v52 }
 0x2f6   : > { %4711 = vst.msk [vmem:[%s6557_s14 + $0x148] sm:$0xff] %vm2175_vm1, %v7180_v33  ;;  %5227 = vmatmul.msk.f32.gmra.mxu3 %vm2577_vm4, %v2047_v58  ;;  %v2052_v55 = vsub.f32 1.5, %v2051_v39 }
 0x2f7   : > { %v5502_v16 = vpop.eup %5501 }
 0x2f8   : > { %v7191_v38 = vpop.f32.mrf.mxu1  ;;  %v2466_v49 = vpop.f32.mrf.mxu0  ;;  %v2053_v42 = vmul.f32 %v5500_v48, %v2052_v55  ;;  %v2061_v17 = vmul.f32 %v5502_v16, %v7167_v5  ;;  %v2058_v48 = vand.u32 2147483648, %v7143_v63 }
 0x2f9   : > { %5503 = vrsqrt.f32 %v7191_v38  ;;  %v2869_v19 = vadd.f32 %v6848_v51, %v2466_v49  ;;  %v2913_v7 = vpop.f32.mrf.mxu2  ;;  %vm2079_vm15 = vcmp.eq.f32.partialorder %v7191_v38, inf  ;;  %vm2081_vm3 = vcmp.eq.f32.partialorder %v7191_v38, 0.0 }
 0x2fa   : > { %v2914_v11 = vadd.f32 %v2913_v7, %v6140_v6  ;;  %v2054_v26 = vmul.f32 %v2053_v42, %v7143_v63  ;;  %v2062_v2 = vmul.f32 %v5502_v16, %v2061_v17 }
 0x2fb   : > { %v7199_v52 = vadd.f32 %v7057_v22, %v2869_v19 }
 0x2fc   : > { %v7204_v39 = vadd.f32 %v7057_v22, %v2914_v11  ;;  %v2056_v58 = vsel %vm2055_vm2, %v7143_v63, %v2054_v26  ;;  %v2063_v51 = vmul.f32 0.5, %v2062_v2 }
 0x2fd   : > { %4697 = vst.msk [vmem:[%s6557_s14 + $0xd8] sm:$0xff] %vm2175_vm1, %v7199_v52  ;;  %v2059_v6 = vsel %vm2057_vm12, %v2058_v48, %v2056_v58 }
 0x2fe   : > { %4712 = vst.msk [vmem:[%s6557_s14 + $0x150] sm:$0xff] %vm2175_vm1, %v7204_v39  ;;  %5228 = vmatmul.msk.f32.gmra.mxu3 %vm2577_vm4, %v2059_v6  ;;  %v2064_v55 = vsub.f32 1.5, %v2063_v51 }
 0x2ff   : > { %v5504_v49 = vpop.eup %5503 }
 0x300   : > { %v7215_v42 = vpop.f32.mrf.mxu1  ;;  %v2469_v17 = vpop.f32.mrf.mxu0  ;;  %v2065_v19 = vmul.f32 %v5502_v16, %v2064_v55  ;;  %v2073_v7 = vmul.f32 %v5504_v49, %v7191_v38  ;;  %v2070_v16 = vand.u32 2147483648, %v7167_v5 }
 0x301   : > { %5505 = vrsqrt.f32 %v7215_v42  ;;  %v2872_v63 = vadd.f32 %v6872_v0, %v2469_v17  ;;  %v2916_v11 = vpop.f32.mrf.mxu2  ;;  %vm2091_vm5 = vcmp.eq.f32.partialorder %v7215_v42, inf  ;;  %vm2093_vm6 = vcmp.eq.f32.partialorder %v7215_v42, 0.0 }
 0x302   : > { %v2917_v26 = vadd.f32 %v2916_v11, %v6153_v18  ;;  %v2066_v2 = vmul.f32 %v2065_v19, %v7167_v5  ;;  %v2074_v48 = vmul.f32 %v5504_v49, %v2073_v7 }
 0x303   : > { %v7223_v58 = vadd.f32 %v7057_v22, %v2872_v63 }
 0x304   : > { %v7228_v51 = vadd.f32 %v7057_v22, %v2917_v26  ;;  %v2068_v6 = vsel %vm2067_vm13, %v7167_v5, %v2066_v2  ;;  %v2075_v0 = vmul.f32 0.5, %v2074_v48 }
 0x305   : > { %4698 = vst.msk [vmem:[%s6557_s14 + $0xe0] sm:$0xff] %vm2175_vm1, %v7223_v58  ;;  %v2071_v18 = vsel %vm2069_vm14, %v2070_v16, %v2068_v6 }
 0x306   : > { %4713 = vst.msk [vmem:[%s6557_s14 + $0x158] sm:$0xff] %vm2175_vm1, %v7228_v51  ;;  %5229 = vmatmul.msk.f32.gmra.mxu3 %vm2577_vm4, %v2071_v18  ;;  %v2076_v55 = vsub.f32 1.5, %v2075_v0  ;;  %v2082_v0 = vand.u32 2147483648, %v7191_v38 }
 0x307   : > { %v5506_v17 = vpop.eup %5505 }
 0x308   : > { %v1337_v19 = vpop.f32.mrf.mxu1  ;;  %v2472_v7 = vpop.f32.mrf.mxu0  ;;  %v2077_v63 = vmul.f32 %v5504_v49, %v2076_v55  ;;  %v2085_v11 = vmul.f32 %v5506_v17, %v7215_v42 }
 0x309   : > { %5507 = vrsqrt.f32 %v1337_v19  ;;  %v2875_v5 = vadd.f32 %v6891_v8, %v2472_v7  ;;  %v2919_v26 = vpop.f32.mrf.mxu2  ;;  %vm2103_vm7 = vcmp.eq.f32.partialorder %v1337_v19, inf  ;;  %vm2105_vm8 = vcmp.eq.f32.partialorder %v1337_v19, 0.0 }
 0x30a   : > { %v2920_v2 = vadd.f32 %v2919_v26, %v6166_v30  ;;  %v2078_v48 = vmul.f32 %v2077_v63, %v7191_v38  ;;  %v2086_v16 = vmul.f32 %v5506_v17, %v2085_v11 }
 0x30b   : > { %v7244_v6 = vadd.f32 %v7057_v22, %v2875_v5 }
 0x30c   : > { %v7249_v49 = vadd.f32 %v7057_v22, %v2920_v2  ;;  %v2080_v18 = vsel %vm2079_vm15, %v7191_v38, %v2078_v48  ;;  %v2087_v8 = vmul.f32 0.5, %v2086_v16 }
 0x30d   : > { %4699 = vst.msk [vmem:[%s6557_s14 + $0xe8] sm:$0xff] %vm2175_vm1, %v7244_v6  ;;  %v2083_v30 = vsel %vm2081_vm3, %v2082_v0, %v2080_v18  ;;  %v2094_v18 = vand.u32 2147483648, %v7215_v42 }
 0x30e   : > { %4714 = vst.msk [vmem:[%s6557_s14 + $0x160] sm:$0xff] %vm2175_vm1, %v7249_v49  ;;  %5230 = vmatmul.msk.f32.gmra.mxu3 %vm2577_vm4, %v2083_v30  ;;  %v2088_v55 = vsub.f32 1.5, %v2087_v8 }
 0x30f   : > { %v5508_v7 = vpop.eup %5507 }
 0x310   : > { %v2475_v63 = vpop.f32.mrf.mxu1  ;;  %v2089_v11 = vmul.f32 %v5506_v17, %v2088_v55  ;;  %v2097_v5 = vmul.f32 %v5508_v7, %v1337_v19 }
 0x311   : > { %v2878_v26 = vadd.f32 %v6910_v60, %v2475_v63  ;;  %v2922_v38 = vpop.f32.mrf.mxu2 }
 0x312   : > { %v2923_v2 = vadd.f32 %v2922_v38, %v6182_v43  ;;  %v2090_v48 = vmul.f32 %v2089_v11, %v7215_v42  ;;  %v2098_v16 = vmul.f32 %v5508_v7, %v2097_v5 }
 0x313   : > { %v7264_v0 = vadd.f32 %v7057_v22, %v2878_v26 }
 0x314   : > { %v7269_v8 = vadd.f32 %v7057_v22, %v2923_v2  ;;  %v2092_v17 = vsel %vm2091_vm5, %v7215_v42, %v2090_v48  ;;  %v2099_v60 = vmul.f32 0.5, %v2098_v16  ;;  %v2106_v42 = vand.u32 2147483648, %v1337_v19  ;;  %v7974_v16 = vld [vmem:[#allocation34_spill] sm:$0xff] }
 0x315   : > { %4700 = vst.msk [vmem:[%s6557_s14 + $0xf0] sm:$0xff] %vm2175_vm1, %v7264_v0  ;;  %v2095_v43 = vsel %vm2093_vm6, %v2094_v18, %v2092_v17 }
 0x316   : > { %4715 = vst.msk [vmem:[%s6557_s14 + $0x168] sm:$0xff] %vm2175_vm1, %v7269_v8  ;;  %5231 = vmatmul.msk.f32.gmra.mxu3 %vm2577_vm4, %v2095_v43  ;;  %v2100_v30 = vsub.f32 1.5, %v2099_v60  ;;  %v7975_v60 = vld [vmem:[#allocation36_spill] sm:$0xff] }
 0x318   : > { %v2101_v55 = vmul.f32 %v5508_v7, %v2100_v30 }
 0x319   : > { %v2925_v63 = vpop.f32.mrf.mxu2 }
 0x31a   : > { %v2926_v11 = vadd.f32 %v2925_v63, %v6193_v54  ;;  %v2102_v5 = vmul.f32 %v2101_v55, %v1337_v19  ;;  %v7976_v55 = vld [vmem:[#allocation38_spill] sm:$0xff] }
 0x31c   : > { %v7282_v26 = vadd.f32 %v7057_v22, %v2926_v11  ;;  %v2104_v38 = vsel %vm2103_vm7, %v1337_v19, %v2102_v5  ;;  %v7977_v5 = vld [vmem:[#allocation40_spill] sm:$0xff] }
 0x31d   : > { %v2107_v2 = vsel %vm2105_vm8, %v2106_v42, %v2104_v38 }
 0x31e   : > { %4716 = vst.msk [vmem:[%s6557_s14 + $0x170] sm:$0xff] %vm2175_vm1, %v7282_v26  ;;  %5232 = vmatmul.msk.f32.gmra.mxu3 %vm2577_vm4, %v2107_v2  ;;  %v7978_v2 = vld [vmem:[#allocation42_spill] sm:$0xff] }
 0x321   : > { %v2928_v7 = vpop.f32.mrf.mxu3 }
 0x322   : > { %v2929_v48 = vadd.f32 %v2928_v7, %v6204_v12 }
 0x324   : > { %v7290_v54 = vadd.f32 %v7057_v22, %v2929_v48 }
 0x326   : > { %4717 = vst.msk [vmem:[%s6557_s14 + $0x178] sm:$0xff] %vm2175_vm1, %v7290_v54  ;;  %5233 = vmatmul.msk.f32.vlgmr.msrb.gmra.mxu3 %vm2175_vm1, %v6561_v29 }
 0x329   : > { %v2931_v19 = vpop.f32.mrf.mxu3 }
 0x32a   : > { %v2932_v18 = vadd.f32 %v2931_v19, %v7974_v16  ;;  %v7979_v19 = vld [vmem:[#allocation44_spill] sm:$0xff] }
 0x32c   : > { %v7299_v17 = vadd.f32 %v7057_v22, %v2932_v18 }
 0x32e   : > { %4718 = vst.msk [vmem:[%s6557_s14 + $0x180] sm:$0xff] %vm2175_vm1, %v7299_v17  ;;  %5234 = vmatmul.msk.f32.gmra.mxu3 %vm2175_vm1, %v6585_v57 }
 0x331   : > { %v2934_v12 = vpop.f32.mrf.mxu3 }
 0x332   : > { %v2935_v43 = vadd.f32 %v2934_v12, %v7975_v60  ;;  %v7980_v12 = vld [vmem:[#allocation46_spill] sm:$0xff] }
 0x334   : > { %v7308_v30 = vadd.f32 %v7057_v22, %v2935_v43 }
 0x336   : > { %4719 = vst.msk [vmem:[%s6557_s14 + $0x188] sm:$0xff] %vm2175_vm1, %v7308_v30  ;;  %5235 = vmatmul.msk.f32.gmra.mxu3 %vm2175_vm1, %v6609_v59 }
 0x339   : > { %v2937_v29 = vpop.f32.mrf.mxu3 }
 0x33a   : > { %v2938_v63 = vadd.f32 %v2937_v29, %v7976_v55  ;;  %v7981_v29 = vld [vmem:[#allocation48_spill] sm:$0xff] }
 0x33c   : > { %v7317_v11 = vadd.f32 %v7057_v22, %v2938_v63 }
 0x33e   : > { %4720 = vst.msk [vmem:[%s6557_s14 + $0x190] sm:$0xff] %vm2175_vm1, %v7317_v11  ;;  %5236 = vmatmul.msk.f32.gmra.mxu3 %vm2175_vm1, %v6633_v35 }
 0x341   : > { %v2940_v57 = vpop.f32.mrf.mxu3 }
 0x342   : > { %v2941_v42 = vadd.f32 %v2940_v57, %v7977_v5  ;;  %v7982_v57 = vld [vmem:[#allocation50_spill] sm:$0xff] }
 0x344   : > { %v7326_v38 = vadd.f32 %v7057_v22, %v2941_v42 }
 0x346   : > { %4721 = vst.msk [vmem:[%s6557_s14 + $0x198] sm:$0xff] %vm2175_vm1, %v7326_v38  ;;  %5237 = vmatmul.msk.f32.gmra.mxu3 %vm2175_vm1, %v6657_v13 }
 0x349   : > { %v2943_v59 = vpop.f32.mrf.mxu3 }
 0x34a   : > { %v2944_v7 = vadd.f32 %v2943_v59, %v7978_v2  ;;  %v7983_v59 = vld [vmem:[#allocation52_spill] sm:$0xff] }
 0x34c   : > { %v7335_v48 = vadd.f32 %v7057_v22, %v2944_v7 }
 0x34e   : > { %4722 = vst.msk [vmem:[%s6557_s14 + $0x1a0] sm:$0xff] %vm2175_vm1, %v7335_v48  ;;  %5238 = vmatmul.msk.f32.gmra.mxu3 %vm2175_vm1, %v6681_v20 }
 0x351   : > { %v2946_v35 = vpop.f32.mrf.mxu3 }
 0x352   : > { %v2947_v16 = vadd.f32 %v2946_v35, %v7979_v19  ;;  %v7984_v35 = vld [vmem:[#allocation54_spill] sm:$0xff] }
 0x354   : > { %v7344_v18 = vadd.f32 %v7057_v22, %v2947_v16 }
 0x356   : > { %4723 = vst.msk [vmem:[%s6557_s14 + $0x1a8] sm:$0xff] %vm2175_vm1, %v7344_v18  ;;  %5239 = vmatmul.msk.f32.gmra.mxu3 %vm2175_vm1, %v6705_v44 }
 0x359   : > { %v2949_v13 = vpop.f32.mrf.mxu3 }
 0x35a   : > { %v2950_v60 = vadd.f32 %v2949_v13, %v7980_v12  ;;  %v7985_v13 = vld [vmem:[#allocation56_spill] sm:$0xff] }
 0x35c   : > { %v7353_v43 = vadd.f32 %v7057_v22, %v2950_v60 }
 0x35e   : > { %4724 = vst.msk [vmem:[%s6557_s14 + $0x1b0] sm:$0xff] %vm2175_vm1, %v7353_v43  ;;  %5240 = vmatmul.msk.f32.gmra.mxu3 %vm2175_vm1, %v6729_v56 }
 0x361   : > { %v2952_v20 = vpop.f32.mrf.mxu3 }
 0x362   : > { %v2953_v55 = vadd.f32 %v2952_v20, %v7981_v29  ;;  %v7986_v20 = vld [vmem:[#allocation59_spill] sm:$0xff] }
 0x364   : > { %v7362_v63 = vadd.f32 %v7057_v22, %v2953_v55 }
 0x366   : > { %4725 = vst.msk [vmem:[%s6557_s14 + $0x1b8] sm:$0xff] %vm2175_vm1, %v7362_v63  ;;  %5241 = vmatmul.msk.f32.gmra.mxu3 %vm2175_vm1, %v6753_v24 }
 0x369   : > { %v2955_v44 = vpop.f32.mrf.mxu3 }
 0x36a   : > { %v2956_v5 = vadd.f32 %v2955_v44, %v7982_v57  ;;  %v7988_v57 = vld [vmem:[#allocation61_spill] sm:$0xff] }
 0x36c   : > { %v7371_v42 = vadd.f32 %v7057_v22, %v2956_v5 }
 0x36e   : > { %4726 = vst.msk [vmem:[%s6557_s14 + $0x1c0] sm:$0xff] %vm2175_vm1, %v7371_v42  ;;  %5242 = vmatmul.msk.f32.gmra.mxu3 %vm2175_vm1, %v6777_v32 }
 0x371   : > { %v2958_v56 = vpop.f32.mrf.mxu3 }
 0x372   : > { %v2959_v2 = vadd.f32 %v2958_v56, %v7983_v59  ;;  %v7989_v59 = vld [vmem:[#allocation63_spill] sm:$0xff] }
 0x374   : > { %v7380_v7 = vadd.f32 %v7057_v22, %v2959_v2 }
 0x376   : > { %4727 = vst.msk [vmem:[%s6557_s14 + $0x1c8] sm:$0xff] %vm2175_vm1, %v7380_v7  ;;  %5243 = vmatmul.msk.f32.gmra.mxu3 %vm2175_vm1, %v6801_v36 }
 0x379   : > { %v2961_v24 = vpop.f32.mrf.mxu3 }
 0x37a   : > { %v2962_v19 = vadd.f32 %v2961_v24, %v7984_v35  ;;  %v7990_v35 = vld [vmem:[#allocation83_spill] sm:$0xff] }
 0x37c   : > { %v7389_v16 = vadd.f32 %v7057_v22, %v2962_v19 }
 0x37e   : > { %4728 = vst.msk [vmem:[%s6557_s14 + $0x1d0] sm:$0xff] %vm2175_vm1, %v7389_v16  ;;  %5244 = vmatmul.msk.f32.gmra.mxu3 %vm2175_vm1, %v6825_v37  ;;  %v7987_v37 = vld [vmem:[#allocation82_spill] sm:$0xff] }
 0x381   : > { %v2964_v32 = vpop.f32.mrf.mxu3 }
 0x382   : > { %v2965_v12 = vadd.f32 %v2964_v32, %v7985_v13  ;;  %v7991_v32 = vld [vmem:[#allocation65_spill] sm:$0xff] }
 0x384   : > { %v7398_v60 = vadd.f32 %v7057_v22, %v2965_v12 }
 0x386   : > { %4729 = vst.msk [vmem:[%s6557_s14 + $0x1d8] sm:$0xff] %vm2175_vm1, %v7398_v60  ;;  %5245 = vmatmul.msk.f32.gmra.mxu3 %vm2175_vm1, %v6852_v53 }
 0x389   : > { %v2967_v36 = vpop.f32.mrf.mxu3 }
 0x38a   : > { %v2968_v29 = vadd.f32 %v2967_v36, %v7986_v20 }
 0x38c   : > { %v7407_v55 = vadd.f32 %v7057_v22, %v2968_v29 }
 0x38e   : > { %4730 = vst.msk [vmem:[%s6557_s14 + $0x1e0] sm:$0xff] %vm2175_vm1, %v7407_v55  ;;  %5246 = vmatmul.msk.f32.gmra.mxu3 %vm2175_vm1, %v7987_v37 }
 0x391   : > { %v2970_v44 = vpop.f32.mrf.mxu3 }
 0x392   : > { %v2971_v5 = vadd.f32 %v2970_v44, %v7988_v57 }
 0x394   : > { %v7416_v56 = vadd.f32 %v7057_v22, %v2971_v5 }
 0x396   : > { %4731 = vst.msk [vmem:[%s6557_s14 + $0x1e8] sm:$0xff] %vm2175_vm1, %v7416_v56  ;;  %5247 = vmatmul.msk.f32.gmra.mxu3 %vm2175_vm1, %v6895_v41  ;;  %v7444_v41 = vld [vmem:[%s7823_s8] ss:$0 sm:$0xff] }
 0x399   : > { %v2973_v53 = vpop.f32.mrf.mxu3 }
 0x39a   : > { %v2974_v2 = vadd.f32 %v2973_v53, %v7989_v59 }
 0x39c   : > { %v7425_v24 = vadd.f32 %v7057_v22, %v2974_v2 }
 0x39e   : > { %4732 = vst.msk [vmem:[%s6557_s14 + $0x1f0] sm:$0xff] %vm2175_vm1, %v7425_v24  ;;  %5248 = vmatmul.msk.f32.gmra.mxu3 %vm2175_vm1, %v7990_v35 }
 0x3a1   : > { %v2976_v19 = vpop.f32.mrf.mxu3 }
 0x3a2   : > { %v2977_v13 = vadd.f32 %v2976_v19, %v7991_v32 }
 0x3a4   : > { %v7434_v12 = vadd.f32 %v7057_v22, %v2977_v13 }
 0x3a6   : > { %4733 = vst.msk [vmem:[%s6557_s14 + $0x1f8] sm:$0xff] %vm2175_vm1, %v7434_v12  ;;  %5249 = vmatmul.msk.f32.gmra.mxu3 %vm2175_vm1, %v6931_v45 }
 0x3a9   : > { %v3262_v36 = vpop.f32.mrf.mxu3 }
 0x3aa   : > { %v3263_v20 = vadd.f32 %v7444_v41, %v3262_v36 }
 0x3ac   : > { %v5297_v29 = vmul.f32 -1.442695, %v3263_v20 }
 0x3ae   : > { %5509 = vpow2.f32 %v5297_v29  ;;  %5250 = vmatmul.msk.f32.gmra.mxu3 %vm2175_vm1, %v6951_v14 }
 0x3b1   : > { %v3265_v22 = vpop.f32.mrf.mxu3 }
 0x3b2   : > { %v3266_v37 = vadd.f32 %v7444_v41, %v3265_v22 }
 0x3b4   : > { %v5510_v44 = vpop.eup %5509  ;;  %v5298_v57 = vmul.f32 -1.442695, %v3266_v37 }
 0x3b5   : > { %v3646_v5 = vadd.f32 1.0, %v5510_v44 }
 0x3b6   : > { %5511 = vpow2.f32 %v5298_v57  ;;  %5251 = vmatmul.msk.f32.gmra.mxu3 %vm2175_vm1, %v6975_v25 }
 0x3b7   : > { %5513 = vrcp.f32 %v3646_v5  ;;  %v3721_v13 = vand.u32 2147483648, %v3646_v5  ;;  %v3719_v25 = vand.u32 2147483647, %v3646_v5  ;;  %vm3715_vm9 = vweird.f32 %v3646_v5 }
 0x3b9   : > { %v3268_v45 = vpop.f32.mrf.mxu3  ;;  %vm3720_vm11 = vcmp.eq.f32.partialorder %v3719_v25, 8.507059e+37 }
 0x3ba   : > { %v3269_v53 = vadd.f32 %v7444_v41, %v3268_v45  ;;  %v3722_v45 = vor.u32 1.1754944e-38, %v3721_v13 }
 0x3bc   : > { %v5512_v59 = vpop.eup %5511  ;;  %v5299_v2 = vmul.f32 -1.442695, %v3269_v53 }
 0x3bd   : > { %v5514_v35 = vpop.eup %5513  ;;  %v3647_v19 = vadd.f32 1.0, %v5512_v59 }
 0x3be   : > { %v3711_v32 = vmul.f32 %v5514_v35, %v3646_v5  ;;  %5515 = vpow2.f32 %v5299_v2  ;;  %5252 = vmatmul.msk.f32.gmra.mxu3 %vm2175_vm1, %v6999_v4  ;;  %vm3716_vm4 = vweird.f32 %v5514_v35  ;;  %v7992_v5 = vld [vmem:[#allocation2_spill] sm:$0xff] }
 0x3bf   : > { %5517 = vrcp.f32 %v3647_v19  ;;  %vm3717_vm10 = vmor %vm3715_vm9, %vm3716_vm4  ;;  %v3736_v13 = vand.u32 2147483648, %v3647_v19  ;;  %vm3730_vm12 = vweird.f32 %v3647_v19 }
 0x3c0   : > { %v3712_v14 = vsub.f32 1.0, %v3711_v32 }
 0x3c1   : > { %v3271_v36 = vpop.f32.mrf.mxu3 }
 0x3c2   : > { %v3713_v20 = vmul.f32 %v5514_v35, %v3712_v14  ;;  %v3272_v29 = vadd.f32 %v7444_v41, %v3271_v36 }
 0x3c4   : > { %v5516_v22 = vpop.eup %5515  ;;  %v3714_v37 = vadd.f32 %v5514_v35, %v3713_v20  ;;  %v5300_v44 = vmul.f32 -1.442695, %v3272_v29  ;;  %v3734_v20 = vand.u32 2147483647, %v3647_v19 }
 0x3c5   : > { %v5518_v57 = vpop.eup %5517  ;;  %v3648_v53 = vadd.f32 1.0, %v5516_v22 }
 0x3c6   : > { %v3718_v59 = vsel %vm3717_vm10, %v5514_v35, %v3714_v37  ;;  %v3726_v4 = vmul.f32 %v5518_v57, %v3647_v19  ;;  %5519 = vpow2.f32 %v5300_v44  ;;  %5253 = vmatmul.msk.f32.gmra.mxu3 %vm2175_vm1, %v7023_v10  ;;  %vm3731_vm2 = vweird.f32 %v5518_v57 }
 0x3c7   : > { %v3723_v2 = vsel %vm3720_vm11, %v3722_v45, %v3718_v59  ;;  %5521 = vrcp.f32 %v3648_v53  ;;  %vm3732_vm13 = vmor %vm3730_vm12, %vm3731_vm2  ;;  %v3737_v44 = vor.u32 1.1754944e-38, %v3736_v13  ;;  %vm3735_vm14 = vcmp.eq.f32.partialorder %v3734_v20, 8.507059e+37 }
 0x3c8   : > { %v4734_v32 = vmul.f32 %v3723_v2, %v7992_v5  ;;  %v3727_v14 = vsub.f32 1.0, %v3726_v4  ;;  %v7993_v5 = vld [vmem:[#allocation4_spill] sm:$0xff]  ;;  %v3749_v13 = vand.u32 2147483647, %v3648_v53  ;;  %vm3745_vm3 = vweird.f32 %v3648_v53 }
 0x3c9   : > { %v3274_v36 = vpop.f32.mrf.mxu3 }
 0x3ca   : > { %4798 = vst.msk [vmem:[%s7462_s25] sm:$0xff] %vm466_vm0, %v4734_v32  ;;  %v3728_v35 = vmul.f32 %v5518_v57, %v3727_v14  ;;  %v3275_v10 = vadd.f32 %v7444_v41, %v3274_v36  ;;  %v3751_v36 = vand.u32 2147483648, %v3648_v53  ;;  %vm3750_vm6 = vcmp.eq.f32.partialorder %v3749_v13, 8.507059e+37 }
 0x3cc   : > { %v5520_v25 = vpop.eup %5519  ;;  %v3729_v29 = vadd.f32 %v5518_v57, %v3728_v35  ;;  %v5301_v22 = vmul.f32 -1.442695, %v3275_v10 }
 0x3cd   : > { %v5522_v37 = vpop.eup %5521  ;;  %v3649_v45 = vadd.f32 1.0, %v5520_v25 }
 0x3ce   : > { %v3733_v59 = vsel %vm3732_vm13, %v5518_v57, %v3729_v29  ;;  %v3741_v4 = vmul.f32 %v5522_v37, %v3648_v53  ;;  %5523 = vpow2.f32 %v5301_v22  ;;  %5254 = vmatmul.msk.f32.gmra.mxu3 %vm2175_vm1, %v7050_v3  ;;  %vm3746_vm15 = vweird.f32 %v5522_v37 }
 0x3cf   : > { %v3738_v2 = vsel %vm3735_vm14, %v3737_v44, %v3733_v59  ;;  %5525 = vrcp.f32 %v3649_v45  ;;  %vm3747_vm5 = vmor %vm3745_vm3, %vm3746_vm15  ;;  %v3752_v29 = vor.u32 1.1754944e-38, %v3751_v36  ;;  %v3764_v36 = vand.u32 2147483647, %v3649_v45 }
 0x3d0   : > { %v4735_v32 = vmul.f32 %v3738_v2, %v7993_v5  ;;  %v3742_v14 = vsub.f32 1.0, %v3741_v4  ;;  %v7994_v2 = vld [vmem:[#allocation6_spill] sm:$0xff]  ;;  %vm3760_vm8 = vweird.f32 %v3649_v45 }
 0x3d1   : > { %v3277_v19 = vpop.f32.mrf.mxu3  ;;  %vm3765_vm9 = vcmp.eq.f32.partialorder %v3764_v36, 8.507059e+37 }
 0x3d2   : > { %4799 = vst.msk [vmem:[%s7462_s25 + $0x8] sm:$0xff] %vm466_vm0, %v4735_v32  ;;  %v3743_v35 = vmul.f32 %v5522_v37, %v3742_v14  ;;  %v3278_v57 = vadd.f32 %v7444_v41, %v3277_v19  ;;  %v3766_v14 = vand.u32 2147483648, %v3649_v45 }
 0x3d4   : > { %v5524_v20 = vpop.eup %5523  ;;  %v3744_v10 = vadd.f32 %v5522_v37, %v3743_v35  ;;  %v5302_v25 = vmul.f32 -1.442695, %v3278_v57 }
 0x3d5   : > { %v5526_v3 = vpop.eup %5525  ;;  %v3650_v22 = vadd.f32 1.0, %v5524_v20  ;;  %v3767_v20 = vor.u32 1.1754944e-38, %v3766_v14 }
 0x3d6   : > { %v3748_v44 = vsel %vm3747_vm5, %v5522_v37, %v3744_v10  ;;  %v3756_v59 = vmul.f32 %v5526_v3, %v3649_v45  ;;  %5527 = vpow2.f32 %v5302_v25  ;;  %5255 = vmatmul.msk.f32.gmra.mxu3 %vm2175_vm1, %v7079_v28  ;;  %vm3761_vm7 = vweird.f32 %v5526_v3 }
 0x3d7   : > { %v3753_v4 = vsel %vm3750_vm6, %v3752_v29, %v3748_v44  ;;  %5529 = vrcp.f32 %v3650_v22  ;;  %vm3762_vm4 = vmor %vm3760_vm8, %vm3761_vm7  ;;  %v3779_v14 = vand.u32 2147483647, %v3650_v22  ;;  %vm3775_vm11 = vweird.f32 %v3650_v22 }
 0x3d8   : > { %v4736_v5 = vmul.f32 %v3753_v4, %v7994_v2  ;;  %v3757_v32 = vsub.f32 1.0, %v3756_v59  ;;  %v7995_v59 = vld [vmem:[#allocation8_spill] sm:$0xff] }
 0x3d9   : > { %v3280_v53 = vpop.f32.mrf.mxu3  ;;  %vm3780_vm12 = vcmp.eq.f32.partialorder %v3779_v14, 8.507059e+37 }
 0x3da   : > { %4800 = vst.msk [vmem:[%s7462_s25 + $0x10] sm:$0xff] %vm466_vm0, %v4736_v5  ;;  %v3758_v19 = vmul.f32 %v5526_v3, %v3757_v32  ;;  %v3281_v37 = vadd.f32 %v7444_v41, %v3280_v53  ;;  %v3781_v5 = vand.u32 2147483648, %v3650_v22 }
 0x3dc   : > { %v5528_v35 = vpop.eup %5527  ;;  %v3759_v13 = vadd.f32 %v5526_v3, %v3758_v19  ;;  %v5303_v57 = vmul.f32 -1.442695, %v3281_v37  ;;  %v3782_v37 = vor.u32 1.1754944e-38, %v3781_v5 }
 0x3dd   : > { %v5530_v28 = vpop.eup %5529  ;;  %v3651_v10 = vadd.f32 1.0, %v5528_v35 }
 0x3de   : > { %v3763_v25 = vsel %vm3762_vm4, %v5526_v3, %v3759_v13  ;;  %v3771_v29 = vmul.f32 %v5530_v28, %v3650_v22  ;;  %5531 = vpow2.f32 %v5303_v57  ;;  %5256 = vmatmul.msk.f32.gmra.mxu3 %vm2175_vm1, %v7103_v50  ;;  %vm3776_vm10 = vweird.f32 %v5530_v28 }
 0x3df   : > { %v3768_v44 = vsel %vm3765_vm9, %v3767_v20, %v3763_v25  ;;  %5533 = vrcp.f32 %v3651_v10  ;;  %vm3777_vm2 = vmor %vm3775_vm11, %vm3776_vm10  ;;  %v7996_v25 = vld [vmem:[#allocation10_spill] sm:$0xff]  ;;  %vm3790_vm14 = vweird.f32 %v3651_v10 }
 0x3e0   : > { %v4737_v4 = vmul.f32 %v3768_v44, %v7995_v59  ;;  %v3772_v2 = vsub.f32 1.0, %v3771_v29  ;;  %v3796_v59 = vand.u32 2147483648, %v3651_v10 }
 0x3e1   : > { %v3283_v45 = vpop.f32.mrf.mxu3 }
 0x3e2   : > { %4801 = vst.msk [vmem:[%s7462_s25 + $0x18] sm:$0xff] %vm466_vm0, %v4737_v4  ;;  %v3773_v32 = vmul.f32 %v5530_v28, %v3772_v2  ;;  %v3284_v3 = vadd.f32 %v7444_v41, %v3283_v45  ;;  %v3794_v2 = vand.u32 2147483647, %v3651_v10  ;;  %v3797_v14 = vor.u32 1.1754944e-38, %v3796_v59 }
 0x3e4   : > { %v5532_v53 = vpop.eup %5531  ;;  %v3774_v19 = vadd.f32 %v5530_v28, %v3773_v32  ;;  %v5304_v36 = vmul.f32 -1.442695, %v3284_v3  ;;  %vm3795_vm3 = vcmp.eq.f32.partialorder %v3794_v2, 8.507059e+37 }
 0x3e5   : > { %v5534_v50 = vpop.eup %5533  ;;  %v3652_v35 = vadd.f32 1.0, %v5532_v53 }
 0x3e6   : > { %v3778_v13 = vsel %vm3777_vm2, %v5530_v28, %v3774_v19  ;;  %v3786_v57 = vmul.f32 %v5534_v50, %v3651_v10  ;;  %5535 = vpow2.f32 %v5304_v36  ;;  %5257 = vmatmul.msk.f32.gmra.mxu3 %vm2175_vm1, %v7127_v34  ;;  %vm3791_vm13 = vweird.f32 %v5534_v50 }
 0x3e7   : > { %v3783_v20 = vsel %vm3780_vm12, %v3782_v37, %v3778_v13  ;;  %5537 = vrcp.f32 %v3652_v35  ;;  %vm3792_vm15 = vmor %vm3790_vm14, %vm3791_vm13  ;;  %v7997_v37 = vld [vmem:[#allocation12_spill] sm:$0xff]  ;;  %vm3805_vm6 = vweird.f32 %v3652_v35 }
 0x3e8   : > { %v4738_v29 = vmul.f32 %v3783_v20, %v7996_v25  ;;  %v3787_v44 = vsub.f32 1.0, %v3786_v57  ;;  %v3811_v20 = vand.u32 2147483648, %v3652_v35 }
 0x3e9   : > { %v3286_v22 = vpop.f32.mrf.mxu3 }
 0x3ea   : > { %4802 = vst.msk [vmem:[%s7462_s25 + $0x20] sm:$0xff] %vm466_vm0, %v4738_v29  ;;  %v3788_v4 = vmul.f32 %v5534_v50, %v3787_v44  ;;  %v3287_v28 = vadd.f32 %v7444_v41, %v3286_v22  ;;  %v3809_v29 = vand.u32 2147483647, %v3652_v35 }
 0x3ec   : > { %v5536_v5 = vpop.eup %5535  ;;  %v3789_v45 = vadd.f32 %v5534_v50, %v3788_v4  ;;  %v5305_v32 = vmul.f32 -1.442695, %v3287_v28  ;;  %v3812_v4 = vor.u32 1.1754944e-38, %v3811_v20  ;;  %vm3810_vm8 = vcmp.eq.f32.partialorder %v3809_v29, 8.507059e+37 }
 0x3ed   : > { %v5538_v34 = vpop.eup %5537  ;;  %v3653_v3 = vadd.f32 1.0, %v5536_v5 }
 0x3ee   : > { %v3793_v53 = vsel %vm3792_vm15, %v5534_v50, %v3789_v45  ;;  %v3801_v19 = vmul.f32 %v5538_v34, %v3652_v35  ;;  %5539 = vpow2.f32 %v5305_v32  ;;  %5258 = vmatmul.msk.f32.gmra.mxu3 %vm2175_vm1, %v7151_v40  ;;  %vm3806_vm5 = vweird.f32 %v5538_v34  ;;  %v7998_v32 = vld [vmem:[#allocation14_spill] sm:$0xff] }
 0x3ef   : > { %v3798_v36 = vsel %vm3795_vm3, %v3797_v14, %v3793_v53  ;;  %5541 = vrcp.f32 %v3653_v3  ;;  %vm3807_vm7 = vmor %vm3805_vm6, %vm3806_vm5  ;;  %vm3820_vm9 = vweird.f32 %v3653_v3 }
 0x3f0   : > { %v4739_v13 = vmul.f32 %v3798_v36, %v7997_v37  ;;  %v3802_v57 = vsub.f32 1.0, %v3801_v19  ;;  %v3826_v19 = vand.u32 2147483648, %v3653_v3  ;;  %v3824_v37 = vand.u32 2147483647, %v3653_v3 }
 0x3f1   : > { %v3289_v10 = vpop.f32.mrf.mxu3 }
 0x3f2   : > { %4803 = vst.msk [vmem:[%s7462_s25 + $0x28] sm:$0xff] %vm466_vm0, %v4739_v13  ;;  %v3803_v25 = vmul.f32 %v5538_v34, %v3802_v57  ;;  %v3290_v50 = vadd.f32 %v7444_v41, %v3289_v10  ;;  %v3827_v10 = vor.u32 1.1754944e-38, %v3826_v19  ;;  %vm3825_vm11 = vcmp.eq.f32.partialorder %v3824_v37, 8.507059e+37 }
 0x3f4   : > { %v5540_v44 = vpop.eup %5539  ;;  %v3804_v59 = vadd.f32 %v5538_v34, %v3803_v25  ;;  %v5306_v22 = vmul.f32 -1.442695, %v3290_v50 }
 0x3f5   : > { %v5542_v40 = vpop.eup %5541  ;;  %v3654_v2 = vadd.f32 1.0, %v5540_v44 }
 0x3f6   : > { %v3808_v28 = vsel %vm3807_vm7, %v5538_v34, %v3804_v59  ;;  %v3816_v5 = vmul.f32 %v5542_v40, %v3653_v3  ;;  %5543 = vpow2.f32 %v5306_v22  ;;  %5259 = vmatmul.msk.f32.gmra.mxu3 %vm2175_vm1, %v7175_v46  ;;  %vm3821_vm4 = vweird.f32 %v5542_v40  ;;  %v7999_v59 = vld [vmem:[#allocation16_spill] sm:$0xff] }
 0x3f7   : > { %v3813_v45 = vsel %vm3810_vm8, %v3812_v4, %v3808_v28  ;;  %5545 = vrcp.f32 %v3654_v2  ;;  %vm3822_vm10 = vmor %vm3820_vm9, %vm3821_vm4  ;;  %v3841_v28 = vand.u32 2147483648, %v3654_v2  ;;  %vm3835_vm12 = vweird.f32 %v3654_v2 }
 0x3f8   : > { %v4740_v14 = vmul.f32 %v3813_v45, %v7998_v32  ;;  %v3817_v53 = vsub.f32 1.0, %v3816_v5  ;;  %v3839_v45 = vand.u32 2147483647, %v3654_v2 }
 0x3f9   : > { %v3292_v35 = vpop.f32.mrf.mxu3  ;;  %v3842_v19 = vor.u32 1.1754944e-38, %v3841_v28 }
 0x3fa   : > { %4804 = vst.msk [vmem:[%s7462_s25 + $0x30] sm:$0xff] %vm466_vm0, %v4740_v14  ;;  %v3818_v36 = vmul.f32 %v5542_v40, %v3817_v53  ;;  %v3293_v34 = vadd.f32 %v7444_v41, %v3292_v35  ;;  %vm3840_vm14 = vcmp.eq.f32.partialorder %v3839_v45, 8.507059e+37 }
 0x3fc   : > { %v5544_v13 = vpop.eup %5543  ;;  %v3819_v57 = vadd.f32 %v5542_v40, %v3818_v36  ;;  %v5307_v20 = vmul.f32 -1.442695, %v3293_v34 }
 0x3fd   : > { %v5546_v46 = vpop.eup %5545  ;;  %v3655_v25 = vadd.f32 1.0, %v5544_v13  ;;  %v8000_v13 = vld [vmem:[#allocation18_spill] sm:$0xff] }
 0x3fe   : > { %v3823_v29 = vsel %vm3822_vm10, %v5542_v40, %v3819_v57  ;;  %v3831_v50 = vmul.f32 %v5546_v46, %v3654_v2  ;;  %5547 = vpow2.f32 %v5307_v20  ;;  %5260 = vmatmul.msk.f32.gmra.mxu3 %vm2175_vm1, %v7199_v52  ;;  %vm3836_vm2 = vweird.f32 %v5546_v46 }
 0x3ff   : > { %v3828_v44 = vsel %vm3825_vm11, %v3827_v10, %v3823_v29  ;;  %5549 = vrcp.f32 %v3655_v25  ;;  %vm3837_vm13 = vmor %vm3835_vm12, %vm3836_vm2  ;;  %v3856_v10 = vand.u32 2147483648, %v3655_v25  ;;  %vm3850_vm3 = vweird.f32 %v3655_v25 }
 0x400   : > { %v4741_v22 = vmul.f32 %v3828_v44, %v7999_v59  ;;  %v3832_v4 = vsub.f32 1.0, %v3831_v50  ;;  %v3854_v50 = vand.u32 2147483647, %v3655_v25 }
 0x401   : > { %v3295_v3 = vpop.f32.mrf.mxu3 }
 0x402   : > { %4805 = vst.msk [vmem:[%s7462_s25 + $0x38] sm:$0xff] %vm466_vm0, %v4741_v22  ;;  %v3833_v5 = vmul.f32 %v5546_v46, %v3832_v4  ;;  %v3296_v40 = vadd.f32 %v7444_v41, %v3295_v3  ;;  %v3857_v4 = vor.u32 1.1754944e-38, %v3856_v10  ;;  %vm3855_vm6 = vcmp.eq.f32.partialorder %v3854_v50, 8.507059e+37  ;;  %v8002_v50 = vld [vmem:[#allocation22_spill] sm:$0xff] }
 0x404   : > { %v5548_v32 = vpop.eup %5547  ;;  %v3834_v14 = vadd.f32 %v5546_v46, %v3833_v5  ;;  %v5308_v53 = vmul.f32 -1.442695, %v3296_v40  ;;  %v8001_v40 = vld [vmem:[#allocation20_spill] sm:$0xff] }
 0x405   : > { %v5550_v52 = vpop.eup %5549  ;;  %v3656_v35 = vadd.f32 1.0, %v5548_v32 }
 0x406   : > { %v3838_v36 = vsel %vm3837_vm13, %v5546_v46, %v3834_v14  ;;  %v3846_v37 = vmul.f32 %v5550_v52, %v3655_v25  ;;  %5551 = vpow2.f32 %v5308_v53  ;;  %5261 = vmatmul.msk.f32.gmra.mxu3 %vm2175_vm1, %v7223_v58  ;;  %vm3851_vm15 = vweird.f32 %v5550_v52 }
 0x407   : > { %v3843_v34 = vsel %vm3840_vm14, %v3842_v19, %v3838_v36  ;;  %5553 = vrcp.f32 %v3656_v35  ;;  %vm3852_vm5 = vmor %vm3850_vm3, %vm3851_vm15  ;;  %v3871_v53 = vand.u32 2147483648, %v3656_v35  ;;  %v3869_v36 = vand.u32 2147483647, %v3656_v35 }
 0x408   : > { %v4742_v57 = vmul.f32 %v3843_v34, %v8000_v13  ;;  %v3847_v20 = vsub.f32 1.0, %v3846_v37  ;;  %vm3865_vm8 = vweird.f32 %v3656_v35 }
 0x409   : > { %v3298_v2 = vpop.f32.mrf.mxu3  ;;  %vm3870_vm9 = vcmp.eq.f32.partialorder %v3869_v36, 8.507059e+37 }
 0x40a   : > { %4806 = vst.msk [vmem:[%s7462_s25 + $0x40] sm:$0xff] %vm466_vm0, %v4742_v57  ;;  %v3848_v29 = vmul.f32 %v5550_v52, %v3847_v20  ;;  %v3299_v46 = vadd.f32 %v7444_v41, %v3298_v2  ;;  %v3872_v57 = vor.u32 1.1754944e-38, %v3871_v53 }
 0x40c   : > { %v5552_v44 = vpop.eup %5551  ;;  %v3849_v59 = vadd.f32 %v5550_v52, %v3848_v29  ;;  %v5309_v22 = vmul.f32 -1.442695, %v3299_v46 }
 0x40d   : > { %v5554_v58 = vpop.eup %5553  ;;  %v3657_v28 = vadd.f32 1.0, %v5552_v44 }
 0x40e   : > { %v3853_v3 = vsel %vm3852_vm5, %v5550_v52, %v3849_v59  ;;  %v3861_v5 = vmul.f32 %v5554_v58, %v3656_v35  ;;  %5555 = vpow2.f32 %v5309_v22  ;;  %5262 = vmatmul.msk.f32.gmra.mxu3 %vm2175_vm1, %v7244_v6  ;;  %vm3866_vm7 = vweird.f32 %v5554_v58 }
 0x40f   : > { %v3858_v45 = vsel %vm3855_vm6, %v3857_v4, %v3853_v3  ;;  %5557 = vrcp.f32 %v3657_v28  ;;  %vm3867_vm4 = vmor %vm3865_vm8, %vm3866_vm7  ;;  %v3886_v59 = vand.u32 2147483648, %v3657_v28  ;;  %v3884_v4 = vand.u32 2147483647, %v3657_v28 }
 0x410   : > { %v4743_v32 = vmul.f32 %v3858_v45, %v8001_v40  ;;  %v3862_v14 = vsub.f32 1.0, %v3861_v5  ;;  %vm3880_vm11 = vweird.f32 %v3657_v28 }
 0x411   : > { %v3301_v25 = vpop.f32.mrf.mxu3  ;;  %v3887_v40 = vor.u32 1.1754944e-38, %v3886_v59  ;;  %vm3885_vm12 = vcmp.eq.f32.partialorder %v3884_v4, 8.507059e+37 }
 0x412   : > { %4807 = vst.msk [vmem:[%s7462_s25 + $0x48] sm:$0xff] %vm466_vm0, %v4743_v32  ;;  %v3863_v19 = vmul.f32 %v5554_v58, %v3862_v14  ;;  %v3302_v52 = vadd.f32 %v7444_v41, %v3301_v25 }
 0x414   : > { %v5556_v37 = vpop.eup %5555  ;;  %v3864_v34 = vadd.f32 %v5554_v58, %v3863_v19  ;;  %v5310_v13 = vmul.f32 -1.442695, %v3302_v52  ;;  %v8003_v19 = vld [vmem:[#allocation23_spill] sm:$0xff] }
 0x415   : > { %v5558_v6 = vpop.eup %5557  ;;  %v3658_v20 = vadd.f32 1.0, %v5556_v37 }
 0x416   : > { %v3868_v10 = vsel %vm3867_vm4, %v5554_v58, %v3864_v34  ;;  %v3876_v2 = vmul.f32 %v5558_v6, %v3657_v28  ;;  %5559 = vpow2.f32 %v5310_v13  ;;  %5263 = vmatmul.msk.f32.gmra.mxu3 %vm2175_vm1, %v7264_v0  ;;  %vm3881_vm10 = vweird.f32 %v5558_v6 }
 0x417   : > { %v3873_v29 = vsel %vm3870_vm9, %v3872_v57, %v3868_v10  ;;  %5561 = vrcp.f32 %v3658_v20  ;;  %vm3882_vm2 = vmor %vm3880_vm11, %vm3881_vm10  ;;  %v3901_v37 = vand.u32 2147483648, %v3658_v20  ;;  %v3899_v13 = vand.u32 2147483647, %v3658_v20 }
 0x418   : > { %v4744_v46 = vmul.f32 %v3873_v29, %v8002_v50  ;;  %v3877_v44 = vsub.f32 1.0, %v3876_v2  ;;  %vm3895_vm14 = vweird.f32 %v3658_v20 }
 0x419   : > { %v3304_v35 = vpop.f32.mrf.mxu3  ;;  %v3902_v29 = vor.u32 1.1754944e-38, %v3901_v37  ;;  %vm3900_vm3 = vcmp.eq.f32.partialorder %v3899_v13, 8.507059e+37  ;;  %v8005_v37 = vld [vmem:[#allocation27_spill] sm:$0xff] }
 0x41a   : > { %4808 = vst.msk [vmem:[%s7462_s25 + $0x50] sm:$0xff] %vm466_vm0, %v4744_v46  ;;  %v3878_v22 = vmul.f32 %v5558_v6, %v3877_v44  ;;  %v3305_v58 = vadd.f32 %v7444_v41, %v3304_v35  ;;  %v8004_v35 = vld [vmem:[#allocation25_spill] sm:$0xff] }
 0x41c   : > { %v5560_v3 = vpop.eup %5559  ;;  %v3879_v5 = vadd.f32 %v5558_v6, %v3878_v22  ;;  %v5311_v45 = vmul.f32 -1.442695, %v3305_v58 }
 0x41d   : > { %v5562_v0 = vpop.eup %5561  ;;  %v3659_v32 = vadd.f32 1.0, %v5560_v3 }
 0x41e   : > { %v3883_v14 = vsel %vm3882_vm2, %v5558_v6, %v3879_v5  ;;  %v3891_v53 = vmul.f32 %v5562_v0, %v3658_v20  ;;  %5563 = vpow2.f32 %v5311_v45  ;;  %5264 = vmatmul.msk.f32.gmra.mxu3 %vm2175_vm1, %v6934_v1  ;;  %vm3896_vm13 = vweird.f32 %v5562_v0 }
 0x41f   : > { %v3888_v25 = vsel %vm3885_vm12, %v3887_v40, %v3883_v14  ;;  %5565 = vrcp.f32 %v3659_v32  ;;  %vm3897_vm15 = vmor %vm3895_vm14, %vm3896_vm13  ;;  %v3916_v58 = vand.u32 2147483648, %v3659_v32  ;;  %v3914_v5 = vand.u32 2147483647, %v3659_v32 }
 0x420   : > { %v4745_v36 = vmul.f32 %v3888_v25, %v8003_v19  ;;  %v3892_v52 = vsub.f32 1.0, %v3891_v53  ;;  %vm3910_vm6 = vweird.f32 %v3659_v32 }
 0x421   : > { %v3307_v28 = vpop.f32.mrf.mxu3  ;;  %v3917_v53 = vor.u32 1.1754944e-38, %v3916_v58  ;;  %vm3915_vm8 = vcmp.eq.f32.partialorder %v3914_v5, 8.507059e+37 }
 0x422   : > { %4809 = vst.msk [vmem:[%s7462_s25 + $0x58] sm:$0xff] %vm466_vm0, %v4745_v36  ;;  %v3893_v34 = vmul.f32 %v5562_v0, %v3892_v52  ;;  %v3308_v6 = vadd.f32 %v7444_v41, %v3307_v28 }
 0x424   : > { %v5564_v57 = vpop.eup %5563  ;;  %v3894_v10 = vadd.f32 %v5562_v0, %v3893_v34  ;;  %v5312_v2 = vmul.f32 -1.442695, %v3308_v6 }
 0x425   : > { %v5566_v1 = vpop.eup %5565  ;;  %v3660_v50 = vadd.f32 1.0, %v5564_v57 }
 0x426   : > { %v3898_v46 = vsel %vm3897_vm15, %v5562_v0, %v3894_v10  ;;  %v3906_v44 = vmul.f32 %v5566_v1, %v3659_v32  ;;  %5567 = vpow2.f32 %v5312_v2  ;;  %5265 = vmatmul.msk.f32.gmra.mxu3 %vm2175_vm1, %v6956_v47  ;;  %vm3911_vm5 = vweird.f32 %v5566_v1 }
 0x427   : > { %v3903_v59 = vsel %vm3900_vm3, %v3902_v29, %v3898_v46  ;;  %5569 = vrcp.f32 %v3660_v50  ;;  %vm3912_vm7 = vmor %vm3910_vm6, %vm3911_vm5  ;;  %v3931_v13 = vand.u32 2147483648, %v3660_v50  ;;  %v3929_v57 = vand.u32 2147483647, %v3660_v50 }
 0x428   : > { %v4746_v22 = vmul.f32 %v3903_v59, %v8004_v35  ;;  %v3907_v4 = vsub.f32 1.0, %v3906_v44  ;;  %vm3925_vm9 = vweird.f32 %v3660_v50 }
 0x429   : > { %v3310_v20 = vpop.f32.mrf.mxu3  ;;  %v3932_v46 = vor.u32 1.1754944e-38, %v3931_v13  ;;  %vm3930_vm11 = vcmp.eq.f32.partialorder %v3929_v57, 8.507059e+37 }
 0x42a   : > { %4810 = vst.msk [vmem:[%s7462_s25 + $0x60] sm:$0xff] %vm466_vm0, %v4746_v22  ;;  %v3908_v3 = vmul.f32 %v5566_v1, %v3907_v4  ;;  %v3311_v45 = vadd.f32 %v7444_v41, %v3310_v20  ;;  %v8006_v4 = vld [vmem:[#allocation29_spill] sm:$0xff] }
 0x42c   : > { %v5568_v0 = vpop.eup %5567  ;;  %v3909_v40 = vadd.f32 %v5566_v1, %v3908_v3  ;;  %v5313_v14 = vmul.f32 -1.442695, %v3311_v45 }
 0x42d   : > { %v5570_v47 = vpop.eup %5569  ;;  %v3661_v25 = vadd.f32 1.0, %v5568_v0 }
 0x42e   : > { %v3913_v19 = vsel %vm3912_vm7, %v5566_v1, %v3909_v40  ;;  %v3921_v36 = vmul.f32 %v5570_v47, %v3660_v50  ;;  %5571 = vpow2.f32 %v5313_v14  ;;  %5266 = vmatmul.msk.f32.gmra.mxu3 %vm2175_vm1, %v6980_v23  ;;  %vm3926_vm4 = vweird.f32 %v5570_v47 }
 0x42f   : > { %v3918_v52 = vsel %vm3915_vm8, %v3917_v53, %v3913_v19  ;;  %5573 = vrcp.f32 %v3661_v25  ;;  %vm3927_vm10 = vmor %vm3925_vm9, %vm3926_vm4  ;;  %v3946_v3 = vand.u32 2147483648, %v3661_v25  ;;  %v3944_v45 = vand.u32 2147483647, %v3661_v25 }
 0x430   : > { %v4747_v28 = vmul.f32 %v3918_v52, %v8005_v37  ;;  %v3922_v34 = vsub.f32 1.0, %v3921_v36  ;;  %vm3940_vm12 = vweird.f32 %v3661_v25 }
 0x431   : > { %v3313_v32 = vpop.f32.mrf.mxu3  ;;  %v3947_v53 = vor.u32 1.1754944e-38, %v3946_v3  ;;  %vm3945_vm14 = vcmp.eq.f32.partialorder %v3944_v45, 8.507059e+37 }
 0x432   : > { %4811 = vst.msk [vmem:[%s7462_s25 + $0x68] sm:$0xff] %vm466_vm0, %v4747_v28  ;;  %v3923_v6 = vmul.f32 %v5570_v47, %v3922_v34  ;;  %v3314_v10 = vadd.f32 %v7444_v41, %v3313_v32  ;;  %v8007_v28 = vld [vmem:[#allocation31_spill] sm:$0xff] }
 0x434   : > { %v5572_v2 = vpop.eup %5571  ;;  %v3924_v1 = vadd.f32 %v5570_v47, %v3923_v6  ;;  %v5314_v29 = vmul.f32 -1.442695, %v3314_v10 }
 0x435   : > { %v5574_v23 = vpop.eup %5573  ;;  %v3662_v44 = vadd.f32 1.0, %v5572_v2 }
 0x436   : > { %v3928_v59 = vsel %vm3927_vm10, %v5570_v47, %v3924_v1  ;;  %v3936_v35 = vmul.f32 %v5574_v23, %v3661_v25  ;;  %5575 = vpow2.f32 %v5314_v29  ;;  %5267 = vmatmul.msk.f32.gmra.mxu3 %vm2175_vm1, %v7004_v31  ;;  %vm3941_vm2 = vweird.f32 %v5574_v23 }
 0x437   : > { %v3933_v22 = vsel %vm3930_vm11, %v3932_v46, %v3928_v59  ;;  %5577 = vrcp.f32 %v3662_v44  ;;  %vm3942_vm13 = vmor %vm3940_vm12, %vm3941_vm2  ;;  %v3961_v32 = vand.u32 2147483648, %v3662_v44  ;;  %v3959_v57 = vand.u32 2147483647, %v3662_v44 }
 0x438   : > { %v4748_v58 = vmul.f32 %v3933_v22, %v8006_v4  ;;  %v3937_v20 = vsub.f32 1.0, %v3936_v35  ;;  %vm3955_vm3 = vweird.f32 %v3662_v44  ;;  %v8008_v4 = vld [vmem:[#allocation32_spill] sm:$0xff] }
 0x439   : > { %v3316_v50 = vpop.f32.mrf.mxu3  ;;  %vm3960_vm6 = vcmp.eq.f32.partialorder %v3959_v57, 8.507059e+37 }
 0x43a   : > { %4812 = vst.msk [vmem:[%s7462_s25 + $0x70] sm:$0xff] %vm466_vm0, %v4748_v58  ;;  %v3938_v5 = vmul.f32 %v5574_v23, %v3937_v20  ;;  %v3317_v0 = vadd.f32 %v7444_v41, %v3316_v50 }
 0x43c   : > { %v5576_v40 = vpop.eup %5575  ;;  %v3939_v14 = vadd.f32 %v5574_v23, %v3938_v5  ;;  %v5315_v47 = vmul.f32 -1.442695, %v3317_v0 }
 0x43d   : > { %v5578_v31 = vpop.eup %5577  ;;  %v3663_v19 = vadd.f32 1.0, %v5576_v40 }
 0x43e   : > { %v3943_v36 = vsel %vm3942_vm13, %v5574_v23, %v3939_v14  ;;  %v3951_v52 = vmul.f32 %v5578_v31, %v3662_v44  ;;  %5579 = vpow2.f32 %v5315_v47  ;;  %5268 = vmatmul.msk.f32.gmra.mxu3 %vm2175_vm1, %v7028_v61  ;;  %vm3956_vm15 = vweird.f32 %v5578_v31 }
 0x43f   : > { %v3948_v37 = vsel %vm3945_vm14, %v3947_v53, %v3943_v36  ;;  %5581 = vrcp.f32 %v3663_v19  ;;  %vm3957_vm5 = vmor %vm3955_vm3, %vm3956_vm15  ;;  %v3962_v23 = vor.u32 1.1754944e-38, %v3961_v32  ;;  %v3976_v3 = vand.u32 2147483648, %v3663_v19 }
 0x440   : > { %v4749_v34 = vmul.f32 %v3948_v37, %v8007_v28  ;;  %v3952_v13 = vsub.f32 1.0, %v3951_v52  ;;  %v3974_v5 = vand.u32 2147483647, %v3663_v19  ;;  %vm3970_vm8 = vweird.f32 %v3663_v19  ;;  %v8009_v37 = vld [vmem:[#allocation33_spill] sm:$0xff] }
 0x441   : > { %v3319_v25 = vpop.f32.mrf.mxu3  ;;  %v3977_v47 = vor.u32 1.1754944e-38, %v3976_v3 }
 0x442   : > { %4813 = vst.msk [vmem:[%s7462_s25 + $0x78] sm:$0xff] %vm466_vm0, %v4749_v34  ;;  %v3953_v6 = vmul.f32 %v5578_v31, %v3952_v13  ;;  %v3320_v10 = vadd.f32 %v7444_v41, %v3319_v25  ;;  %vm3975_vm9 = vcmp.eq.f32.partialorder %v3974_v5, 8.507059e+37 }
 0x444   : > { %v5580_v2 = vpop.eup %5579  ;;  %v3954_v1 = vadd.f32 %v5578_v31, %v3953_v6  ;;  %v5316_v29 = vmul.f32 -1.442695, %v3320_v10 }
 0x445   : > { %v5582_v61 = vpop.eup %5581  ;;  %v3664_v46 = vadd.f32 1.0, %v5580_v2 }
 0x446   : > { %v3958_v59 = vsel %vm3957_vm5, %v5578_v31, %v3954_v1  ;;  %v3966_v35 = vmul.f32 %v5582_v61, %v3663_v19  ;;  %5583 = vpow2.f32 %v5316_v29  ;;  %5269 = vmatmul.msk.f32.gmra.mxu3 %vm2175_vm1, %v7060_v9  ;;  %vm3971_vm7 = vweird.f32 %v5582_v61 }
 0x447   : > { %v3963_v22 = vsel %vm3960_vm6, %v3962_v23, %v3958_v59  ;;  %5585 = vrcp.f32 %v3664_v46  ;;  %vm3972_vm4 = vmor %vm3970_vm8, %vm3971_vm7  ;;  %v3991_v13 = vand.u32 2147483648, %v3664_v46  ;;  %v3989_v25 = vand.u32 2147483647, %v3664_v46 }
 0x448   : > { %v4750_v58 = vmul.f32 %v3963_v22, %v8008_v4  ;;  %v3967_v20 = vsub.f32 1.0, %v3966_v35  ;;  %vm3985_vm11 = vweird.f32 %v3664_v46  ;;  %v8010_v35 = vld [vmem:[#allocation35_spill] sm:$0xff] }
 0x449   : > { %v3322_v44 = vpop.f32.mrf.mxu3  ;;  %v3992_v1 = vor.u32 1.1754944e-38, %v3991_v13  ;;  %vm3990_vm12 = vcmp.eq.f32.partialorder %v3989_v25, 8.507059e+37 }
 0x44a   : > { %4814 = vst.msk [vmem:[%s7462_s25 + $0x80] sm:$0xff] %vm466_vm0, %v4750_v58  ;;  %v3968_v50 = vmul.f32 %v5582_v61, %v3967_v20  ;;  %v3323_v45 = vadd.f32 %v7444_v41, %v3322_v44 }
 0x44c   : > { %v5584_v0 = vpop.eup %5583  ;;  %v3969_v40 = vadd.f32 %v5582_v61, %v3968_v50  ;;  %v5317_v14 = vmul.f32 -1.442695, %v3323_v45 }
 0x44d   : > { %v5586_v9 = vpop.eup %5585  ;;  %v3665_v31 = vadd.f32 1.0, %v5584_v0 }
 0x44e   : > { %v3973_v53 = vsel %vm3972_vm4, %v5582_v61, %v3969_v40  ;;  %v3981_v36 = vmul.f32 %v5586_v9, %v3664_v46  ;;  %5587 = vpow2.f32 %v5317_v14  ;;  %5270 = vmatmul.msk.f32.gmra.mxu3 %vm2175_vm1, %v7084_v62  ;;  %vm3986_vm10 = vweird.f32 %v5586_v9 }
 0x44f   : > { %v3978_v52 = vsel %vm3975_vm9, %v3977_v47, %v3973_v53  ;;  %5589 = vrcp.f32 %v3665_v31  ;;  %vm3987_vm2 = vmor %vm3985_vm11, %vm3986_vm10  ;;  %v4006_v58 = vand.u32 2147483648, %v3665_v31  ;;  %v4004_v3 = vand.u32 2147483647, %v3665_v31  ;;  %v8011_v53 = vld [vmem:[#allocation37_spill] sm:$0xff] }
 0x450   : > { %v4751_v28 = vmul.f32 %v3978_v52, %v8009_v37  ;;  %v3982_v34 = vsub.f32 1.0, %v3981_v36  ;;  %vm4000_vm14 = vweird.f32 %v3665_v31 }
 0x451   : > { %v3325_v19 = vpop.f32.mrf.mxu3  ;;  %v4007_v0 = vor.u32 1.1754944e-38, %v4006_v58  ;;  %vm4005_vm3 = vcmp.eq.f32.partialorder %v4004_v3, 8.507059e+37 }
 0x452   : > { %4815 = vst.msk [vmem:[%s7462_s25 + $0x88] sm:$0xff] %vm466_vm0, %v4751_v28  ;;  %v3983_v32 = vmul.f32 %v5586_v9, %v3982_v34  ;;  %v3326_v6 = vadd.f32 %v7444_v41, %v3325_v19 }
 0x454   : > { %v5588_v57 = vpop.eup %5587  ;;  %v3984_v10 = vadd.f32 %v5586_v9, %v3983_v32  ;;  %v5318_v2 = vmul.f32 -1.442695, %v3326_v6 }
 0x455   : > { %v5590_v62 = vpop.eup %5589  ;;  %v3666_v29 = vadd.f32 1.0, %v5588_v57 }
 0x456   : > { %v3988_v61 = vsel %vm3987_vm2, %v5586_v9, %v3984_v10  ;;  %v3996_v23 = vmul.f32 %v5590_v62, %v3665_v31  ;;  %5591 = vpow2.f32 %v5318_v2  ;;  %5271 = vmatmul.msk.f32.gmra.mxu3 %vm2175_vm1, %v7108_v15  ;;  %vm4001_vm13 = vweird.f32 %v5590_v62 }
 0x457   : > { %v3993_v59 = vsel %vm3990_vm12, %v3992_v1, %v3988_v61  ;;  %5593 = vrcp.f32 %v3666_v29  ;;  %vm4002_vm15 = vmor %vm4000_vm14, %vm4001_vm13  ;;  %v4021_v37 = vand.u32 2147483648, %v3666_v29  ;;  %v4019_v34 = vand.u32 2147483647, %v3666_v29  ;;  %v8012_v1 = vld [vmem:[#allocation39_spill] sm:$0xff] }
 0x458   : > { %v4752_v22 = vmul.f32 %v3993_v59, %v8010_v35  ;;  %v3997_v4 = vsub.f32 1.0, %v3996_v23  ;;  %vm4015_vm6 = vweird.f32 %v3666_v29 }
 0x459   : > { %v3328_v46 = vpop.f32.mrf.mxu3  ;;  %v4022_v6 = vor.u32 1.1754944e-38, %v4021_v37  ;;  %vm4020_vm8 = vcmp.eq.f32.partialorder %v4019_v34, 8.507059e+37 }
 0x45a   : > { %4816 = vst.msk [vmem:[%s7462_s25 + $0x90] sm:$0xff] %vm466_vm0, %v4752_v22  ;;  %v3998_v20 = vmul.f32 %v5590_v62, %v3997_v4  ;;  %v3329_v44 = vadd.f32 %v7444_v41, %v3328_v46  ;;  %v7590_v22 = vld [vmem:[%s7823_s8] ss:$0 sm:$0xff] }
 0x45c   : > { %v5592_v50 = vpop.eup %5591  ;;  %v3999_v5 = vadd.f32 %v5590_v62, %v3998_v20  ;;  %v5319_v45 = vmul.f32 -1.442695, %v3329_v44 }
 0x45d   : > { %v5594_v15 = vpop.eup %5593  ;;  %v3667_v40 = vadd.f32 1.0, %v5592_v50 }
 0x45e   : > { %v4003_v14 = vsel %vm4002_vm15, %v5590_v62, %v3999_v5  ;;  %v4011_v9 = vmul.f32 %v5594_v15, %v3666_v29  ;;  %5595 = vpow2.f32 %v5319_v45  ;;  %5272 = vmatmul.msk.f32.gmra.mxu3 %vm2175_vm1, %v7132_v21  ;;  %vm4016_vm5 = vweird.f32 %v5594_v15 }
 0x45f   : > { %v4008_v47 = vsel %vm4005_vm3, %v4007_v0, %v4003_v14  ;;  %5597 = vrcp.f32 %v3667_v40  ;;  %vm4017_vm7 = vmor %vm4015_vm6, %vm4016_vm5  ;;  %v4036_v23 = vand.u32 2147483648, %v3667_v40  ;;  %v4034_v35 = vand.u32 2147483647, %v3667_v40 }
 0x460   : > { %v4753_v36 = vmul.f32 %v4008_v47, %v8011_v53  ;;  %v4012_v52 = vsub.f32 1.0, %v4011_v9  ;;  %vm4030_vm9 = vweird.f32 %v3667_v40 }
 0x461   : > { %v3331_v31 = vpop.f32.mrf.mxu3  ;;  %v4037_v3 = vor.u32 1.1754944e-38, %v4036_v23  ;;  %vm4035_vm11 = vcmp.eq.f32.partialorder %v4034_v35, 8.507059e+37 }
 0x462   : > { %4817 = vst.msk [vmem:[%s7462_s25 + $0x98] sm:$0xff] %vm466_vm0, %v4753_v36  ;;  %v4013_v28 = vmul.f32 %v5594_v15, %v4012_v52  ;;  %v3332_v13 = vadd.f32 %v7444_v41, %v3331_v31 }
 0x464   : > { %v5596_v19 = vpop.eup %5595  ;;  %v4014_v32 = vadd.f32 %v5594_v15, %v4013_v28  ;;  %v5320_v25 = vmul.f32 -1.442695, %v3332_v13 }
 0x465   : > { %v5598_v21 = vpop.eup %5597  ;;  %v3668_v57 = vadd.f32 1.0, %v5596_v19 }
 0x466   : > { %v4018_v10 = vsel %vm4017_vm7, %v5594_v15, %v4014_v32  ;;  %v4026_v2 = vmul.f32 %v5598_v21, %v3667_v40  ;;  %5599 = vpow2.f32 %v5320_v25  ;;  %5273 = vmatmul.msk.f32.gmra.mxu3 %vm2175_vm1, %v7156_v27  ;;  %vm4031_vm4 = vweird.f32 %v5598_v21  ;;  %v8013_v15 = vld [vmem:[#allocation41_spill] sm:$0xff]  ;;  %v8014_v25 = vld [vmem:[#allocation43_spill] sm:$0xff] }
 0x467   : > { %v4023_v62 = vsel %vm4020_vm8, %v4022_v6, %v4018_v10  ;;  %5601 = vrcp.f32 %v3668_v57  ;;  %vm4032_vm10 = vmor %vm4030_vm9, %vm4031_vm4  ;;  %v4051_v9 = vand.u32 2147483648, %v3668_v57  ;;  %v4049_v53 = vand.u32 2147483647, %v3668_v57 }
 0x468   : > { %v4754_v41 = vmul.f32 %v4023_v62, %v8012_v1  ;;  %v4027_v61 = vsub.f32 1.0, %v4026_v2  ;;  %vm4045_vm12 = vweird.f32 %v3668_v57 }
 0x469   : > { %v3334_v29 = vpop.f32.mrf.mxu3  ;;  %v4052_v28 = vor.u32 1.1754944e-38, %v4051_v9  ;;  %vm4050_vm14 = vcmp.eq.f32.partialorder %v4049_v53, 8.507059e+37 }
 0x46a   : > { %4818 = vst.msk [vmem:[%s7462_s25 + $0xa0] sm:$0xff] %vm466_vm0, %v4754_v41  ;;  %v4028_v59 = vmul.f32 %v5598_v21, %v4027_v61  ;;  %v3335_v4 = vadd.f32 %v7590_v22, %v3334_v29 }
 0x46c   : > { %v5600_v27 = vpop.eup %5599  ;;  %v4029_v58 = vadd.f32 %v5598_v21, %v4028_v59  ;;  %v5321_v46 = vmul.f32 -1.442695, %v3335_v4 }
 0x46d   : > { %v5602_v20 = vpop.eup %5601  ;;  %v3669_v44 = vadd.f32 1.0, %v5600_v27 }
 0x46e   : > { %v4033_v50 = vsel %vm4032_vm10, %v5598_v21, %v4029_v58  ;;  %v4041_v5 = vmul.f32 %v5602_v20, %v3668_v57  ;;  %5603 = vpow2.f32 %v5321_v46  ;;  %5274 = vmatmul.msk.f32.gmra.mxu3 %vm2175_vm1, %v7180_v33  ;;  %vm4046_vm2 = vweird.f32 %v5602_v20  ;;  %v8015_v58 = vld [vmem:[#allocation45_spill] sm:$0xff] }
 0x46f   : > { %v4038_v45 = vsel %vm4035_vm11, %v4037_v3, %v4033_v50  ;;  %5605 = vrcp.f32 %v3669_v44  ;;  %vm4047_vm13 = vmor %vm4045_vm12, %vm4046_vm2  ;;  %v4066_v10 = vand.u32 2147483648, %v3669_v44  ;;  %v4064_v62 = vand.u32 2147483647, %v3669_v44 }
 0x470   : > { %v4755_v0 = vmul.f32 %v4038_v45, %v8013_v15  ;;  %v4042_v14 = vsub.f32 1.0, %v4041_v5  ;;  %vm4060_vm3 = vweird.f32 %v3669_v44 }
 0x471   : > { %v3337_v40 = vpop.f32.mrf.mxu3  ;;  %v4067_v29 = vor.u32 1.1754944e-38, %v4066_v10  ;;  %vm4065_vm6 = vcmp.eq.f32.partialorder %v4064_v62, 8.507059e+37 }
 0x472   : > { %4819 = vst.msk [vmem:[%s7462_s25 + $0xa8] sm:$0xff] %vm466_vm0, %v4755_v0  ;;  %v4043_v47 = vmul.f32 %v5602_v20, %v4042_v14  ;;  %v3338_v36 = vadd.f32 %v7590_v22, %v3337_v40 }
 0x474   : > { %v5604_v52 = vpop.eup %5603  ;;  %v4044_v37 = vadd.f32 %v5602_v20, %v4043_v47  ;;  %v5322_v31 = vmul.f32 -1.442695, %v3338_v36 }
 0x475   : > { %v5606_v33 = vpop.eup %5605  ;;  %v3670_v34 = vadd.f32 1.0, %v5604_v52  ;;  %v8016_v52 = vld [vmem:[#allocation47_spill] sm:$0xff] }
 0x476   : > { %v4048_v13 = vsel %vm4047_vm13, %v5602_v20, %v4044_v37  ;;  %v4056_v19 = vmul.f32 %v5606_v33, %v3669_v44  ;;  %5607 = vpow2.f32 %v5322_v31  ;;  %5275 = vmatmul.msk.f32.gmra.mxu3 %vm2175_vm1, %v7204_v39  ;;  %vm4061_vm15 = vweird.f32 %v5606_v33 }
 0x477   : > { %v4053_v32 = vsel %vm4050_vm14, %v4052_v28, %v4048_v13  ;;  %5609 = vrcp.f32 %v3670_v34  ;;  %vm4062_vm5 = vmor %vm4060_vm3, %vm4061_vm15  ;;  %v4081_v3 = vand.u32 2147483648, %v3670_v34  ;;  %v4079_v5 = vand.u32 2147483647, %v3670_v34 }
 0x478   : > { %v4756_v21 = vmul.f32 %v4053_v32, %v8014_v25  ;;  %v4057_v6 = vsub.f32 1.0, %v4056_v19  ;;  %vm4075_vm8 = vweird.f32 %v3670_v34 }
 0x479   : > { %v3340_v57 = vpop.f32.mrf.mxu3  ;;  %v4082_v9 = vor.u32 1.1754944e-38, %v4081_v3  ;;  %vm4080_vm9 = vcmp.eq.f32.partialorder %v4079_v5, 8.507059e+37  ;;  %v8018_v5 = vld [vmem:[#allocation51_spill] sm:$0xff] }
 0x47a   : > { %4820 = vst.msk [vmem:[%s7462_s25 + $0xb0] sm:$0xff] %vm466_vm0, %v4756_v21  ;;  %v4058_v2 = vmul.f32 %v5606_v33, %v4057_v6  ;;  %v3341_v1 = vadd.f32 %v7590_v22, %v3340_v57 }
 0x47c   : > { %v5608_v41 = vpop.eup %5607  ;;  %v4059_v61 = vadd.f32 %v5606_v33, %v4058_v2  ;;  %v5323_v23 = vmul.f32 -1.442695, %v3341_v1  ;;  %v8017_v1 = vld [vmem:[#allocation49_spill] sm:$0xff] }
 0x47d   : > { %v5610_v39 = vpop.eup %5609  ;;  %v3671_v59 = vadd.f32 1.0, %v5608_v41 }
 0x47e   : > { %v4063_v35 = vsel %vm4062_vm5, %v5606_v33, %v4059_v61  ;;  %v4071_v4 = vmul.f32 %v5610_v39, %v3670_v34  ;;  %5611 = vpow2.f32 %v5323_v23  ;;  %5276 = vmatmul.msk.f32.gmra.mxu3 %vm2175_vm1, %v7228_v51  ;;  %vm4076_vm7 = vweird.f32 %v5610_v39 }
 0x47f   : > { %v4068_v27 = vsel %vm4065_vm6, %v4067_v29, %v4063_v35  ;;  %5613 = vrcp.f32 %v3671_v59  ;;  %vm4077_vm4 = vmor %vm4075_vm8, %vm4076_vm7  ;;  %v4096_v33 = vand.u32 2147483648, %v3671_v59  ;;  %v4094_v13 = vand.u32 2147483647, %v3671_v59 }
 0x480   : > { %v4757_v46 = vmul.f32 %v4068_v27, %v8015_v58  ;;  %v4072_v20 = vsub.f32 1.0, %v4071_v4  ;;  %vm4090_vm11 = vweird.f32 %v3671_v59 }
 0x481   : > { %v3343_v44 = vpop.f32.mrf.mxu3  ;;  %v4097_v6 = vor.u32 1.1754944e-38, %v4096_v33  ;;  %vm4095_vm12 = vcmp.eq.f32.partialorder %v4094_v13, 8.507059e+37 }
 0x482   : > { %4821 = vst.msk [vmem:[%s7462_s25 + $0xb8] sm:$0xff] %vm466_vm0, %v4757_v46  ;;  %v4073_v50 = vmul.f32 %v5610_v39, %v4072_v20  ;;  %v3344_v45 = vadd.f32 %v7590_v22, %v3343_v44 }
 0x484   : > { %v5612_v15 = vpop.eup %5611  ;;  %v4074_v0 = vadd.f32 %v5610_v39, %v4073_v50  ;;  %v5324_v14 = vmul.f32 -1.442695, %v3344_v45 }
 0x485   : > { %v5614_v51 = vpop.eup %5613  ;;  %v3672_v40 = vadd.f32 1.0, %v5612_v15 }
 0x486   : > { %v4078_v47 = vsel %vm4077_vm4, %v5610_v39, %v4074_v0  ;;  %v4086_v53 = vmul.f32 %v5614_v51, %v3671_v59  ;;  %5615 = vpow2.f32 %v5324_v14  ;;  %5277 = vmatmul.msk.f32.gmra.mxu3 %vm2175_vm1, %v7249_v49  ;;  %vm4091_vm10 = vweird.f32 %v5614_v51 }
 0x487   : > { %v4083_v36 = vsel %vm4080_vm9, %v4082_v9, %v4078_v47  ;;  %5617 = vrcp.f32 %v3672_v40  ;;  %vm4092_vm2 = vmor %vm4090_vm11, %vm4091_vm10  ;;  %v4111_v23 = vand.u32 2147483648, %v3672_v40  ;;  %v4109_v59 = vand.u32 2147483647, %v3672_v40 }
 0x488   : > { %v4758_v37 = vmul.f32 %v4083_v36, %v8016_v52  ;;  %v4087_v31 = vsub.f32 1.0, %v4086_v53  ;;  %vm4105_vm14 = vweird.f32 %v3672_v40 }
 0x489   : > { %v3346_v28 = vpop.f32.mrf.mxu3  ;;  %v4112_v46 = vor.u32 1.1754944e-38, %v4111_v23  ;;  %vm4110_vm3 = vcmp.eq.f32.partialorder %v4109_v59, 8.507059e+37 }
 0x48a   : > { %4822 = vst.msk [vmem:[%s7462_s25 + $0xc0] sm:$0xff] %vm466_vm0, %v4758_v37  ;;  %v4088_v34 = vmul.f32 %v5614_v51, %v4087_v31  ;;  %v3347_v19 = vadd.f32 %v7590_v22, %v3346_v28 }
 0x48c   : > { %v5616_v32 = vpop.eup %5615  ;;  %v4089_v25 = vadd.f32 %v5614_v51, %v4088_v34  ;;  %v5325_v21 = vmul.f32 -1.442695, %v3347_v19  ;;  %v8019_v34 = vld [vmem:[#allocation53_spill] sm:$0xff] }
 0x48d   : > { %v5618_v49 = vpop.eup %5617  ;;  %v3673_v10 = vadd.f32 1.0, %v5616_v32 }
 0x48e   : > { %v4093_v57 = vsel %vm4092_vm2, %v5614_v51, %v4089_v25  ;;  %v4101_v2 = vmul.f32 %v5618_v49, %v3672_v40  ;;  %5619 = vpow2.f32 %v5325_v21  ;;  %5278 = vmatmul.msk.f32.gmra.mxu3 %vm2175_vm1, %v7269_v8  ;;  %vm4106_vm13 = vweird.f32 %v5618_v49 }
 0x48f   : > { %v4098_v62 = vsel %vm4095_vm12, %v4097_v6, %v4093_v57  ;;  %5621 = vrcp.f32 %v3673_v10  ;;  %vm4107_vm15 = vmor %vm4105_vm14, %vm4106_vm13  ;;  %v4126_v0 = vand.u32 2147483648, %v3673_v10  ;;  %v4124_v9 = vand.u32 2147483647, %v3673_v10 }
 0x490   : > { %v4759_v41 = vmul.f32 %v4098_v62, %v8017_v1  ;;  %v4102_v61 = vsub.f32 1.0, %v4101_v2  ;;  %vm4120_vm6 = vweird.f32 %v3673_v10 }
 0x491   : > { %v3349_v39 = vpop.f32.mrf.mxu3  ;;  %v4127_v52 = vor.u32 1.1754944e-38, %v4126_v0  ;;  %vm4125_vm8 = vcmp.eq.f32.partialorder %v4124_v9, 8.507059e+37  ;;  %v8021_v0 = vld [vmem:[#allocation57_spill] sm:$0xff] }
 0x492   : > { %4823 = vst.msk [vmem:[%s7462_s25 + $0xc8] sm:$0xff] %vm466_vm0, %v4759_v41  ;;  %v4103_v29 = vmul.f32 %v5618_v49, %v4102_v61  ;;  %v3350_v35 = vadd.f32 %v7590_v22, %v3349_v39  ;;  %v8020_v39 = vld [vmem:[#allocation55_spill] sm:$0xff] }
 0x494   : > { %v5620_v4 = vpop.eup %5619  ;;  %v4104_v27 = vadd.f32 %v5618_v49, %v4103_v29  ;;  %v5326_v58 = vmul.f32 -1.442695, %v3350_v35 }
 0x495   : > { %v5622_v8 = vpop.eup %5621  ;;  %v3674_v20 = vadd.f32 1.0, %v5620_v4 }
 0x496   : > { %v4108_v3 = vsel %vm4107_vm15, %v5618_v49, %v4104_v27  ;;  %v4116_v44 = vmul.f32 %v5622_v8, %v3673_v10  ;;  %5623 = vpow2.f32 %v5326_v58  ;;  %5279 = vmatmul.msk.f32.gmra.mxu3 %vm2175_vm1, %v7282_v26  ;;  %vm4121_vm5 = vweird.f32 %v5622_v8 }
 0x497   : > { %v4113_v50 = vsel %vm4110_vm3, %v4112_v46, %v4108_v3  ;;  %5625 = vrcp.f32 %v3674_v20  ;;  %vm4122_vm7 = vmor %vm4120_vm6, %vm4121_vm5  ;;  %v4141_v32 = vand.u32 2147483648, %v3674_v20  ;;  %v4139_v49 = vand.u32 2147483647, %v3674_v20 }
 0x498   : > { %v4760_v45 = vmul.f32 %v4113_v50, %v8018_v5  ;;  %v4117_v15 = vsub.f32 1.0, %v4116_v44  ;;  %vm4135_vm9 = vweird.f32 %v3674_v20 }
 0x499   : > { %v3352_v14 = vpop.f32.mrf.mxu3  ;;  %v4142_v62 = vor.u32 1.1754944e-38, %v4141_v32  ;;  %vm4140_vm11 = vcmp.eq.f32.partialorder %v4139_v49, 8.507059e+37 }
 0x49a   : > { %4824 = vst.msk [vmem:[%s7462_s25 + $0xd0] sm:$0xff] %vm466_vm0, %v4760_v45  ;;  %v4118_v51 = vmul.f32 %v5622_v8, %v4117_v15  ;;  %v3353_v40 = vadd.f32 %v7590_v22, %v3352_v14 }
 0x49c   : > { %v5624_v47 = vpop.eup %5623  ;;  %v4119_v53 = vadd.f32 %v5622_v8, %v4118_v51  ;;  %v5327_v36 = vmul.f32 -1.442695, %v3353_v40 }
 0x49d   : > { %v5626_v26 = vpop.eup %5625  ;;  %v3675_v37 = vadd.f32 1.0, %v5624_v47 }
 0x49e   : > { %v4123_v31 = vsel %vm4122_vm7, %v5622_v8, %v4119_v53  ;;  %v4131_v33 = vmul.f32 %v5626_v26, %v3674_v20  ;;  %5627 = vpow2.f32 %v5327_v36  ;;  %5280 = vmatmul.msk.f32.gmra.mxu3 %vm2175_vm1, %v7290_v54  ;;  %vm4136_vm4 = vweird.f32 %v5626_v26 }
 0x49f   : > { %v4128_v28 = vsel %vm4125_vm8, %v4127_v52, %v4123_v31  ;;  %5629 = vrcp.f32 %v3675_v37  ;;  %vm4137_vm10 = vmor %vm4135_vm9, %vm4136_vm4  ;;  %v4156_v35 = vand.u32 2147483648, %v3675_v37  ;;  %v4154_v58 = vand.u32 2147483647, %v3675_v37 }
 0x4a0   : > { %v4761_v13 = vmul.f32 %v4128_v28, %v8019_v34  ;;  %v4132_v19 = vsub.f32 1.0, %v4131_v33  ;;  %vm4150_vm12 = vweird.f32 %v3675_v37 }
 0x4a1   : > { %v3355_v25 = vpop.f32.mrf.mxu3  ;;  %v4157_v44 = vor.u32 1.1754944e-38, %v4156_v35  ;;  %vm4155_vm14 = vcmp.eq.f32.partialorder %v4154_v58, 8.507059e+37 }
 0x4a2   : > { %4825 = vst.msk [vmem:[%s7462_s25 + $0xd8] sm:$0xff] %vm466_vm0, %v4761_v13  ;;  %v4133_v21 = vmul.f32 %v5626_v26, %v4132_v19  ;;  %v3356_v6 = vadd.f32 %v7590_v22, %v3355_v25  ;;  %v8022_v19 = vld [vmem:[#allocation58_spill] sm:$0xff] }
 0x4a4   : > { %v5628_v10 = vpop.eup %5627  ;;  %v4134_v57 = vadd.f32 %v5626_v26, %v4133_v21  ;;  %v5328_v2 = vmul.f32 -1.442695, %v3356_v6 }
 0x4a5   : > { %v5630_v54 = vpop.eup %5629  ;;  %v3676_v1 = vadd.f32 1.0, %v5628_v10 }
 0x4a6   : > { %v4138_v41 = vsel %vm4137_vm10, %v5626_v26, %v4134_v57  ;;  %v4146_v61 = vmul.f32 %v5630_v54, %v3675_v37  ;;  %5631 = vpow2.f32 %v5328_v2  ;;  %5281 = vmatmul.msk.f32.gmra.mxu3 %vm2175_vm1, %v7299_v17  ;;  %vm4151_vm2 = vweird.f32 %v5630_v54 }
 0x4a7   : > { %v4143_v23 = vsel %vm4140_vm11, %v4142_v62, %v4138_v41  ;;  %5633 = vrcp.f32 %v3676_v1  ;;  %vm4152_vm13 = vmor %vm4150_vm12, %vm4151_vm2  ;;  %v4171_v9 = vand.u32 2147483648, %v3676_v1  ;;  %v4169_v53 = vand.u32 2147483647, %v3676_v1 }
 0x4a8   : > { %v4762_v29 = vmul.f32 %v4143_v23, %v8020_v39  ;;  %v4147_v59 = vsub.f32 1.0, %v4146_v61  ;;  %vm4165_vm3 = vweird.f32 %v3676_v1 }
 0x4a9   : > { %v3358_v4 = vpop.f32.mrf.mxu3  ;;  %v4172_v31 = vor.u32 1.1754944e-38, %v4171_v9  ;;  %vm4170_vm6 = vcmp.eq.f32.partialorder %v4169_v53, 8.507059e+37 }
 0x4aa   : > { %4826 = vst.msk [vmem:[%s7462_s25 + $0xe0] sm:$0xff] %vm466_vm0, %v4762_v29  ;;  %v4148_v27 = vmul.f32 %v5630_v54, %v4147_v59  ;;  %v3359_v8 = vadd.f32 %v7590_v22, %v3358_v4  ;;  %v8023_v29 = vld [vmem:[#allocation60_spill] sm:$0xff] }
 0x4ac   : > { %v5632_v46 = vpop.eup %5631  ;;  %v4149_v20 = vadd.f32 %v5630_v54, %v4148_v27  ;;  %v5329_v3 = vmul.f32 -1.442695, %v3359_v8 }
 0x4ad   : > { %v5634_v17 = vpop.eup %5633  ;;  %v3677_v50 = vadd.f32 1.0, %v5632_v46 }
 0x4ae   : > { %v4153_v5 = vsel %vm4152_vm13, %v5630_v54, %v4149_v20  ;;  %v4161_v45 = vmul.f32 %v5634_v17, %v3676_v1  ;;  %5635 = vpow2.f32 %v5329_v3  ;;  %5282 = vmatmul.msk.f32.gmra.mxu3 %vm2175_vm1, %v7308_v30  ;;  %vm4166_vm15 = vweird.f32 %v5634_v17 }
 0x4af   : > { %v4158_v15 = vsel %vm4155_vm14, %v4157_v44, %v4153_v5  ;;  %5637 = vrcp.f32 %v3677_v50  ;;  %vm4167_vm5 = vmor %vm4165_vm3, %vm4166_vm15  ;;  %v4186_v21 = vand.u32 2147483648, %v3677_v50  ;;  %v4184_v10 = vand.u32 2147483647, %v3677_v50 }
 0x4b0   : > { %v4763_v14 = vmul.f32 %v4158_v15, %v8021_v0  ;;  %v4162_v51 = vsub.f32 1.0, %v4161_v45  ;;  %vm4180_vm8 = vweird.f32 %v3677_v50  ;;  %v8024_v0 = vld [vmem:[#allocation62_spill] sm:$0xff] }
 0x4b1   : > { %v3361_v40 = vpop.f32.mrf.mxu3  ;;  %v4187_v1 = vor.u32 1.1754944e-38, %v4186_v21  ;;  %vm4185_vm9 = vcmp.eq.f32.partialorder %v4184_v10, 8.507059e+37 }
 0x4b2   : > { %4827 = vst.msk [vmem:[%s7462_s25 + $0xe8] sm:$0xff] %vm466_vm0, %v4763_v14  ;;  %v4163_v47 = vmul.f32 %v5634_v17, %v4162_v51  ;;  %v3362_v36 = vadd.f32 %v7590_v22, %v3361_v40 }
 0x4b4   : > { %v5636_v26 = vpop.eup %5635  ;;  %v4164_v52 = vadd.f32 %v5634_v17, %v4163_v47  ;;  %v5330_v37 = vmul.f32 -1.442695, %v3362_v36 }
 0x4b5   : > { %v5638_v30 = vpop.eup %5637  ;;  %v3678_v33 = vadd.f32 1.0, %v5636_v26 }
 0x4b6   : > { %v4168_v28 = vsel %vm4167_vm5, %v5634_v17, %v4164_v52  ;;  %v4176_v34 = vmul.f32 %v5638_v30, %v3677_v50  ;;  %5639 = vpow2.f32 %v5330_v37  ;;  %5283 = vmatmul.msk.f32.gmra.mxu3 %vm2175_vm1, %v7317_v11  ;;  %vm4181_vm7 = vweird.f32 %v5638_v30 }
 0x4b7   : > { %v4173_v13 = vsel %vm4170_vm6, %v4172_v31, %v4168_v28  ;;  %5641 = vrcp.f32 %v3678_v33  ;;  %vm4182_vm4 = vmor %vm4180_vm8, %vm4181_vm7  ;;  %v4201_v4 = vand.u32 2147483648, %v3678_v33  ;;  %v4199_v8 = vand.u32 2147483647, %v3678_v33 }
 0x4b8   : > { %v4764_v32 = vmul.f32 %v4173_v13, %v8022_v19  ;;  %v4177_v25 = vsub.f32 1.0, %v4176_v34  ;;  %vm4195_vm11 = vweird.f32 %v3678_v33  ;;  %v8025_v13 = vld [vmem:[#allocation64_spill] sm:$0xff] }
 0x4b9   : > { %v3364_v49 = vpop.f32.mrf.mxu3  ;;  %v4202_v44 = vor.u32 1.1754944e-38, %v4201_v4  ;;  %vm4200_vm12 = vcmp.eq.f32.partialorder %v4199_v8, 8.507059e+37 }
 0x4ba   : > { %4828 = vst.msk [vmem:[%s7462_s25 + $0xf0] sm:$0xff] %vm466_vm0, %v4764_v32  ;;  %v4178_v6 = vmul.f32 %v5638_v30, %v4177_v25  ;;  %v3365_v57 = vadd.f32 %v7590_v22, %v3364_v49 }
 0x4bc   : > { %v5640_v2 = vpop.eup %5639  ;;  %v4179_v54 = vadd.f32 %v5638_v30, %v4178_v6  ;;  %v5331_v62 = vmul.f32 -1.442695, %v3365_v57 }
 0x4bd   : > { %v5642_v11 = vpop.eup %5641  ;;  %v3679_v41 = vadd.f32 1.0, %v5640_v2 }
 0x4be   : > { %v4183_v61 = vsel %vm4182_vm4, %v5638_v30, %v4179_v54  ;;  %v4191_v23 = vmul.f32 %v5642_v11, %v3678_v33  ;;  %5643 = vpow2.f32 %v5331_v62  ;;  %5284 = vmatmul.msk.f32.gmra.mxu3 %vm2175_vm1, %v7326_v38  ;;  %vm4196_vm10 = vweird.f32 %v5642_v11 }
 0x4bf   : > { %v4188_v39 = vsel %vm4185_vm9, %v4187_v1, %v4183_v61  ;;  %5645 = vrcp.f32 %v3679_v41  ;;  %vm4197_vm2 = vmor %vm4195_vm11, %vm4196_vm10  ;;  %v4216_v9 = vand.u32 2147483648, %v3679_v41  ;;  %v4214_v53 = vand.u32 2147483647, %v3679_v41 }
 0x4c0   : > { %v4765_v59 = vmul.f32 %v4188_v39, %v8023_v29  ;;  %v4192_v35 = vsub.f32 1.0, %v4191_v23  ;;  %vm4210_vm14 = vweird.f32 %v3679_v41  ;;  %v8026_v23 = vld [vmem:[#allocation66_spill] sm:$0xff] }
 0x4c1   : > { %v3367_v27 = vpop.f32.mrf.mxu3  ;;  %v4217_v30 = vor.u32 1.1754944e-38, %v4216_v9  ;;  %vm4215_vm3 = vcmp.eq.f32.partialorder %v4214_v53, 8.507059e+37 }
 0x4c2   : > { %4829 = vst.msk [vmem:[%s7462_s25 + $0xf8] sm:$0xff] %vm466_vm0, %v4765_v59  ;;  %v4193_v58 = vmul.f32 %v5642_v11, %v4192_v35  ;;  %v3368_v46 = vadd.f32 %v7590_v22, %v3367_v27 }
 0x4c4   : > { %v5644_v20 = vpop.eup %5643  ;;  %v4194_v3 = vadd.f32 %v5642_v11, %v4193_v58  ;;  %v5332_v17 = vmul.f32 -1.442695, %v3368_v46 }
 0x4c5   : > { %v5646_v38 = vpop.eup %5645  ;;  %v3680_v50 = vadd.f32 1.0, %v5644_v20 }
 0x4c6   : > { %v4198_v5 = vsel %vm4197_vm2, %v5642_v11, %v4194_v3  ;;  %v4206_v45 = vmul.f32 %v5646_v38, %v3679_v41  ;;  %5647 = vpow2.f32 %v5332_v17  ;;  %5285 = vmatmul.msk.f32.gmra.mxu3 %vm2175_vm1, %v7335_v48  ;;  %vm4211_vm13 = vweird.f32 %v5646_v38 }
 0x4c7   : > { %v4203_v15 = vsel %vm4200_vm12, %v4202_v44, %v4198_v5  ;;  %5649 = vrcp.f32 %v3680_v50  ;;  %vm4212_vm15 = vmor %vm4210_vm14, %vm4211_vm13  ;;  %v4231_v25 = vand.u32 2147483648, %v3680_v50  ;;  %v4229_v6 = vand.u32 2147483647, %v3680_v50  ;;  %v8027_v5 = vld [vmem:[#allocation67_spill] sm:$0xff] }
 0x4c8   : > { %v4766_v14 = vmul.f32 %v4203_v15, %v8024_v0  ;;  %v4207_v51 = vsub.f32 1.0, %v4206_v45  ;;  %vm4225_vm6 = vweird.f32 %v3680_v50 }
 0x4c9   : > { %v3370_v40 = vpop.f32.mrf.mxu3  ;;  %v4232_v62 = vor.u32 1.1754944e-38, %v4231_v25  ;;  %vm4230_vm8 = vcmp.eq.f32.partialorder %v4229_v6, 8.507059e+37 }
 0x4ca   : > { %4830 = vst.msk [vmem:[%s7462_s25 + $0x100] sm:$0xff] %vm466_vm0, %v4766_v14  ;;  %v4208_v47 = vmul.f32 %v5646_v38, %v4207_v51  ;;  %v3371_v36 = vadd.f32 %v7590_v22, %v3370_v40 }
 0x4cc   : > { %v5648_v26 = vpop.eup %5647  ;;  %v4209_v52 = vadd.f32 %v5646_v38, %v4208_v47  ;;  %v5333_v37 = vmul.f32 -1.442695, %v3371_v36 }
 0x4cd   : > { %v5650_v48 = vpop.eup %5649  ;;  %v3681_v31 = vadd.f32 1.0, %v5648_v26 }
 0x4ce   : > { %v4213_v33 = vsel %vm4212_vm15, %v5646_v38, %v4209_v52  ;;  %v4221_v28 = vmul.f32 %v5650_v48, %v3680_v50  ;;  %5651 = vpow2.f32 %v5333_v37  ;;  %5286 = vmatmul.msk.f32.gmra.mxu3 %vm2175_vm1, %v7344_v18  ;;  %vm4226_vm5 = vweird.f32 %v5650_v48 }
 0x4cf   : > { %v4218_v34 = vsel %vm4215_vm3, %v4217_v30, %v4213_v33  ;;  %5653 = vrcp.f32 %v3681_v31  ;;  %vm4227_vm7 = vmor %vm4225_vm6, %vm4226_vm5  ;;  %v4246_v59 = vand.u32 2147483648, %v3681_v31  ;;  %v4244_v27 = vand.u32 2147483647, %v3681_v31 }
 0x4d0   : > { %v4767_v19 = vmul.f32 %v4218_v34, %v8025_v13  ;;  %v4222_v32 = vsub.f32 1.0, %v4221_v28  ;;  %vm4240_vm9 = vweird.f32 %v3681_v31 }
 0x4d1   : > { %v3373_v21 = vpop.f32.mrf.mxu3  ;;  %v4247_v3 = vor.u32 1.1754944e-38, %v4246_v59  ;;  %vm4245_vm11 = vcmp.eq.f32.partialorder %v4244_v27, 8.507059e+37 }
 0x4d2   : > { %4831 = vst.msk [vmem:[%s7462_s25 + $0x108] sm:$0xff] %vm466_vm0, %v4767_v19  ;;  %v4223_v49 = vmul.f32 %v5650_v48, %v4222_v32  ;;  %v3374_v10 = vadd.f32 %v7590_v22, %v3373_v21 }
 0x4d4   : > { %v5652_v57 = vpop.eup %5651  ;;  %v4224_v2 = vadd.f32 %v5650_v48, %v4223_v49  ;;  %v5334_v54 = vmul.f32 -1.442695, %v3374_v10 }
 0x4d5   : > { %v5654_v18 = vpop.eup %5653  ;;  %v3682_v11 = vadd.f32 1.0, %v5652_v57 }
 0x4d6   : > { %v4228_v1 = vsel %vm4227_vm7, %v5650_v48, %v4224_v2  ;;  %v4236_v41 = vmul.f32 %v5654_v18, %v3681_v31  ;;  %5655 = vpow2.f32 %v5334_v54  ;;  %5287 = vmatmul.msk.f32.gmra.mxu3 %vm2175_vm1, %v7353_v43  ;;  %vm4241_vm4 = vweird.f32 %v5654_v18  ;;  %v8028_v31 = vld [vmem:[#allocation68_spill] sm:$0xff] }
 0x4d7   : > { %v4233_v61 = vsel %vm4230_vm8, %v4232_v62, %v4228_v1  ;;  %5657 = vrcp.f32 %v3682_v11  ;;  %vm4242_vm10 = vmor %vm4240_vm9, %vm4241_vm4  ;;  %v4261_v0 = vand.u32 2147483648, %v3682_v11  ;;  %v4259_v9 = vand.u32 2147483647, %v3682_v11  ;;  %v8029_v62 = vld [vmem:[#allocation69_spill] sm:$0xff] }
 0x4d8   : > { %v4768_v39 = vmul.f32 %v4233_v61, %v8026_v23  ;;  %v4237_v29 = vsub.f32 1.0, %v4236_v41  ;;  %vm4255_vm12 = vweird.f32 %v3682_v11 }
 0x4d9   : > { %v3376_v35 = vpop.f32.mrf.mxu3  ;;  %v4262_v26 = vor.u32 1.1754944e-38, %v4261_v0  ;;  %vm4260_vm14 = vcmp.eq.f32.partialorder %v4259_v9, 8.507059e+37 }
 0x4da   : > { %4832 = vst.msk [vmem:[%s7462_s25 + $0x110] sm:$0xff] %vm466_vm0, %v4768_v39  ;;  %v4238_v4 = vmul.f32 %v5654_v18, %v4237_v29  ;;  %v3377_v58 = vadd.f32 %v7590_v22, %v3376_v35 }
 0x4dc   : > { %v5656_v8 = vpop.eup %5655  ;;  %v4239_v46 = vadd.f32 %v5654_v18, %v4238_v4  ;;  %v5335_v20 = vmul.f32 -1.442695, %v3377_v58 }
 0x4dd   : > { %v5658_v43 = vpop.eup %5657  ;;  %v3683_v17 = vadd.f32 1.0, %v5656_v8 }
 0x4de   : > { %v4243_v38 = vsel %vm4242_vm10, %v5654_v18, %v4239_v46  ;;  %v4251_v44 = vmul.f32 %v5658_v43, %v3682_v11  ;;  %5659 = vpow2.f32 %v5335_v20  ;;  %5288 = vmatmul.msk.f32.gmra.mxu3 %vm2175_vm1, %v7362_v63  ;;  %vm4256_vm2 = vweird.f32 %v5658_v43 }
 0x4df   : > { %v4248_v50 = vsel %vm4245_vm11, %v4247_v3, %v4243_v38  ;;  %5661 = vrcp.f32 %v3683_v17  ;;  %vm4257_vm13 = vmor %vm4255_vm12, %vm4256_vm2  ;;  %v4276_v34 = vand.u32 2147483648, %v3683_v17  ;;  %v4274_v32 = vand.u32 2147483647, %v3683_v17 }
 0x4e0   : > { %v4769_v45 = vmul.f32 %v4248_v50, %v8027_v5  ;;  %v4252_v15 = vsub.f32 1.0, %v4251_v44  ;;  %vm4270_vm3 = vweird.f32 %v3683_v17 }
 0x4e1   : > { %v3379_v14 = vpop.f32.mrf.mxu3  ;;  %v4277_v10 = vor.u32 1.1754944e-38, %v4276_v34  ;;  %vm4275_vm6 = vcmp.eq.f32.partialorder %v4274_v32, 8.507059e+37 }
 0x4e2   : > { %4833 = vst.msk [vmem:[%s7462_s25 + $0x118] sm:$0xff] %vm466_vm0, %v4769_v45  ;;  %v4253_v51 = vmul.f32 %v5658_v43, %v4252_v15  ;;  %v3380_v40 = vadd.f32 %v7590_v22, %v3379_v14 }
 0x4e4   : > { %v5660_v47 = vpop.eup %5659  ;;  %v4254_v53 = vadd.f32 %v5658_v43, %v4253_v51  ;;  %v5336_v36 = vmul.f32 -1.442695, %v3380_v40 }
 0x4e5   : > { %v5662_v63 = vpop.eup %5661  ;;  %v3684_v52 = vadd.f32 1.0, %v5660_v47 }
 0x4e6   : > { %v4258_v37 = vsel %vm4257_vm13, %v5658_v43, %v4254_v53  ;;  %v4266_v48 = vmul.f32 %v5662_v63, %v3683_v17  ;;  %5663 = vpow2.f32 %v5336_v36  ;;  %5289 = vmatmul.msk.f32.gmra.mxu3 %vm2175_vm1, %v7371_v42  ;;  %vm4271_vm15 = vweird.f32 %v5662_v63  ;;  %v8030_v43 = vld [vmem:[#allocation70_spill] sm:$0xff]  ;;  %v8031_v36 = vld [vmem:[#allocation71_spill] sm:$0xff] }
 0x4e7   : > { %v4263_v30 = vsel %vm4260_vm14, %v4262_v26, %v4258_v37  ;;  %5665 = vrcp.f32 %v3684_v52  ;;  %vm4272_vm5 = vmor %vm4270_vm3, %vm4271_vm15  ;;  %v4291_v41 = vand.u32 2147483648, %v3684_v52  ;;  %v4289_v39 = vand.u32 2147483647, %v3684_v52 }
 0x4e8   : > { %v4770_v33 = vmul.f32 %v4263_v30, %v8028_v31  ;;  %v4267_v28 = vsub.f32 1.0, %v4266_v48  ;;  %vm4285_vm8 = vweird.f32 %v3684_v52 }
 0x4e9   : > { %v3382_v13 = vpop.f32.mrf.mxu3  ;;  %v4292_v27 = vor.u32 1.1754944e-38, %v4291_v41  ;;  %vm4290_vm9 = vcmp.eq.f32.partialorder %v4289_v39, 8.507059e+37 }
 0x4ea   : > { %4834 = vst.msk [vmem:[%s7462_s25 + $0x120] sm:$0xff] %vm466_vm0, %v4770_v33  ;;  %v4268_v19 = vmul.f32 %v5662_v63, %v4267_v28  ;;  %v3383_v25 = vadd.f32 %v7590_v22, %v3382_v13 }
 0x4ec   : > { %v5664_v21 = vpop.eup %5663  ;;  %v4269_v49 = vadd.f32 %v5662_v63, %v4268_v19  ;;  %v5337_v6 = vmul.f32 -1.442695, %v3383_v25 }
 0x4ed   : > { %v5666_v42 = vpop.eup %5665  ;;  %v3685_v57 = vadd.f32 1.0, %v5664_v21 }
 0x4ee   : > { %v4273_v2 = vsel %vm4272_vm5, %v5662_v63, %v4269_v49  ;;  %v4281_v54 = vmul.f32 %v5666_v42, %v3684_v52  ;;  %5667 = vpow2.f32 %v5337_v6  ;;  %5290 = vmatmul.msk.f32.gmra.mxu3 %vm2175_vm1, %v7380_v7  ;;  %vm4286_vm7 = vweird.f32 %v5666_v42  ;;  %v8032_v49 = vld [vmem:[#allocation72_spill] sm:$0xff] }
 0x4ef   : > { %v4278_v18 = vsel %vm4275_vm6, %v4277_v10, %v4273_v2  ;;  %5669 = vrcp.f32 %v3685_v57  ;;  %vm4287_vm4 = vmor %vm4285_vm8, %vm4286_vm7  ;;  %v4306_v38 = vand.u32 2147483648, %v3685_v57  ;;  %v4304_v5 = vand.u32 2147483647, %v3685_v57 }
 0x4f0   : > { %v4771_v11 = vmul.f32 %v4278_v18, %v8029_v62  ;;  %v4282_v1 = vsub.f32 1.0, %v4281_v54  ;;  %vm4300_vm11 = vweird.f32 %v3685_v57 }
 0x4f1   : > { %v3385_v61 = vpop.f32.mrf.mxu3  ;;  %v4307_v51 = vor.u32 1.1754944e-38, %v4306_v38  ;;  %vm4305_vm12 = vcmp.eq.f32.partialorder %v4304_v5, 8.507059e+37 }
 0x4f2   : > { %4835 = vst.msk [vmem:[%s7462_s25 + $0x128] sm:$0xff] %vm466_vm0, %v4771_v11  ;;  %v4283_v23 = vmul.f32 %v5666_v42, %v4282_v1  ;;  %v3386_v29 = vadd.f32 %v7590_v22, %v3385_v61 }
 0x4f4   : > { %v5668_v59 = vpop.eup %5667  ;;  %v4284_v35 = vadd.f32 %v5666_v42, %v4283_v23  ;;  %v5338_v4 = vmul.f32 -1.442695, %v3386_v29 }
 0x4f5   : > { %v5670_v7 = vpop.eup %5669  ;;  %v3686_v58 = vadd.f32 1.0, %v5668_v59  ;;  %v8033_v59 = vld [vmem:[#allocation73_spill] sm:$0xff] }
 0x4f6   : > { %v4288_v8 = vsel %vm4287_vm4, %v5666_v42, %v4284_v35  ;;  %v4296_v46 = vmul.f32 %v5670_v7, %v3685_v57  ;;  %5671 = vpow2.f32 %v5338_v4  ;;  %5291 = vmatmul.msk.f32.gmra.mxu3 %vm2175_vm1, %v7389_v16  ;;  %vm4301_vm10 = vweird.f32 %v5670_v7 }
 0x4f7   : > { %v4293_v20 = vsel %vm4290_vm9, %v4292_v27, %v4288_v8  ;;  %5673 = vrcp.f32 %v3686_v58  ;;  %vm4302_vm2 = vmor %vm4300_vm11, %vm4301_vm10  ;;  %v4321_v52 = vand.u32 2147483648, %v3686_v58  ;;  %v4319_v30 = vand.u32 2147483647, %v3686_v58 }
 0x4f8   : > { %v4772_v3 = vmul.f32 %v4293_v20, %v8030_v43  ;;  %v4297_v17 = vsub.f32 1.0, %v4296_v46  ;;  %vm4315_vm14 = vweird.f32 %v3686_v58 }
 0x4f9   : > { %v3388_v44 = vpop.f32.mrf.mxu3  ;;  %v4322_v13 = vor.u32 1.1754944e-38, %v4321_v52  ;;  %vm4320_vm3 = vcmp.eq.f32.partialorder %v4319_v30, 8.507059e+37  ;;  %v8035_v30 = vld [vmem:[#allocation75_spill] sm:$0xff] }
 0x4fa   : > { %4836 = vst.msk [vmem:[%s7462_s25 + $0x130] sm:$0xff] %vm466_vm0, %v4772_v3  ;;  %v4298_v50 = vmul.f32 %v5670_v7, %v4297_v17  ;;  %v3389_v45 = vadd.f32 %v7590_v22, %v3388_v44 }
 0x4fc   : > { %v5672_v15 = vpop.eup %5671  ;;  %v4299_v0 = vadd.f32 %v5670_v7, %v4298_v50  ;;  %v5339_v14 = vmul.f32 -1.442695, %v3389_v45  ;;  %v8034_v45 = vld [vmem:[#allocation74_spill] sm:$0xff] }
 0x4fd   : > { %v5674_v16 = vpop.eup %5673  ;;  %v3687_v9 = vadd.f32 1.0, %v5672_v15 }
 0x4fe   : > { %v4303_v40 = vsel %vm4302_vm2, %v5670_v7, %v4299_v0  ;;  %v4311_v47 = vmul.f32 %v5674_v16, %v3686_v58  ;;  %5675 = vpow2.f32 %v5339_v14  ;;  %5292 = vmatmul.msk.f32.gmra.mxu3 %vm2175_vm1, %v7398_v60  ;;  %vm4316_vm13 = vweird.f32 %v5674_v16 }
 0x4ff   : > { %v4308_v53 = vsel %vm4305_vm12, %v4307_v51, %v4303_v40  ;;  %5677 = vrcp.f32 %v3687_v9  ;;  %vm4317_vm15 = vmor %vm4315_vm14, %vm4316_vm13  ;;  %v4336_v10 = vand.u32 2147483648, %v3687_v9  ;;  %v4334_v54 = vand.u32 2147483647, %v3687_v9 }
 0x500   : > { %v4773_v63 = vmul.f32 %v4308_v53, %v8031_v36  ;;  %v4312_v26 = vsub.f32 1.0, %v4311_v47  ;;  %vm4330_vm6 = vweird.f32 %v3687_v9 }
 0x501   : > { %v3391_v37 = vpop.f32.mrf.mxu3  ;;  %v4337_v41 = vor.u32 1.1754944e-38, %v4336_v10  ;;  %vm4335_vm8 = vcmp.eq.f32.partialorder %v4334_v54, 8.507059e+37 }
 0x502   : > { %4837 = vst.msk [vmem:[%s7462_s25 + $0x138] sm:$0xff] %vm466_vm0, %v4773_v63  ;;  %v4313_v48 = vmul.f32 %v5674_v16, %v4312_v26  ;;  %v3392_v31 = vadd.f32 %v7590_v22, %v3391_v37 }
 0x504   : > { %v5676_v33 = vpop.eup %5675  ;;  %v4314_v28 = vadd.f32 %v5674_v16, %v4313_v48  ;;  %v5340_v34 = vmul.f32 -1.442695, %v3392_v31 }
 0x505   : > { %v5678_v60 = vpop.eup %5677  ;;  %v3688_v19 = vadd.f32 1.0, %v5676_v33 }
 0x506   : > { %v4318_v32 = vsel %vm4317_vm15, %v5674_v16, %v4314_v28  ;;  %v4326_v25 = vmul.f32 %v5678_v60, %v3687_v9  ;;  %5679 = vpow2.f32 %v5340_v34  ;;  %5293 = vmatmul.msk.f32.gmra.mxu3 %vm2175_vm1, %v7407_v55  ;;  %vm4331_vm5 = vweird.f32 %v5678_v60  ;;  %v7727_v9 = vld [vmem:[%s7823_s8] ss:$0 sm:$0xff] }
 0x507   : > { %v4323_v21 = vsel %vm4320_vm3, %v4322_v13, %v4318_v32  ;;  %5681 = vrcp.f32 %v3688_v19  ;;  %vm4332_vm7 = vmor %vm4330_vm6, %vm4331_vm5  ;;  %v4351_v7 = vand.u32 2147483648, %v3688_v19  ;;  %v4349_v8 = vand.u32 2147483647, %v3688_v19 }
 0x508   : > { %v4774_v6 = vmul.f32 %v4323_v21, %v8032_v49  ;;  %v4327_v42 = vsub.f32 1.0, %v4326_v25  ;;  %vm4345_vm9 = vweird.f32 %v3688_v19 }
 0x509   : > { %v3394_v57 = vpop.f32.mrf.mxu3  ;;  %v4352_v17 = vor.u32 1.1754944e-38, %v4351_v7  ;;  %vm4350_vm11 = vcmp.eq.f32.partialorder %v4349_v8, 8.507059e+37 }
 0x50a   : > { %4838 = vst.msk [vmem:[%s7462_s25 + $0x140] sm:$0xff] %vm466_vm0, %v4774_v6  ;;  %v4328_v2 = vmul.f32 %v5678_v60, %v4327_v42  ;;  %v3395_v18 = vadd.f32 %v7590_v22, %v3394_v57 }
 0x50c   : > { %v5680_v62 = vpop.eup %5679  ;;  %v4329_v11 = vadd.f32 %v5678_v60, %v4328_v2  ;;  %v5341_v1 = vmul.f32 -1.442695, %v3395_v18  ;;  %v8036_v2 = vld [vmem:[#allocation76_spill] sm:$0xff] }
 0x50d   : > { %v5682_v55 = vpop.eup %5681  ;;  %v3689_v61 = vadd.f32 1.0, %v5680_v62 }
 0x50e   : > { %v4333_v23 = vsel %vm4332_vm7, %v5678_v60, %v4329_v11  ;;  %v4341_v39 = vmul.f32 %v5682_v55, %v3688_v19  ;;  %5683 = vpow2.f32 %v5341_v1  ;;  %5294 = vmatmul.msk.f32.gmra.mxu3 %vm2175_vm1, %v7416_v56  ;;  %vm4346_vm4 = vweird.f32 %v5682_v55 }
 0x50f   : > { %v4338_v29 = vsel %vm4335_vm8, %v4337_v41, %v4333_v23  ;;  %5685 = vrcp.f32 %v3689_v61  ;;  %vm4347_vm10 = vmor %vm4345_vm9, %vm4346_vm4  ;;  %v4366_v0 = vand.u32 2147483648, %v3689_v61  ;;  %v4364_v51 = vand.u32 2147483647, %v3689_v61 }
 0x510   : > { %v4775_v35 = vmul.f32 %v4338_v29, %v8033_v59  ;;  %v4342_v4 = vsub.f32 1.0, %v4341_v39  ;;  %vm4360_vm12 = vweird.f32 %v3689_v61 }
 0x511   : > { %v3397_v27 = vpop.f32.mrf.mxu3  ;;  %v4367_v63 = vor.u32 1.1754944e-38, %v4366_v0  ;;  %vm4365_vm14 = vcmp.eq.f32.partialorder %v4364_v51, 8.507059e+37 }
 0x512   : > { %4839 = vst.msk [vmem:[%s7462_s25 + $0x148] sm:$0xff] %vm466_vm0, %v4775_v35  ;;  %v4343_v58 = vmul.f32 %v5682_v55, %v4342_v4  ;;  %v3398_v46 = vadd.f32 %v7590_v22, %v3397_v27 }
 0x514   : > { %v5684_v20 = vpop.eup %5683  ;;  %v4344_v43 = vadd.f32 %v5682_v55, %v4343_v58  ;;  %v5342_v3 = vmul.f32 -1.442695, %v3398_v46  ;;  %v8037_v58 = vld [vmem:[#allocation77_spill] sm:$0xff] }
 0x515   : > { %v5686_v56 = vpop.eup %5685  ;;  %v3690_v38 = vadd.f32 1.0, %v5684_v20 }
 0x516   : > { %v4348_v44 = vsel %vm4347_vm10, %v5682_v55, %v4344_v43  ;;  %v4356_v50 = vmul.f32 %v5686_v56, %v3689_v61  ;;  %5687 = vpow2.f32 %v5342_v3  ;;  %5295 = vmatmul.msk.f32.gmra.mxu3 %vm2175_vm1, %v7425_v24  ;;  %vm4361_vm2 = vweird.f32 %v5686_v56 }
 0x517   : > { %v4353_v5 = vsel %vm4350_vm11, %v4352_v17, %v4348_v44  ;;  %5689 = vrcp.f32 %v3690_v38  ;;  %vm4362_vm13 = vmor %vm4360_vm12, %vm4361_vm2  ;;  %v4381_v28 = vand.u32 2147483648, %v3690_v38  ;;  %v4379_v13 = vand.u32 2147483647, %v3690_v38 }
 0x518   : > { %v4776_v22 = vmul.f32 %v4353_v5, %v8034_v45  ;;  %v4357_v15 = vsub.f32 1.0, %v4356_v50  ;;  %vm4375_vm3 = vweird.f32 %v3690_v38 }
 0x519   : > { %v3400_v14 = vpop.f32.mrf.mxu3  ;;  %v4382_v49 = vor.u32 1.1754944e-38, %v4381_v28  ;;  %vm4380_vm5 = vcmp.eq.f32.partialorder %v4379_v13, 8.507059e+37 }
 0x51a   : > { %4840 = vst.msk [vmem:[%s7462_s25 + $0x150] sm:$0xff] %vm466_vm0, %v4776_v22  ;;  %v4358_v16 = vmul.f32 %v5686_v56, %v4357_v15  ;;  %v3401_v40 = vadd.f32 %v7727_v9, %v3400_v14 }
 0x51c   : > { %v5688_v24 = vpop.eup %5687  ;;  %v4359_v47 = vadd.f32 %v5686_v56, %v4358_v16  ;;  %v5343_v53 = vmul.f32 -1.442695, %v3401_v40  ;;  %v8038_v16 = vld [vmem:[#allocation78_spill] sm:$0xff] }
 0x51d   : > { %v5690_v36 = vpop.eup %5689  ;;  %v3691_v26 = vadd.f32 1.0, %v5688_v24 }
 0x51e   : > { %v4363_v52 = vsel %vm4362_vm13, %v5686_v56, %v4359_v47  ;;  %v4371_v37 = vmul.f32 %v5690_v36, %v3690_v38  ;;  %5691 = vpow2.f32 %v5343_v53  ;;  %5296 = vmatmul.msk.f32.gmra.mxu3 %vm2175_vm1, %v7434_v12  ;;  %vm4376_vm15 = vweird.f32 %v5690_v36 }
 0x51f   : > { %v4368_v48 = vsel %vm4365_vm14, %v4367_v63, %v4363_v52  ;;  %5693 = vrcp.f32 %v3691_v26  ;;  %vm4377_vm1 = vmor %vm4375_vm3, %vm4376_vm15  ;;  %v4396_v62 = vand.u32 2147483648, %v3691_v26  ;;  %v4394_v55 = vand.u32 2147483647, %v3691_v26 }
 0x520   : > { %v4777_v31 = vmul.f32 %v4368_v48, %v8035_v30  ;;  %v4372_v33 = vsub.f32 1.0, %v4371_v37  ;;  %vm4390_vm7 = vweird.f32 %v3691_v26 }
 0x521   : > { %v3403_v34 = vpop.f32.mrf.mxu3  ;;  %v4397_v59 = vor.u32 1.1754944e-38, %v4396_v62  ;;  %vm4395_vm4 = vcmp.eq.f32.partialorder %v4394_v55, 8.507059e+37 }
 0x522   : > { %4841 = vst.msk [vmem:[%s7462_s25 + $0x158] sm:$0xff] %vm466_vm0, %v4777_v31  ;;  %v4373_v60 = vmul.f32 %v5690_v36, %v4372_v33  ;;  %v3404_v19 = vadd.f32 %v7727_v9, %v3403_v34 }
 0x524   : > { %v5692_v32 = vpop.eup %5691  ;;  %v4374_v25 = vadd.f32 %v5690_v36, %v4373_v60  ;;  %v5344_v21 = vmul.f32 -1.442695, %v3404_v19  ;;  %v8039_v60 = vld [vmem:[#allocation79_spill] sm:$0xff] }
 0x525   : > { %v5694_v12 = vpop.eup %5693  ;;  %v3692_v6 = vadd.f32 1.0, %v5692_v32 }
 0x526   : > { %v4378_v42 = vsel %vm4377_vm1, %v5690_v36, %v4374_v25  ;;  %v4386_v10 = vmul.f32 %v5694_v12, %v3691_v26  ;;  %5695 = vpow2.f32 %v5344_v21  ;;  %vm4391_vm6 = vweird.f32 %v5694_v12 }
 0x527   : > { %v4383_v57 = vsel %vm4380_vm5, %v4382_v49, %v4378_v42  ;;  %5697 = vrcp.f32 %v3692_v6  ;;  %vm4392_vm8 = vmor %vm4390_vm7, %vm4391_vm6  ;;  %v4411_v20 = vand.u32 2147483648, %v3692_v6  ;;  %v4409_v56 = vand.u32 2147483647, %v3692_v6 }
 0x528   : > { %v4778_v54 = vmul.f32 %v4383_v57, %v8036_v2  ;;  %v4387_v18 = vsub.f32 1.0, %v4386_v10  ;;  %vm4405_vm10 = vweird.f32 %v3692_v6 }
 0x529   : > { %v3406_v11 = vpop.f32.mrf.mxu3  ;;  %v4412_v45 = vor.u32 1.1754944e-38, %v4411_v20  ;;  %vm4410_vm2 = vcmp.eq.f32.partialorder %v4409_v56, 8.507059e+37 }
 0x52a   : > { %4842 = vst.msk [vmem:[%s7462_s25 + $0x160] sm:$0xff] %vm466_vm0, %v4778_v54  ;;  %v4388_v1 = vmul.f32 %v5694_v12, %v4387_v18  ;;  %v3407_v41 = vadd.f32 %v7727_v9, %v3406_v11 }
 0x52c   : > { %v5696_v61 = vpop.eup %5695  ;;  %v4389_v23 = vadd.f32 %v5694_v12, %v4388_v1  ;;  %v5345_v39 = vmul.f32 -1.442695, %v3407_v41  ;;  %v8040_v1 = vld [vmem:[#allocation80_spill] sm:$0xff] }
 0x52d   : > { %v5698_v29 = vpop.eup %5697  ;;  %v3693_v35 = vadd.f32 1.0, %v5696_v61 }
 0x52e   : > { %v4393_v4 = vsel %vm4392_vm8, %v5694_v12, %v4389_v23  ;;  %v4401_v7 = vmul.f32 %v5698_v29, %v3692_v6  ;;  %5699 = vpow2.f32 %v5345_v39  ;;  %vm4406_vm9 = vweird.f32 %v5698_v29 }
 0x52f   : > { %v4398_v27 = vsel %vm4395_vm4, %v4397_v59, %v4393_v4  ;;  %5701 = vrcp.f32 %v3693_v35  ;;  %vm4407_vm11 = vmor %vm4405_vm10, %vm4406_vm9  ;;  %v4426_v24 = vand.u32 2147483648, %v3693_v35  ;;  %v4424_v36 = vand.u32 2147483647, %v3693_v35 }
 0x530   : > { %v4779_v8 = vmul.f32 %v4398_v27, %v8037_v58  ;;  %v4402_v46 = vsub.f32 1.0, %v4401_v7  ;;  %vm4420_vm13 = vweird.f32 %v3693_v35 }
 0x531   : > { %v3409_v43 = vpop.f32.mrf.mxu3  ;;  %v4427_v30 = vor.u32 1.1754944e-38, %v4426_v24  ;;  %vm4425_vm15 = vcmp.eq.f32.partialorder %v4424_v36, 8.507059e+37 }
 0x532   : > { %4843 = vst.msk [vmem:[%s7462_s25 + $0x168] sm:$0xff] %vm466_vm0, %v4779_v8  ;;  %v4403_v3 = vmul.f32 %v5698_v29, %v4402_v46  ;;  %v3410_v17 = vadd.f32 %v7727_v9, %v3409_v43 }
 0x534   : > { %v5700_v38 = vpop.eup %5699  ;;  %v4404_v44 = vadd.f32 %v5698_v29, %v4403_v3  ;;  %v5346_v50 = vmul.f32 -1.442695, %v3410_v17  ;;  %v8041_v3 = vld [vmem:[#allocation81_spill] sm:$0xff] }
 0x535   : > { %v5702_v5 = vpop.eup %5701  ;;  %v3694_v22 = vadd.f32 1.0, %v5700_v38 }
 0x536   : > { %v4408_v15 = vsel %vm4407_vm11, %v5698_v29, %v4404_v44  ;;  %v4416_v0 = vmul.f32 %v5702_v5, %v3693_v35  ;;  %5703 = vpow2.f32 %v5346_v50  ;;  %vm4421_vm12 = vweird.f32 %v5702_v5 }
 0x537   : > { %v4413_v14 = vsel %vm4410_vm2, %v4412_v45, %v4408_v15  ;;  %5705 = vrcp.f32 %v3694_v22  ;;  %vm4422_vm14 = vmor %vm4420_vm13, %vm4421_vm12  ;;  %v4441_v32 = vand.u32 2147483648, %v3694_v22  ;;  %v4439_v12 = vand.u32 2147483647, %v3694_v22 }
 0x538   : > { %v4780_v51 = vmul.f32 %v4413_v14, %v8038_v16  ;;  %v4417_v40 = vsub.f32 1.0, %v4416_v0  ;;  %vm4435_vm1 = vweird.f32 %v3694_v22 }
 0x539   : > { %v3412_v47 = vpop.f32.mrf.mxu3  ;;  %v4442_v2 = vor.u32 1.1754944e-38, %v4441_v32  ;;  %vm4440_vm6 = vcmp.eq.f32.partialorder %v4439_v12, 8.507059e+37 }
 0x53a   : > { %4844 = vst.msk [vmem:[%s7462_s25 + $0x170] sm:$0xff] %vm466_vm0, %v4780_v51  ;;  %v4418_v53 = vmul.f32 %v5702_v5, %v4417_v40  ;;  %v3413_v63 = vadd.f32 %v7727_v9, %v3412_v47 }
 0x53c   : > { %v5704_v26 = vpop.eup %5703  ;;  %v4419_v52 = vadd.f32 %v5702_v5, %v4418_v53  ;;  %v5347_v37 = vmul.f32 -1.442695, %v3413_v63  ;;  %v8042_v53 = vld [vmem:[#allocation3_spill] sm:$0xff] }
 0x53d   : > { %v5706_v48 = vpop.eup %5705  ;;  %v3695_v31 = vadd.f32 1.0, %v5704_v26 }
 0x53e   : > { %v4423_v33 = vsel %vm4422_vm14, %v5702_v5, %v4419_v52  ;;  %v4431_v28 = vmul.f32 %v5706_v48, %v3694_v22  ;;  %5707 = vpow2.f32 %v5347_v37  ;;  %vm4436_vm3 = vweird.f32 %v5706_v48 }
 0x53f   : > { %v4428_v34 = vsel %vm4425_vm15, %v4427_v30, %v4423_v33  ;;  %5709 = vrcp.f32 %v3695_v31  ;;  %vm4437_vm5 = vmor %vm4435_vm1, %vm4436_vm3  ;;  %v4456_v61 = vand.u32 2147483648, %v3695_v31  ;;  %v4454_v29 = vand.u32 2147483647, %v3695_v31 }
 0x540   : > { %v4781_v13 = vmul.f32 %v4428_v34, %v8039_v60  ;;  %v4432_v19 = vsub.f32 1.0, %v4431_v28  ;;  %vm4450_vm8 = vweird.f32 %v3695_v31 }
 0x541   : > { %v3415_v25 = vpop.f32.mrf.mxu3  ;;  %v4457_v58 = vor.u32 1.1754944e-38, %v4456_v61  ;;  %vm4455_vm9 = vcmp.eq.f32.partialorder %v4454_v29, 8.507059e+37 }
 0x542   : > { %4845 = vst.msk [vmem:[%s7462_s25 + $0x178] sm:$0xff] %vm466_vm0, %v4781_v13  ;;  %v4433_v21 = vmul.f32 %v5706_v48, %v4432_v19  ;;  %v3416_v49 = vadd.f32 %v7727_v9, %v3415_v25 }
 0x544   : > { %v5708_v6 = vpop.eup %5707  ;;  %v4434_v42 = vadd.f32 %v5706_v48, %v4433_v21  ;;  %v5348_v10 = vmul.f32 -1.442695, %v3416_v49  ;;  %v8043_v21 = vld [vmem:[#allocation5_spill] sm:$0xff] }
 0x545   : > { %v5710_v57 = vpop.eup %5709  ;;  %v3696_v54 = vadd.f32 1.0, %v5708_v6 }
 0x546   : > { %v4438_v18 = vsel %vm4437_vm5, %v5706_v48, %v4434_v42  ;;  %v4446_v62 = vmul.f32 %v5710_v57, %v3695_v31  ;;  %5711 = vpow2.f32 %v5348_v10  ;;  %vm4451_vm7 = vweird.f32 %v5710_v57 }
 0x547   : > { %v4443_v11 = vsel %vm4440_vm6, %v4442_v2, %v4438_v18  ;;  %5713 = vrcp.f32 %v3696_v54  ;;  %vm4452_vm4 = vmor %vm4450_vm8, %vm4451_vm7  ;;  %v4471_v38 = vand.u32 2147483648, %v3696_v54  ;;  %v4469_v5 = vand.u32 2147483647, %v3696_v54 }
 0x548   : > { %v4782_v55 = vmul.f32 %v4443_v11, %v8040_v1  ;;  %v4447_v41 = vsub.f32 1.0, %v4446_v62  ;;  %vm4465_vm11 = vweird.f32 %v3696_v54 }
 0x549   : > { %v3418_v23 = vpop.f32.mrf.mxu3  ;;  %v4472_v16 = vor.u32 1.1754944e-38, %v4471_v38  ;;  %vm4470_vm12 = vcmp.eq.f32.partialorder %v4469_v5, 8.507059e+37 }
 0x54a   : > { %4846 = vst.msk [vmem:[%s7462_s25 + $0x180] sm:$0xff] %vm466_vm0, %v4782_v55  ;;  %v4448_v39 = vmul.f32 %v5710_v57, %v4447_v41  ;;  %v3419_v59 = vadd.f32 %v7727_v9, %v3418_v23 }
 0x54c   : > { %v5712_v35 = vpop.eup %5711  ;;  %v4449_v4 = vadd.f32 %v5710_v57, %v4448_v39  ;;  %v5349_v7 = vmul.f32 -1.442695, %v3419_v59  ;;  %v8044_v39 = vld [vmem:[#allocation7_spill] sm:$0xff] }
 0x54d   : > { %v5714_v27 = vpop.eup %5713  ;;  %v3697_v8 = vadd.f32 1.0, %v5712_v35 }
 0x54e   : > { %v4453_v46 = vsel %vm4452_vm4, %v5710_v57, %v4449_v4  ;;  %v4461_v20 = vmul.f32 %v5714_v27, %v3696_v54  ;;  %5715 = vpow2.f32 %v5349_v7  ;;  %vm4466_vm10 = vweird.f32 %v5714_v27 }
 0x54f   : > { %v4458_v43 = vsel %vm4455_vm9, %v4457_v58, %v4453_v46  ;;  %5717 = vrcp.f32 %v3697_v8  ;;  %vm4467_vm2 = vmor %vm4465_vm11, %vm4466_vm10  ;;  %v4486_v26 = vand.u32 2147483648, %v3697_v8  ;;  %v4484_v48 = vand.u32 2147483647, %v3697_v8 }
 0x550   : > { %v4783_v56 = vmul.f32 %v4458_v43, %v8041_v3  ;;  %v4462_v17 = vsub.f32 1.0, %v4461_v20  ;;  %vm4480_vm14 = vweird.f32 %v3697_v8 }
 0x551   : > { %v3421_v44 = vpop.f32.mrf.mxu3  ;;  %v4487_v60 = vor.u32 1.1754944e-38, %v4486_v26  ;;  %vm4485_vm3 = vcmp.eq.f32.partialorder %v4484_v48, 8.507059e+37 }
 0x552   : > { %4847 = vst.msk [vmem:[%s7462_s25 + $0x188] sm:$0xff] %vm466_vm0, %v4783_v56  ;;  %v4463_v50 = vmul.f32 %v5714_v27, %v4462_v17  ;;  %v3422_v45 = vadd.f32 %v7727_v9, %v3421_v44 }
 0x554   : > { %v5716_v22 = vpop.eup %5715  ;;  %v4464_v15 = vadd.f32 %v5714_v27, %v4463_v50  ;;  %v5350_v0 = vmul.f32 -1.442695, %v3422_v45  ;;  %v8045_v50 = vld [vmem:[#allocation9_spill] sm:$0xff] }
 0x555   : > { %v5718_v14 = vpop.eup %5717  ;;  %v3698_v51 = vadd.f32 1.0, %v5716_v22 }
 0x556   : > { %v4468_v40 = vsel %vm4467_vm2, %v5714_v27, %v4464_v15  ;;  %v4476_v24 = vmul.f32 %v5718_v14, %v3697_v8  ;;  %5719 = vpow2.f32 %v5350_v0  ;;  %vm4481_vm13 = vweird.f32 %v5718_v14 }
 0x557   : > { %v4473_v47 = vsel %vm4470_vm12, %v4472_v16, %v4468_v40  ;;  %5721 = vrcp.f32 %v3698_v51  ;;  %vm4482_vm15 = vmor %vm4480_vm14, %vm4481_vm13  ;;  %v4501_v6 = vand.u32 2147483648, %v3698_v51  ;;  %v4499_v57 = vand.u32 2147483647, %v3698_v51 }
 0x558   : > { %v4784_v36 = vmul.f32 %v4473_v47, %v8042_v53  ;;  %v4477_v63 = vsub.f32 1.0, %v4476_v24  ;;  %vm4495_vm5 = vweird.f32 %v3698_v51 }
 0x559   : > { %v3424_v52 = vpop.f32.mrf.mxu3  ;;  %v4502_v1 = vor.u32 1.1754944e-38, %v4501_v6  ;;  %vm4500_vm7 = vcmp.eq.f32.partialorder %v4499_v57, 8.507059e+37 }
 0x55a   : > { %4848 = vst.msk [vmem:[%s7462_s25 + $0x190] sm:$0xff] %vm466_vm0, %v4784_v36  ;;  %v4478_v37 = vmul.f32 %v5718_v14, %v4477_v63  ;;  %v3425_v30 = vadd.f32 %v7727_v9, %v3424_v52 }
 0x55c   : > { %v5720_v31 = vpop.eup %5719  ;;  %v4479_v33 = vadd.f32 %v5718_v14, %v4478_v37  ;;  %v5351_v28 = vmul.f32 -1.442695, %v3425_v30  ;;  %v8046_v37 = vld [vmem:[#allocation11_spill] sm:$0xff] }
 0x55d   : > { %v5722_v34 = vpop.eup %5721  ;;  %v3699_v13 = vadd.f32 1.0, %v5720_v31 }
 0x55e   : > { %v4483_v19 = vsel %vm4482_vm15, %v5718_v14, %v4479_v33  ;;  %v4491_v32 = vmul.f32 %v5722_v34, %v3698_v51  ;;  %5723 = vpow2.f32 %v5351_v28  ;;  %vm4496_vm1 = vweird.f32 %v5722_v34 }
 0x55f   : > { %v4488_v25 = vsel %vm4485_vm3, %v4487_v60, %v4483_v19  ;;  %5725 = vrcp.f32 %v3699_v13  ;;  %vm4497_vm6 = vmor %vm4495_vm5, %vm4496_vm1  ;;  %v4516_v35 = vand.u32 2147483648, %v3699_v13  ;;  %v4514_v27 = vand.u32 2147483647, %v3699_v13 }
 0x560   : > { %v4785_v12 = vmul.f32 %v4488_v25, %v8043_v21  ;;  %v4492_v49 = vsub.f32 1.0, %v4491_v32  ;;  %vm4510_vm4 = vweird.f32 %v3699_v13 }
 0x561   : > { %v3427_v42 = vpop.f32.mrf.mxu3  ;;  %v4517_v3 = vor.u32 1.1754944e-38, %v4516_v35  ;;  %vm4515_vm10 = vcmp.eq.f32.partialorder %v4514_v27, 8.507059e+37 }
 0x562   : > { %4849 = vst.msk [vmem:[%s7462_s25 + $0x198] sm:$0xff] %vm466_vm0, %v4785_v12  ;;  %v4493_v10 = vmul.f32 %v5722_v34, %v4492_v49  ;;  %v3428_v2 = vadd.f32 %v7727_v9, %v3427_v42 }
 0x564   : > { %v5724_v54 = vpop.eup %5723  ;;  %v4494_v18 = vadd.f32 %v5722_v34, %v4493_v10  ;;  %v5352_v62 = vmul.f32 -1.442695, %v3428_v2  ;;  %v8047_v10 = vld [vmem:[#allocation13_spill] sm:$0xff] }
 0x565   : > { %v5726_v11 = vpop.eup %5725  ;;  %v3700_v55 = vadd.f32 1.0, %v5724_v54 }
 0x566   : > { %v4498_v41 = vsel %vm4497_vm6, %v5722_v34, %v4494_v18  ;;  %v4506_v61 = vmul.f32 %v5726_v11, %v3699_v13  ;;  %5727 = vpow2.f32 %v5352_v62  ;;  %vm4511_vm8 = vweird.f32 %v5726_v11 }
 0x567   : > { %v4503_v23 = vsel %vm4500_vm7, %v4502_v1, %v4498_v41  ;;  %5729 = vrcp.f32 %v3700_v55  ;;  %vm4512_vm9 = vmor %vm4510_vm4, %vm4511_vm8  ;;  %v4531_v22 = vand.u32 2147483648, %v3700_v55  ;;  %v4529_v14 = vand.u32 2147483647, %v3700_v55 }
 0x568   : > { %v4786_v29 = vmul.f32 %v4503_v23, %v8044_v39  ;;  %v4507_v59 = vsub.f32 1.0, %v4506_v61  ;;  %vm4525_vm2 = vweird.f32 %v3700_v55 }
 0x569   : > { %v3430_v4 = vpop.f32.mrf.mxu3  ;;  %v4532_v53 = vor.u32 1.1754944e-38, %v4531_v22  ;;  %vm4530_vm13 = vcmp.eq.f32.partialorder %v4529_v14, 8.507059e+37 }
 0x56a   : > { %4850 = vst.msk [vmem:[%s7462_s25 + $0x1a0] sm:$0xff] %vm466_vm0, %v4786_v29  ;;  %v4508_v7 = vmul.f32 %v5726_v11, %v4507_v59  ;;  %v3431_v58 = vadd.f32 %v7727_v9, %v3430_v4 }
 0x56c   : > { %v5728_v8 = vpop.eup %5727  ;;  %v4509_v46 = vadd.f32 %v5726_v11, %v4508_v7  ;;  %v5353_v20 = vmul.f32 -1.442695, %v3431_v58  ;;  %v8048_v7 = vld [vmem:[#allocation15_spill] sm:$0xff] }
 0x56d   : > { %v5730_v43 = vpop.eup %5729  ;;  %v3701_v56 = vadd.f32 1.0, %v5728_v8 }
 0x56e   : > { %v4513_v17 = vsel %vm4512_vm9, %v5726_v11, %v4509_v46  ;;  %v4521_v38 = vmul.f32 %v5730_v43, %v3700_v55  ;;  %5731 = vpow2.f32 %v5353_v20  ;;  %vm4526_vm11 = vweird.f32 %v5730_v43 }
 0x56f   : > { %v4518_v44 = vsel %vm4515_vm10, %v4517_v3, %v4513_v17  ;;  %5733 = vrcp.f32 %v3701_v56  ;;  %vm4527_vm12 = vmor %vm4525_vm2, %vm4526_vm11  ;;  %v4546_v31 = vand.u32 2147483648, %v3701_v56  ;;  %v4544_v34 = vand.u32 2147483647, %v3701_v56 }
 0x570   : > { %v4787_v5 = vmul.f32 %v4518_v44, %v8045_v50  ;;  %v4522_v45 = vsub.f32 1.0, %v4521_v38  ;;  %vm4540_vm15 = vweird.f32 %v3701_v56 }
 0x571   : > { %v3433_v15 = vpop.f32.mrf.mxu3  ;;  %v4547_v21 = vor.u32 1.1754944e-38, %v4546_v31  ;;  %vm4545_vm1 = vcmp.eq.f32.partialorder %v4544_v34, 8.507059e+37 }
 0x572   : > { %4851 = vst.msk [vmem:[%s7462_s25 + $0x1a8] sm:$0xff] %vm466_vm0, %v4787_v5  ;;  %v4523_v0 = vmul.f32 %v5730_v43, %v4522_v45  ;;  %v3434_v16 = vadd.f32 %v7727_v9, %v3433_v15 }
 0x574   : > { %v5732_v51 = vpop.eup %5731  ;;  %v4524_v40 = vadd.f32 %v5730_v43, %v4523_v0  ;;  %v5354_v24 = vmul.f32 -1.442695, %v3434_v16  ;;  %v8049_v0 = vld [vmem:[#allocation17_spill] sm:$0xff] }
 0x575   : > { %v5734_v47 = vpop.eup %5733  ;;  %v3702_v36 = vadd.f32 1.0, %v5732_v51 }
 0x576   : > { %v4528_v63 = vsel %vm4527_vm12, %v5730_v43, %v4524_v40  ;;  %v4536_v26 = vmul.f32 %v5734_v47, %v3701_v56  ;;  %5735 = vpow2.f32 %v5354_v24  ;;  %vm4541_vm14 = vweird.f32 %v5734_v47 }
 0x577   : > { %v4533_v52 = vsel %vm4530_vm13, %v4532_v53, %v4528_v63  ;;  %5737 = vrcp.f32 %v3702_v36  ;;  %vm4542_vm3 = vmor %vm4540_vm15, %vm4541_vm14  ;;  %v4561_v54 = vand.u32 2147483648, %v3702_v36  ;;  %v4559_v11 = vand.u32 2147483647, %v3702_v36 }
 0x578   : > { %v4788_v48 = vmul.f32 %v4533_v52, %v8046_v37  ;;  %v4537_v30 = vsub.f32 1.0, %v4536_v26  ;;  %vm4555_vm6 = vweird.f32 %v3702_v36 }
 0x579   : > { %v3436_v33 = vpop.f32.mrf.mxu3  ;;  %v4562_v39 = vor.u32 1.1754944e-38, %v4561_v54  ;;  %vm4560_vm8 = vcmp.eq.f32.partialorder %v4559_v11, 8.507059e+37 }
 0x57a   : > { %4852 = vst.msk [vmem:[%s7462_s25 + $0x1b0] sm:$0xff] %vm466_vm0, %v4788_v48  ;;  %v4538_v28 = vmul.f32 %v5734_v47, %v4537_v30  ;;  %v3437_v60 = vadd.f32 %v7727_v9, %v3436_v33 }
 0x57c   : > { %v5736_v13 = vpop.eup %5735  ;;  %v4539_v19 = vadd.f32 %v5734_v47, %v4538_v28  ;;  %v5355_v32 = vmul.f32 -1.442695, %v3437_v60  ;;  %v8050_v28 = vld [vmem:[#allocation19_spill] sm:$0xff] }
 0x57d   : > { %v5738_v25 = vpop.eup %5737  ;;  %v3703_v12 = vadd.f32 1.0, %v5736_v13 }
 0x57e   : > { %v4543_v49 = vsel %vm4542_vm3, %v5734_v47, %v4539_v19  ;;  %v4551_v6 = vmul.f32 %v5738_v25, %v3702_v36  ;;  %5739 = vpow2.f32 %v5355_v32  ;;  %vm4556_vm5 = vweird.f32 %v5738_v25 }
 0x57f   : > { %v4548_v42 = vsel %vm4545_vm1, %v4547_v21, %v4543_v49  ;;  %5741 = vrcp.f32 %v3703_v12  ;;  %vm4557_vm7 = vmor %vm4555_vm6, %vm4556_vm5  ;;  %v4576_v8 = vand.u32 2147483648, %v3703_v12  ;;  %v4574_v43 = vand.u32 2147483647, %v3703_v12 }
 0x580   : > { %v4789_v57 = vmul.f32 %v4548_v42, %v8047_v10  ;;  %v4552_v2 = vsub.f32 1.0, %v4551_v6  ;;  %vm4570_vm9 = vweird.f32 %v3703_v12 }
 0x581   : > { %v3439_v18 = vpop.f32.mrf.mxu3  ;;  %v4577_v50 = vor.u32 1.1754944e-38, %v4576_v8  ;;  %vm4575_vm11 = vcmp.eq.f32.partialorder %v4574_v43, 8.507059e+37 }
 0x582   : > { %4853 = vst.msk [vmem:[%s7462_s25 + $0x1b8] sm:$0xff] %vm466_vm0, %v4789_v57  ;;  %v4553_v62 = vmul.f32 %v5738_v25, %v4552_v2  ;;  %v3440_v1 = vadd.f32 %v7727_v9, %v3439_v18 }
 0x584   : > { %v5740_v55 = vpop.eup %5739  ;;  %v4554_v41 = vadd.f32 %v5738_v25, %v4553_v62  ;;  %v5356_v61 = vmul.f32 -1.442695, %v3440_v1  ;;  %v8051_v62 = vld [vmem:[#allocation21_spill] sm:$0xff] }
 0x585   : > { %v5742_v23 = vpop.eup %5741  ;;  %v3704_v29 = vadd.f32 1.0, %v5740_v55 }
 0x586   : > { %v4558_v59 = vsel %vm4557_vm7, %v5738_v25, %v4554_v41  ;;  %v4566_v35 = vmul.f32 %v5742_v23, %v3703_v12  ;;  %5743 = vpow2.f32 %v5356_v61  ;;  %vm4571_vm4 = vweird.f32 %v5742_v23 }
 0x587   : > { %v4563_v4 = vsel %vm4560_vm8, %v4562_v39, %v4558_v59  ;;  %5745 = vrcp.f32 %v3704_v29  ;;  %vm4572_vm10 = vmor %vm4570_vm9, %vm4571_vm4  ;;  %v4591_v51 = vand.u32 2147483648, %v3704_v29  ;;  %v4589_v47 = vand.u32 2147483647, %v3704_v29 }
 0x588   : > { %v4790_v27 = vmul.f32 %v4563_v4, %v8048_v7  ;;  %v4567_v58 = vsub.f32 1.0, %v4566_v35  ;;  %vm4585_vm12 = vweird.f32 %v3704_v29 }
 0x589   : > { %v3442_v46 = vpop.f32.mrf.mxu3  ;;  %v4592_v37 = vor.u32 1.1754944e-38, %v4591_v51  ;;  %vm4590_vm14 = vcmp.eq.f32.partialorder %v4589_v47, 8.507059e+37 }
 0x58a   : > { %4854 = vst.msk [vmem:[%s7462_s25 + $0x1c0] sm:$0xff] %vm466_vm0, %v4790_v27  ;;  %v4568_v20 = vmul.f32 %v5742_v23, %v4567_v58  ;;  %v3443_v3 = vadd.f32 %v7727_v9, %v3442_v46 }
 0x58c   : > { %v5744_v56 = vpop.eup %5743  ;;  %v4569_v17 = vadd.f32 %v5742_v23, %v4568_v20  ;;  %v5357_v38 = vmul.f32 -1.442695, %v3443_v3  ;;  %v8052_v20 = vld [vmem:[#allocation24_spill] sm:$0xff] }
 0x58d   : > { %v5746_v44 = vpop.eup %5745  ;;  %v3705_v5 = vadd.f32 1.0, %v5744_v56 }
 0x58e   : > { %v4573_v45 = vsel %vm4572_vm10, %v5742_v23, %v4569_v17  ;;  %v4581_v22 = vmul.f32 %v5746_v44, %v3704_v29  ;;  %5747 = vpow2.f32 %v5357_v38  ;;  %vm4586_vm2 = vweird.f32 %v5746_v44 }
 0x58f   : > { %v4578_v15 = vsel %vm4575_vm11, %v4577_v50, %v4573_v45  ;;  %5749 = vrcp.f32 %v3705_v5  ;;  %vm4587_vm13 = vmor %vm4585_vm12, %vm4586_vm2  ;;  %v4606_v13 = vand.u32 2147483648, %v3705_v5  ;;  %v4604_v25 = vand.u32 2147483647, %v3705_v5 }
 0x590   : > { %v4791_v14 = vmul.f32 %v4578_v15, %v8049_v0  ;;  %v4582_v16 = vsub.f32 1.0, %v4581_v22  ;;  %vm4600_vm3 = vweird.f32 %v3705_v5 }
 0x591   : > { %v3445_v40 = vpop.f32.mrf.mxu3  ;;  %v4607_v10 = vor.u32 1.1754944e-38, %v4606_v13  ;;  %vm4605_vm5 = vcmp.eq.f32.partialorder %v4604_v25, 8.507059e+37  ;;  %v8055_v25 = vld [vmem:[#allocation30_spill] sm:$0xff] }
 0x592   : > { %4855 = vst.msk [vmem:[%s7462_s25 + $0x1c8] sm:$0xff] %vm466_vm0, %v4791_v14  ;;  %v4583_v24 = vmul.f32 %v5746_v44, %v4582_v16  ;;  %v3446_v53 = vadd.f32 %v7727_v9, %v3445_v40  ;;  %v8053_v14 = vld [vmem:[#allocation26_spill] sm:$0xff] }
 0x594   : > { %v5748_v36 = vpop.eup %5747  ;;  %v4584_v63 = vadd.f32 %v5746_v44, %v4583_v24  ;;  %v5358_v26 = vmul.f32 -1.442695, %v3446_v53 }
 0x595   : > { %v5750_v52 = vpop.eup %5749  ;;  %v3706_v48 = vadd.f32 1.0, %v5748_v36 }
 0x596   : > { %v4588_v30 = vsel %vm4587_vm13, %v5746_v44, %v4584_v63  ;;  %v4596_v31 = vmul.f32 %v5750_v52, %v3705_v5  ;;  %5751 = vpow2.f32 %v5358_v26  ;;  %vm4601_vm15 = vweird.f32 %v5750_v52 }
 0x597   : > { %v4593_v33 = vsel %vm4590_vm14, %v4592_v37, %v4588_v30  ;;  %5753 = vrcp.f32 %v3706_v48  ;;  %vm4602_vm1 = vmor %vm4600_vm3, %vm4601_vm15  ;;  %v4621_v55 = vand.u32 2147483648, %v3706_v48  ;;  %v4619_v23 = vand.u32 2147483647, %v3706_v48 }
 0x598   : > { %v4792_v34 = vmul.f32 %v4593_v33, %v8050_v28  ;;  %v4597_v60 = vsub.f32 1.0, %v4596_v31  ;;  %vm4615_vm7 = vweird.f32 %v3706_v48 }
 0x599   : > { %v3448_v19 = vpop.f32.mrf.mxu3  ;;  %v4622_v7 = vor.u32 1.1754944e-38, %v4621_v55  ;;  %vm4620_vm4 = vcmp.eq.f32.partialorder %v4619_v23, 8.507059e+37 }
 0x59a   : > { %4856 = vst.msk [vmem:[%s7462_s25 + $0x1d0] sm:$0xff] %vm466_vm0, %v4792_v34  ;;  %v4598_v32 = vmul.f32 %v5750_v52, %v4597_v60  ;;  %v3449_v21 = vadd.f32 %v7727_v9, %v3448_v19 }
 0x59c   : > { %v5752_v12 = vpop.eup %5751  ;;  %v4599_v49 = vadd.f32 %v5750_v52, %v4598_v32  ;;  %v5359_v6 = vmul.f32 -1.442695, %v3449_v21 }
 0x59d   : > { %v5754_v42 = vpop.eup %5753  ;;  %v3707_v57 = vadd.f32 1.0, %v5752_v12 }
 0x59e   : > { %v4603_v2 = vsel %vm4602_vm1, %v5750_v52, %v4599_v49  ;;  %v4611_v54 = vmul.f32 %v5754_v42, %v3706_v48  ;;  %5755 = vpow2.f32 %v5359_v6  ;;  %vm4616_vm6 = vweird.f32 %v5754_v42  ;;  %v8054_v48 = vld [vmem:[#allocation28_spill] sm:$0xff] }
 0x59f   : > { %v4608_v18 = vsel %vm4605_vm5, %v4607_v10, %v4603_v2  ;;  %5757 = vrcp.f32 %v3707_v57  ;;  %vm4617_vm8 = vmor %vm4615_vm7, %vm4616_vm6  ;;  %v4636_v56 = vand.u32 2147483648, %v3707_v57  ;;  %v4634_v17 = vand.u32 2147483647, %v3707_v57 }
 0x5a0   : > { %v4793_v11 = vmul.f32 %v4608_v18, %v8051_v62  ;;  %v4612_v1 = vsub.f32 1.0, %v4611_v54  ;;  %vm4630_vm10 = vweird.f32 %v3707_v57 }
 0x5a1   : > { %v3451_v41 = vpop.f32.mrf.mxu3  ;;  %v4637_v5 = vor.u32 1.1754944e-38, %v4636_v56  ;;  %vm4635_vm2 = vcmp.eq.f32.partialorder %v4634_v17, 8.507059e+37 }
 0x5a2   : > { %4857 = vst.msk [vmem:[%s7462_s25 + $0x1d8] sm:$0xff] %vm466_vm0, %v4793_v11  ;;  %v4613_v61 = vmul.f32 %v5754_v42, %v4612_v1  ;;  %v3452_v39 = vadd.f32 %v7727_v9, %v3451_v41 }
 0x5a4   : > { %v5756_v29 = vpop.eup %5755  ;;  %v4614_v59 = vadd.f32 %v5754_v42, %v4613_v61  ;;  %v5360_v35 = vmul.f32 -1.442695, %v3452_v39 }
 0x5a5   : > { %v5758_v4 = vpop.eup %5757  ;;  %v3708_v27 = vadd.f32 1.0, %v5756_v29 }
 0x5a6   : > { %v4618_v58 = vsel %vm4617_vm8, %v5754_v42, %v4614_v59  ;;  %v4626_v8 = vmul.f32 %v5758_v4, %v3707_v57  ;;  %5759 = vpow2.f32 %v5360_v35  ;;  %vm4631_vm9 = vweird.f32 %v5758_v4 }
 0x5a7   : > { %v4623_v46 = vsel %vm4620_vm4, %v4622_v7, %v4618_v58  ;;  %5761 = vrcp.f32 %v3708_v27  ;;  %vm4632_vm11 = vmor %vm4630_vm10, %vm4631_vm9  ;;  %v4651_v40 = vand.u32 2147483648, %v3708_v27  ;;  %v4649_v47 = vand.u32 2147483647, %v3708_v27 }
 0x5a8   : > { %v4794_v43 = vmul.f32 %v4623_v46, %v8052_v20  ;;  %v4627_v3 = vsub.f32 1.0, %v4626_v8  ;;  %vm4645_vm13 = vweird.f32 %v3708_v27 }
 0x5a9   : > { %v4652_v63 = vor.u32 1.1754944e-38, %v4651_v40  ;;  %vm4650_vm15 = vcmp.eq.f32.partialorder %v4649_v47, 8.507059e+37 }
 0x5aa   : > { %4858 = vst.msk [vmem:[%s7462_s25 + $0x1e0] sm:$0xff] %vm466_vm0, %v4794_v43  ;;  %v4628_v9 = vmul.f32 %v5758_v4, %v4627_v3 }
 0x5ac   : > { %v5760_v38 = vpop.eup %5759  ;;  %v4629_v44 = vadd.f32 %v5758_v4, %v4628_v9 }
 0x5ad   : > { %v5762_v50 = vpop.eup %5761  ;;  %v3709_v45 = vadd.f32 1.0, %v5760_v38 }
 0x5ae   : > { %v4633_v22 = vsel %vm4632_vm11, %v5758_v4, %v4629_v44  ;;  %v4641_v15 = vmul.f32 %v5762_v50, %v3708_v27  ;;  %vm4646_vm12 = vweird.f32 %v5762_v50 }
 0x5af   : > { %v4638_v0 = vsel %vm4635_vm2, %v4637_v5, %v4633_v22  ;;  %5763 = vrcp.f32 %v3709_v45  ;;  %vm4647_vm14 = vmor %vm4645_vm13, %vm4646_vm12  ;;  %v4666_v33 = vand.u32 2147483648, %v3709_v45  ;;  %v4664_v34 = vand.u32 2147483647, %v3709_v45 }
 0x5b0   : > { %v4795_v16 = vmul.f32 %v4638_v0, %v8053_v14  ;;  %v4642_v51 = vsub.f32 1.0, %v4641_v15  ;;  %vm4660_vm1 = vweird.f32 %v3709_v45 }
 0x5b1   : > { %v4667_v13 = vor.u32 1.1754944e-38, %v4666_v33  ;;  %vm4665_vm6 = vcmp.eq.f32.partialorder %v4664_v34, 8.507059e+37 }
 0x5b2   : > { %4859 = vst.msk [vmem:[%s7462_s25 + $0x1e8] sm:$0xff] %vm466_vm0, %v4795_v16  ;;  %v4643_v24 = vmul.f32 %v5762_v50, %v4642_v51 }
 0x5b4   : > { %v4644_v53 = vadd.f32 %v5762_v50, %v4643_v24 }
 0x5b5   : > { %v5764_v36 = vpop.eup %5763 }
 0x5b6   : > { %v4648_v26 = vsel %vm4647_vm14, %v5762_v50, %v4644_v53  ;;  %v4656_v52 = vmul.f32 %v5764_v36, %v3709_v45  ;;  %vm4661_vm3 = vweird.f32 %v5764_v36 }
 0x5b7   : > { %v4653_v37 = vsel %vm4650_vm15, %v4652_v63, %v4648_v26  ;;  %vm4662_vm5 = vmor %vm4660_vm1, %vm4661_vm3 }
 0x5b8   : > { %v4796_v30 = vmul.f32 %v4653_v37, %v8054_v48  ;;  %v4657_v31 = vsub.f32 1.0, %v4656_v52 }
 0x5ba   : > { %4860 = vst.msk [vmem:[%s7462_s25 + $0x1f0] sm:$0xff] %vm466_vm0, %v4796_v30  ;;  %v4658_v28 = vmul.f32 %v5764_v36, %v4657_v31 }
 0x5bc   : > { %v4659_v60 = vadd.f32 %v5764_v36, %v4658_v28 }
 0x5be   : > { %v4663_v19 = vsel %vm4662_vm5, %v5764_v36, %v4659_v60 }
 0x5bf   : > { %v4668_v32 = vsel %vm4665_vm6, %v4667_v13, %v4663_v19 }
 0x5c0   : > { %v4797_v21 = vmul.f32 %v4668_v32, %v8055_v25 }
 0x5c2   : > { %4861 = vst.msk [vmem:[%s7462_s25 + $0x1f8] sm:$0xff] %vm466_vm0, %v4797_v21 }
 0x5c3 PF: > { %s21_s13 = sadd.s32 1, %s5774_s13  }
 0x5c4   : > { %p18_p4 = scmp.ge.s32.totalorder %s21_s13, 6  }
 0x5c6   :  { %20 = sbr.rel (!%p18_p4) target bundleno = 1 (0x1), region = 101 }

</bundles_post_ra>
